<compile_context>
chip_gen: v7x
topology: tpu7x:2x2x1
jax: 0.10.0
libtpu: 0.0.40
codegen_flags: <defaults>
</compile_context>

<pallas_src>
import functools

import jax
import jax.numpy as jnp
from jax import lax
from jax.experimental import pallas as pl
from jax.experimental.pallas import tpu as pltpu


# ---------------------------------------------------------------------------
# VMEM budgets (chip-aware, with a safe fallback)
# ---------------------------------------------------------------------------
def _detect_vmem_cap_bytes() -> int:
    try:
        info_fn = getattr(pltpu, "get_tpu_info", None)
        if info_fn is not None:
            cap = getattr(info_fn(), "vmem_capacity_bytes", None)
            if cap:
                return int(cap)
    except Exception:
        pass
    return 64 * 1024 * 1024  # conservative: v7x physical VMEM per core


_VMEM_CAP = _detect_vmem_cap_bytes()
_VMEM_LIMIT = min(96 * 1024 * 1024, (3 * _VMEM_CAP) // 4)   # scoped-VMEM request
_WS_BUDGET = min(24 * 1024 * 1024, _VMEM_LIMIT // 2)        # double-buffered working set


def _sigmoid(x):
    # one EUP op (tanh) instead of exp + divide
    return 0.5 * jnp.tanh(0.5 * x) + 0.5


def _pick_spatial_tile(s: int, bytes_per_s: int, *, budget: int = None,
                       min_steps: int = 2) -> int:
    """Largest multiple-of-128 divisor of `s` whose double-buffered footprint
    fits the budget; falls back to the full dim when s is not 128-divisible."""
    if budget is None:
        budget = _WS_BUDGET
    if s % 128 != 0:
        return s  # lane constraint: last block dim multiple of 128 OR full dim
    limit = max(budget // max(2 * bytes_per_s, 1), 128)
    t = min(s, (limit // 128) * 128)
    t = max(t, 128)
    while t > 128 and s % t != 0:
        t -= 128
    if s % t != 0:
        return s
    # keep >=min_steps grid steps when cheap, so the pipeline can overlap DMA
    while s // t < min_steps and t >= 256 and (t // 2) % 128 == 0 and s % (t // 2) == 0:
        t //= 2
    return t


def _pad_axis_to_multiple(a, axis: int, mult: int = 8):
    size = a.shape[axis]
    pad = (-size) % mult
    if pad == 0:
        return a
    widths = [(0, 0)] * a.ndim
    widths[axis] = (0, pad)
    return jnp.pad(a, widths)


# ---------------------------------------------------------------------------
# Pallas kernel 1 (kernel_size == 1 path):
#   fused 1x1-conv MXU matmul + per-channel (bias-centered) stats accumulation
# ---------------------------------------------------------------------------
def _conv1x1_gates_stats(h3, x3, w_hh, b_hh, w_xh, out_dtype):
    """h3:(N,Cih,S) x3:(N,Cix,S)|None  w_hh:(C4,Cih) b_hh:(C4,) w_xh:(C4,Cix)|None.
    Returns gh3 (N,C4,S) [= W_hh.h + b], gx3|None, and per-channel sum/sumsq of
    the *bias-centered* matmul outputs (C4,1) f32 each."""
    has_x = x3 is not None
    N, _, S = h3.shape
    C4 = w_hh.shape[0]

    # pad the contraction (input-channel) axis to a sublane multiple (zeros)
    h3 = _pad_axis_to_multiple(h3, 1, 8)
    w_hh = _pad_axis_to_multiple(w_hh, 1, 8)
    if has_x:
        x3 = _pad_axis_to_multiple(x3, 1, 8)
        w_xh = _pad_axis_to_multiple(w_xh, 1, 8)
    Cih = h3.shape[1]
    Cix = x3.shape[1] if has_x else 0

    itemsize = 4
    bytes_per_s = (N * Cih + N * C4) * itemsize
    if has_x:
        bytes_per_s += (N * Cix + N * C4) * itemsize
    TS = _pick_spatial_tile(S, bytes_per_s)

    def kernel(*refs):
        if has_x:
            (h_ref, w_h_ref, b_ref, x_ref, w_x_ref,
             gh_ref, gx_ref, sh_ref, qh_ref, sx_ref, qx_ref) = refs
        else:
            h_ref, w_h_ref, b_ref, gh_ref, sh_ref, qh_ref = refs
        si = pl.program_id(0)

        @pl.when(si == 0)
        def _():
            sh_ref[...] = jnp.zeros_like(sh_ref)
            qh_ref[...] = jnp.zeros_like(qh_ref)
            if has_x:
                sx_ref[...] = jnp.zeros_like(sx_ref)
                qx_ref[...] = jnp.zeros_like(qx_ref)

        w_h = w_h_ref[...].astype(jnp.float32)
        bias = b_ref[...]                                   # (C4, 1) f32
        ps = jnp.zeros((C4, 1), jnp.float32)
        pq = jnp.zeros((C4, 1), jnp.float32)
        for n in range(N):                                  # static, unrolled
            m = jnp.dot(w_h, h_ref[n].astype(jnp.float32),
                        preferred_element_type=jnp.float32)  # (C4, TS)
            gh_ref[n] = (m + bias).astype(gh_ref.dtype)
            ps = ps + jnp.sum(m, axis=1, keepdims=True)
            pq = pq + jnp.sum(m * m, axis=1, keepdims=True)
        sh_ref[...] += ps
        qh_ref[...] += pq

        if has_x:
            w_x = w_x_ref[...].astype(jnp.float32)
            ps = jnp.zeros((C4, 1), jnp.float32)
            pq = jnp.zeros((C4, 1), jnp.float32)
            for n in range(N):
                m = jnp.dot(w_x, x_ref[n].astype(jnp.float32),
                            preferred_element_type=jnp.float32)
                gx_ref[n] = m.astype(gx_ref.dtype)
                ps = ps + jnp.sum(m, axis=1, keepdims=True)
                pq = pq + jnp.sum(m * m, axis=1, keepdims=True)
            sx_ref[...] += ps
            qx_ref[...] += pq

    h_spec = pl.BlockSpec((N, Cih, TS), lambda si: (0, 0, si))
    wh_spec = pl.BlockSpec((C4, Cih), lambda si: (0, 0))
    b_spec = pl.BlockSpec((C4, 1), lambda si: (0, 0))
    gate_spec = pl.BlockSpec((N, C4, TS), lambda si: (0, 0, si))
    stat_spec = pl.BlockSpec((C4, 1), lambda si: (0, 0))

    inputs = [h3, w_hh, b_hh.reshape(C4, 1).astype(jnp.float32)]
    in_specs = [h_spec, wh_spec, b_spec]
    out_shape = [jax.ShapeDtypeStruct((N, C4, S), out_dtype)]
    out_specs = [gate_spec]
    if has_x:
        inputs += [x3, w_xh]
        in_specs += [pl.BlockSpec((N, Cix, TS), lambda si: (0, 0, si)),
                     pl.BlockSpec((C4, Cix), lambda si: (0, 0))]
        out_shape += [jax.ShapeDtypeStruct((N, C4, S), out_dtype)]
        out_specs += [gate_spec]
    n_stats = 4 if has_x else 2
    out_shape += [jax.ShapeDtypeStruct((C4, 1), jnp.float32)] * n_stats
    out_specs += [stat_spec] * n_stats

    return pl.pallas_call(
        kernel,
        out_shape=tuple(out_shape),
        grid=(S // TS,),
        in_specs=in_specs,
        out_specs=tuple(out_specs),
        compiler_params=pltpu.CompilerParams(
            dimension_semantics=("arbitrary",),
            vmem_limit_bytes=_VMEM_LIMIT),
    )(*inputs)


# ---------------------------------------------------------------------------
# Pallas kernel 1b (kernel_size > 1 fallback): fused bn_h + bn_x statistics
# ---------------------------------------------------------------------------
def _fused_channel_stats(tensors, pivots):
    """Per-channel sum & sumsq of (x - pivot) for each (N,C,S) tensor in one call."""
    num = len(tensors)
    N, _, S = tensors[0].shape
    bytes_per_s = sum(t.shape[0] * t.shape[1] * t.dtype.itemsize for t in tensors)
    TS = _pick_spatial_tile(S, bytes_per_s)

    def kernel(*refs):
        x_refs = refs[:num]
        p_refs = refs[num:2 * num]
        s_refs = refs[2 * num:3 * num]
        q_refs = refs[3 * num:]
        si = pl.program_id(0)

        @pl.when(si == 0)
        def _():
            for r in (*s_refs, *q_refs):
                r[...] = jnp.zeros_like(r)

        for xr, pr, sr, qr in zip(x_refs, p_refs, s_refs, q_refs):
            xc = xr[...].astype(jnp.float32) - pr[...]
            sr[...] += jnp.sum(jnp.sum(xc, axis=2, keepdims=True), axis=0)
            qr[...] += jnp.sum(jnp.sum(xc * xc, axis=2, keepdims=True), axis=0)

    in_specs = ([pl.BlockSpec((N, t.shape[1], TS), lambda si: (0, 0, si)) for t in tensors]
                + [pl.BlockSpec((t.shape[1], 1), lambda si: (0, 0)) for t in tensors])
    stat_specs = tuple(pl.BlockSpec((t.shape[1], 1), lambda si: (0, 0)) for t in tensors)
    stat_shapes = tuple(jax.ShapeDtypeStruct((t.shape[1], 1), jnp.float32) for t in tensors)

    outs = pl.pallas_call(
        kernel,
        out_shape=stat_shapes * 2,
        grid=(S // TS,),
        in_specs=in_specs,
        out_specs=stat_specs * 2,
        compiler_params=pltpu.CompilerParams(
            dimension_semantics=("arbitrary",),
            vmem_limit_bytes=_VMEM_LIMIT),
    )(*tensors, *[p.reshape(-1, 1).astype(jnp.float32) for p in pivots])
    return list(zip(outs[:num], outs[num:]))


# ---------------------------------------------------------------------------
# Pallas kernel 2: fused BN(h)+BN(x) -> gates -> cell update  (+ bn_c stats)
# ---------------------------------------------------------------------------
def _fused_gates_cell(gh3, gx3, c3, scale_h, shift_h, scale_x, shift_x, phi, out_dtype):
    N, C4, S = gh3.shape
    Ch = c3.shape[1]
    has_x = gx3 is not None
    itemsize = 4
    bytes_per_s = ((2 if has_x else 1) * N * C4 + 3 * N * Ch) * itemsize
    TS = _pick_spatial_tile(S, bytes_per_s)

    def kernel(*refs):
        if has_x:
            (gh_ref, gx_ref, c_ref, shs_ref, shb_ref, sxs_ref, sxb_ref,
             cnew_ref, sigo_ref, csum_ref, csq_ref) = refs
        else:
            (gh_ref, c_ref, shs_ref, shb_ref,
             cnew_ref, sigo_ref, csum_ref, csq_ref) = refs
        si = pl.program_id(0)

        @pl.when(si == 0)
        def _():
            csum_ref[...] = jnp.zeros_like(csum_ref)
            csq_ref[...] = jnp.zeros_like(csq_ref)

        def gate(k):
            lo = k * Ch
            v = (gh_ref[:, lo:lo + Ch].astype(jnp.float32) * shs_ref[lo:lo + Ch]
                 + shb_ref[lo:lo + Ch])
            if has_x:
                v = (v + gx_ref[:, lo:lo + Ch].astype(jnp.float32) * sxs_ref[lo:lo + Ch]
                     + sxb_ref[lo:lo + Ch])
            return v

        # gate order: i=0, f=1, o=2, g=3.  Process f, i, g first (for c_new) and
        # o last so only ~2-3 gate-sized temporaries are live at any time.
        c_new = _sigmoid(gate(1)) * c_ref[...].astype(jnp.float32)
        c_new = c_new + _sigmoid(gate(0)) * phi(gate(3))
        cnew_ref[...] = c_new.astype(cnew_ref.dtype)
        # bn_c statistics fused here (c_new already in VMEM / registers)
        csum_ref[...] += jnp.sum(jnp.sum(c_new, axis=2, keepdims=True), axis=0)
        csq_ref[...] += jnp.sum(jnp.sum(c_new * c_new, axis=2, keepdims=True), axis=0)
        sigo_ref[...] = _sigmoid(gate(2)).astype(sigo_ref.dtype)

    gate_spec = pl.BlockSpec((N, C4, TS), lambda si: (0, 0, si))
    vec_spec = pl.BlockSpec((N, Ch, TS), lambda si: (0, 0, si))
    par_spec = pl.BlockSpec((C4, 1), lambda si: (0, 0))
    stat_spec = pl.BlockSpec((Ch, 1), lambda si: (0, 0))

    if has_x:
        inputs = [gh3, gx3, c3,
                  scale_h.reshape(-1, 1).astype(jnp.float32),
                  shift_h.reshape(-1, 1).astype(jnp.float32),
                  scale_x.reshape(-1, 1).astype(jnp.float32),
                  shift_x.reshape(-1, 1).astype(jnp.float32)]
        in_specs = [gate_spec, gate_spec, vec_spec, par_spec, par_spec, par_spec, par_spec]
    else:
        inputs = [gh3, c3,
                  scale_h.reshape(-1, 1).astype(jnp.float32),
                  shift_h.reshape(-1, 1).astype(jnp.float32)]
        in_specs = [gate_spec, vec_spec, par_spec, par_spec]

    return pl.pallas_call(
        kernel,
        out_shape=(jax.ShapeDtypeStruct((N, Ch, S), out_dtype),
                   jax.ShapeDtypeStruct((N, Ch, S), out_dtype),
                   jax.ShapeDtypeStruct((Ch, 1), jnp.float32),
                   jax.ShapeDtypeStruct((Ch, 1), jnp.float32)),
        grid=(S // TS,),
        in_specs=in_specs,
        out_specs=(vec_spec, vec_spec, stat_spec, stat_spec),
        compiler_params=pltpu.CompilerParams(
            dimension_semantics=("arbitrary",),
            vmem_limit_bytes=_VMEM_LIMIT),
    )(*inputs)


# ---------------------------------------------------------------------------
# Pallas kernel 3: fused BN(c_new) + hidden-state update
# ---------------------------------------------------------------------------
def _fused_bn_c_h(c_new3, sig_o3, scale_c, shift_c, phi, out_dtype):
    N, Ch, S = c_new3.shape
    bytes_per_s = 3 * N * Ch * 4
    TS = _pick_spatial_tile(S, bytes_per_s)

    def kernel(c_ref, o_ref, s_ref, b_ref, h_ref):
        bn_c = c_ref[...].astype(jnp.float32) * s_ref[...] + b_ref[...]
        h_ref[...] = (o_ref[...].astype(jnp.float32) * phi(bn_c)).astype(h_ref.dtype)

    vec_spec = pl.BlockSpec((N, Ch, TS), lambda si: (0, 0, si))
    par_spec = pl.BlockSpec((Ch, 1), lambda si: (0, 0))

    return pl.pallas_call(
        kernel,
        out_shape=jax.ShapeDtypeStruct((N, Ch, S), out_dtype),
        grid=(S // TS,),
        in_specs=[vec_spec, vec_spec, par_spec, par_spec],
        out_specs=vec_spec,
        compiler_params=pltpu.CompilerParams(
            dimension_semantics=("parallel",),
            vmem_limit_bytes=_VMEM_LIMIT),
    )(c_new3, sig_o3,
      scale_c.reshape(Ch, 1).astype(jnp.float32),
      shift_c.reshape(Ch, 1).astype(jnp.float32))


# ---------------------------------------------------------------------------
# Statistics finalization + BN fold + running-buffer update
# ---------------------------------------------------------------------------
def _finalize_moments(s, q, count, pivot=None):
    """s,q: (C,1) sums of (x - pivot) and (x - pivot)^2.  Returns (mean, biased var)."""
    inv = 1.0 / float(count)
    mean_c = s[:, 0] * inv
    var = jnp.maximum(q[:, 0] * inv - mean_c * mean_c, 0.0)
    mean = mean_c if pivot is None else mean_c + pivot.astype(jnp.float32)
    return mean, var


def _bn_fold_and_update(gamma, beta, rm_all, rv_all, t, mean, var, *,
                        training, eps, momentum, count):
    """BN folded to y = x*scale + shift; torch-style running-stat update."""
    if training:
        corr = float(count) / float(count - 1) if count > 1 else 1.0
        new_rm = rm_all.at[t].set((1.0 - momentum) * rm_all[t] + momentum * mean)
        new_rv = rv_all.at[t].set((1.0 - momentum) * rv_all[t] + momentum * var * corr)
        use_mean, use_var = mean, var
    else:
        new_rm, new_rv = rm_all, rv_all
        use_mean = rm_all[t]
        use_var = rv_all[t]
    inv_std = lax.rsqrt(use_var.astype(jnp.float32) + eps)
    scale = gamma.astype(jnp.float32) * inv_std
    shift = beta.astype(jnp.float32) - use_mean.astype(jnp.float32) * scale
    return scale, shift, new_rm, new_rv


# ---------------------------------------------------------------------------
# Full LSTMCell2dBN forward
# ---------------------------------------------------------------------------
def lstm_cell_2d_bn_forward(params, buffers, x, h, c, t, *, training=True,
                            eps=1e-5, momentum=0.1, phi=jnp.tanh):
    """Returns (h_new, c_new, new_buffers).  All activations are NCHW."""
    N, Ch, H, W = h.shape
    S = H * W
    max_length = buffers["bn_h_mean"].shape[0]
    t = jnp.clip(jnp.asarray(t, jnp.int32), 0, max_length - 1)

    w_hh = params["W_hh"]
    C4 = w_hh.shape[0]
    kh, kw = w_hh.shape[2], w_hh.shape[3]
    has_x = (params.get("W_xh") is not None) and (x is not None)
    n_count = N * S

    h3 = h.reshape(N, Ch, S)          # free reshapes, no HBM transpose
    c3 = c.reshape(N, Ch, S)
    x3 = x.reshape(N, x.shape[1], S) if has_x else None

    mean_h = var_h = mean_x = var_x = None

    if kh == 1 and kw == 1:
        # Pallas MXU 1x1 conv with the BN statistics fused into the same pass.
        w_hh2 = w_hh.reshape(C4, -1)
        w_xh2 = params["W_xh"].reshape(C4, -1) if has_x else None
        res = _conv1x1_gates_stats(h3, x3, w_hh2, params["b_hh"], w_xh2, h.dtype)
        if has_x:
            gh3, gx3, sh, qh, sx, qx = res
        else:
            gh3, sh, qh = res
            gx3 = None
        if training:
            mean_h, var_h = _finalize_moments(sh, qh, n_count, pivot=params["b_hh"])
            if has_x:
                mean_x, var_x = _finalize_moments(sx, qx, n_count)
    else:
        # TODO(synk): kernel_size>1 spatial conv stays on XLA; only the statistics
        # are fused into a single Pallas pass here.
        dn = ("NCHW", "OIHW", "NCHW")
        conv_h = lax.conv_general_dilated(h, w_hh, (1, 1), "SAME", dimension_numbers=dn)
        conv_h = conv_h + params["b_hh"][None, :, None, None]
        gh3 = conv_h.reshape(N, C4, S)
        if has_x:
            conv_x = lax.conv_general_dilated(x, params["W_xh"], (1, 1), "SAME",
                                              dimension_numbers=dn)
            gx3 = conv_x.reshape(N, C4, S)
        else:
            gx3 = None
        if training:
            tensors = [gh3] + ([gx3] if has_x else [])
            pivots = [params["b_hh"]] + ([jnp.zeros((C4,), jnp.float32)] if has_x else [])
            stats = _fused_channel_stats(tensors, pivots)
            mean_h, var_h = _finalize_moments(stats[0][0], stats[0][1], n_count,
                                              pivot=params["b_hh"])
            if has_x:
                mean_x, var_x = _finalize_moments(stats[1][0], stats[1][1], n_count)

    scale_h, shift_h, new_rm_h, new_rv_h = _bn_fold_and_update(
        params["bn_h_weight"], params["bn_h_bias"],
        buffers["bn_h_mean"], buffers["bn_h_var"], t, mean_h, var_h,
        training=training, eps=eps, momentum=momentum, count=n_count)
    if has_x:
        scale_x, shift_x, new_rm_x, new_rv_x = _bn_fold_and_update(
            params["bn_x_weight"], params["bn_x_bias"],
            buffers["bn_x_mean"], buffers["bn_x_var"], t, mean_x, var_x,
            training=training, eps=eps, momentum=momentum, count=n_count)
    else:
        scale_x = shift_x = None

    # fused BN + gate nonlinearities + cell update + bn_c stats (single pass)
    c_new3, sig_o3, csum, csq = _fused_gates_cell(
        gh3, gx3, c3, scale_h, shift_h, scale_x, shift_x, phi, h.dtype)

    if training:
        mean_c, var_c = _finalize_moments(csum, csq, n_count)
    else:
        mean_c = var_c = None
    scale_c, shift_c, new_rm_c, new_rv_c = _bn_fold_and_update(
        params["bn_c_weight"], params["bn_c_bias"],
        buffers["bn_c_mean"], buffers["bn_c_var"], t, mean_c, var_c,
        training=training, eps=eps, momentum=momentum, count=n_count)

    h_new3 = _fused_bn_c_h(c_new3, sig_o3, scale_c, shift_c, phi, h.dtype)

    new_buffers = dict(buffers)
    new_buffers["bn_h_mean"], new_buffers["bn_h_var"] = new_rm_h, new_rv_h
    if has_x:
        new_buffers["bn_x_mean"], new_buffers["bn_x_var"] = new_rm_x, new_rv_x
    new_buffers["bn_c_mean"], new_buffers["bn_c_var"] = new_rm_c, new_rv_c

    return h_new3.reshape(N, Ch, H, W), c_new3.reshape(N, Ch, H, W), new_buffers


# ---------------------------------------------------------------------------
# Pure-JAX reference (matches torch.nn.functional.batch_norm + LSTM cell math)
# ---------------------------------------------------------------------------
def _batch_norm_ref(x, rm, rv, gamma, beta, *, training, momentum, eps):
    axes = (0, 2, 3)
    if training:
        mean = jnp.mean(x, axis=axes)
        var = jnp.mean((x - mean[None, :, None, None]) ** 2, axis=axes)
        n = x.shape[0] * x.shape[2] * x.shape[3]
        corr = n / (n - 1) if n > 1 else 1.0
        new_rm = (1.0 - momentum) * rm + momentum * mean
        new_rv = (1.0 - momentum) * rv + momentum * var * corr
        y = (x - mean[None, :, None, None]) * lax.rsqrt(var[None, :, None, None] + eps)
    else:
        new_rm, new_rv = rm, rv
        y = (x - rm[None, :, None, None]) * lax.rsqrt(rv[None, :, None, None] + eps)
    return y * gamma[None, :, None, None] + beta[None, :, None, None], new_rm, new_rv


def _lstm_cell_ref(params, buffers, x, h, c, t, *, training, eps, momentum):
    t = int(min(max(int(t), 0), buffers["bn_h_mean"].shape[0] - 1))
    dn = ("NCHW", "OIHW", "NCHW")
    conv_h = lax.conv_general_dilated(h, params["W_hh"], (1, 1), "SAME",
                                      dimension_numbers=dn)
    conv_h = conv_h + params["b_hh"][None, :, None, None]
    gates, rm_h, rv_h = _batch_norm_ref(
        conv_h, buffers["bn_h_mean"][t], buffers["bn_h_var"][t],
        params["bn_h_weight"], params["bn_h_bias"],
        training=training, momentum=momentum, eps=eps)
    new_buffers = dict(buffers)
    new_buffers["bn_h_mean"] = buffers["bn_h_mean"].at[t].set(rm_h)
    new_buffers["bn_h_var"] = buffers["bn_h_var"].at[t].set(rv_h)
    if params.get("W_xh") is not None and x is not None:
        conv_x = lax.conv_general_dilated(x, params["W_xh"], (1, 1), "SAME",
                                          dimension_numbers=dn)
        gx, rm_x, rv_x = _batch_norm_ref(
            conv_x, buffers["bn_x_mean"][t], buffers["bn_x_var"][t],
            params["bn_x_weight"], params["bn_x_bias"],
            training=training, momentum=momentum, eps=eps)
        gates = gates + gx
        new_buffers["bn_x_mean"] = buffers["bn_x_mean"].at[t].set(rm_x)
        new_buffers["bn_x_var"] = buffers["bn_x_var"].at[t].set(rv_x)
    i, f, o, g = jnp.split(gates, 4, axis=1)
    c_new = jax.nn.sigmoid(f) * c + jax.nn.sigmoid(i) * jnp.tanh(g)
    bn_c, rm_c, rv_c = _batch_norm_ref(
        c_new, buffers["bn_c_mean"][t], buffers["bn_c_var"][t],
        params["bn_c_weight"], params["bn_c_bias"],
        training=training, momentum=momentum, eps=eps)
    new_buffers["bn_c_mean"] = buffers["bn_c_mean"].at[t].set(rm_c)
    new_buffers["bn_c_var"] = buffers["bn_c_var"].at[t].set(rv_c)
    h_new = jax.nn.sigmoid(o) * jnp.tanh(bn_c)
    return h_new, c_new, new_buffers


if __name__ == "__main__":
    # LSTMCell2dBN(h_channels=32, x_channels=4, kernel_size=1, tracked_steps=8,
    #              forget_gate_bias=1.0)
    h_channels = 32
    x_channels = 4
    kernel_size = 1
    tracked_steps = 8
    forget_gate_bias = 1.0
    gamma_init = 0.1
    eps = 1e-5
    momentum = 0.1

    key = jax.random.PRNGKey(0)
    k_whh, k_wxh, k_x, k_h, k_c = jax.random.split(key, 5)
    C4 = 4 * h_channels

    def rb16(a):
        # round matmul inputs through bf16 so the Pallas MXU matmul and the XLA
        # reference conv agree bit-tightly regardless of MXU precision mode.
        return a.astype(jnp.bfloat16).astype(jnp.float32)

    params = {
        "W_hh": rb16(0.1 * jax.random.normal(
            k_whh, (C4, h_channels, kernel_size, kernel_size), jnp.float32)),
        "b_hh": jnp.zeros((C4,), jnp.float32).at[h_channels:2 * h_channels].set(
            forget_gate_bias),
        "W_xh": rb16(0.1 * jax.random.normal(
            k_wxh, (C4, x_channels, kernel_size, kernel_size), jnp.float32)),
        "bn_h_weight": jnp.full((C4,), gamma_init, jnp.float32),
        "bn_h_bias": jnp.zeros((C4,), jnp.float32),
        "bn_x_weight": jnp.full((C4,), gamma_init, jnp.float32),
        "bn_x_bias": jnp.zeros((C4,), jnp.float32),
        "bn_c_weight": jnp.full((h_channels,), gamma_init, jnp.float32),
        "bn_c_bias": jnp.zeros((h_channels,), jnp.float32),
    }
    buffers = {
        "bn_h_mean": jnp.zeros((tracked_steps, C4), jnp.float32),
        "bn_h_var": jnp.ones((tracked_steps, C4), jnp.float32),
        "bn_x_mean": jnp.zeros((tracked_steps, C4), jnp.float32),
        "bn_x_var": jnp.ones((tracked_steps, C4), jnp.float32),
        "bn_c_mean": jnp.zeros((tracked_steps, h_channels), jnp.float32),
        "bn_c_var": jnp.ones((tracked_steps, h_channels), jnp.float32),
    }

    N, H, W = 2, 16, 16
    x = rb16(jax.random.normal(k_x, (N, x_channels, H, W), jnp.float32))
    h = rb16(jax.random.normal(k_h, (N, h_channels, H, W), jnp.float32))
    c = rb16(jax.random.normal(k_c, (N, h_channels, H, W), jnp.float32))
    t = 3

    fwd_train = jax.jit(functools.partial(lstm_cell_2d_bn_forward,
                                          training=True, eps=eps, momentum=momentum))
    fwd_eval = jax.jit(functools.partial(lstm_cell_2d_bn_forward,
                                         training=False, eps=eps, momentum=momentum))

    # --- training mode (time is a traced scalar => no per-step recompiles) ---
    h1, c1, buf1 = fwd_train(params, buffers, x, h, c, jnp.int32(t))
    jax.block_until_ready((h1, c1, buf1))

    h1_ref, c1_ref, buf1_ref = _lstm_cell_ref(params, buffers, x, h, c, t,
                                              training=True, eps=eps, momentum=momentum)
    assert jnp.allclose(h1, h1_ref, atol=1e-4, rtol=1e-4), "h mismatch (train)"
    assert jnp.allclose(c1, c1_ref, atol=1e-4, rtol=1e-4), "c mismatch (train)"
    for name in ("bn_h_mean", "bn_h_var", "bn_x_mean", "bn_x_var",
                 "bn_c_mean", "bn_c_var"):
        assert jnp.allclose(buf1[name], buf1_ref[name], atol=1e-5, rtol=1e-5), \
            f"{name} mismatch (train)"

    # --- eval mode (running stats selected at traced t, no buffer update) ---
    h2, c2, _ = fwd_eval(params, buf1, x, h, c, jnp.int32(t))
    jax.block_until_ready((h2, c2))
    h2_ref, c2_ref, _ = _lstm_cell_ref(params, buf1_ref, x, h, c, t,
                                       training=False, eps=eps, momentum=momentum)
    assert jnp.allclose(h2, h2_ref, atol=1e-4, rtol=1e-4), "h mismatch (eval)"
    assert jnp.allclose(c2, c2_ref, atol=1e-4, rtol=1e-4), "c mismatch (eval)"

    print("KERNEL_OK")
</pallas_src>

<mosaic_0001>
module attributes {stable_mosaic.version = 11 : i64} {
  func.func @kernel(%arg0: i32, %arg1: memref<2x32x128xf32, #tpu.memory_space<vmem>>, %arg2: memref<128x32xf32, #tpu.memory_space<vmem>>, %arg3: memref<128x1xf32, #tpu.memory_space<vmem>>, %arg4: memref<2x8x128xf32, #tpu.memory_space<vmem>>, %arg5: memref<128x8xf32, #tpu.memory_space<vmem>>, %arg6: memref<2x128x128xf32, #tpu.memory_space<vmem>>, %arg7: memref<2x128x128xf32, #tpu.memory_space<vmem>>, %arg8: memref<128x1xf32, #tpu.memory_space<vmem>>, %arg9: memref<128x1xf32, #tpu.memory_space<vmem>>, %arg10: memref<128x1xf32, #tpu.memory_space<vmem>>, %arg11: memref<128x1xf32, #tpu.memory_space<vmem>>) attributes {dimension_semantics = [#tpu.dimension_semantics<arbitrary>], iteration_bounds = array<i64: 2>, scalar_prefetch = 0 : i64, scratch_operands = 0 : i64, tpu.core_type = #tpu.core_type<tc>, window_params = [{transform_indices = @transform_0, window_bounds = array<i64: 2, 32, 128>}, {pipeline_mode = #tpu.pipeline_mode<synchronous>, transform_indices = @transform_1, window_bounds = array<i64: 128, 32>}, {pipeline_mode = #tpu.pipeline_mode<synchronous>, transform_indices = @transform_2, window_bounds = array<i64: 128, 1>}, {transform_indices = @transform_3, window_bounds = array<i64: 2, 8, 128>}, {pipeline_mode = #tpu.pipeline_mode<synchronous>, transform_indices = @transform_4, window_bounds = array<i64: 128, 8>}, {transform_indices = @transform_5, window_bounds = array<i64: 2, 128, 128>}, {transform_indices = @transform_6, window_bounds = array<i64: 2, 128, 128>}, {pipeline_mode = #tpu.pipeline_mode<synchronous>, transform_indices = @transform_7, window_bounds = array<i64: 128, 1>}, {pipeline_mode = #tpu.pipeline_mode<synchronous>, transform_indices = @transform_8, window_bounds = array<i64: 128, 1>}, {pipeline_mode = #tpu.pipeline_mode<synchronous>, transform_indices = @transform_9, window_bounds = array<i64: 128, 1>}, {pipeline_mode = #tpu.pipeline_mode<synchronous>, transform_indices = @transform_10, window_bounds = array<i64: 128, 1>}]} {
    %c0_i32 = arith.constant 0 : i32
    %0 = arith.cmpi eq, %arg0, %c0_i32 : i32
    %1 = arith.extui %0 : i1 to i32
    %c0_i32_0 = arith.constant 0 : i32
    %2 = arith.cmpi ne, %1, %c0_i32_0 : i32
    scf.if %2 {
      %cst_60 = arith.constant 0.000000e+00 : f32
      %78 = vector.broadcast %cst_60 : f32 to vector<128x1xf32>
      %c0_61 = arith.constant 0 : index
      %c0_62 = arith.constant 0 : index
      %79 = vector.load %arg8[%c0_61, %c0_62] : memref<128x1xf32, #tpu.memory_space<vmem>>, vector<128x1xf32>
      tpu.vector_store %arg8[%c0_61, %c0_62], %78 {strides = array<i32>} : memref<128x1xf32, #tpu.memory_space<vmem>>, vector<128x1xf32>,
      %cst_63 = arith.constant 0.000000e+00 : f32
      %80 = vector.broadcast %cst_63 : f32 to vector<128x1xf32>
      %c0_64 = arith.constant 0 : index
      %c0_65 = arith.constant 0 : index
      %81 = vector.load %arg9[%c0_64, %c0_65] : memref<128x1xf32, #tpu.memory_space<vmem>>, vector<128x1xf32>
      tpu.vector_store %arg9[%c0_64, %c0_65], %80 {strides = array<i32>} : memref<128x1xf32, #tpu.memory_space<vmem>>, vector<128x1xf32>,
      %cst_66 = arith.constant 0.000000e+00 : f32
      %82 = vector.broadcast %cst_66 : f32 to vector<128x1xf32>
      %c0_67 = arith.constant 0 : index
      %c0_68 = arith.constant 0 : index
      %83 = vector.load %arg10[%c0_67, %c0_68] : memref<128x1xf32, #tpu.memory_space<vmem>>, vector<128x1xf32>
      tpu.vector_store %arg10[%c0_67, %c0_68], %82 {strides = array<i32>} : memref<128x1xf32, #tpu.memory_space<vmem>>, vector<128x1xf32>,
      %cst_69 = arith.constant 0.000000e+00 : f32
      %84 = vector.broadcast %cst_69 : f32 to vector<128x1xf32>
      %c0_70 = arith.constant 0 : index
      %c0_71 = arith.constant 0 : index
      %85 = vector.load %arg11[%c0_70, %c0_71] : memref<128x1xf32, #tpu.memory_space<vmem>>, vector<128x1xf32>
      tpu.vector_store %arg11[%c0_70, %c0_71], %84 {strides = array<i32>} : memref<128x1xf32, #tpu.memory_space<vmem>>, vector<128x1xf32>,
    } else {
    }
    %c0 = arith.constant 0 : index
    %c0_1 = arith.constant 0 : index
    %3 = vector.load %arg2[%c0, %c0_1] : memref<128x32xf32, #tpu.memory_space<vmem>>, vector<128x32xf32>
    %c0_2 = arith.constant 0 : index
    %c0_3 = arith.constant 0 : index
    %4 = vector.load %arg3[%c0_2, %c0_3] : memref<128x1xf32, #tpu.memory_space<vmem>>, vector<128x1xf32>
    %cst = arith.constant 0.000000e+00 : f32
    %5 = vector.broadcast %cst : f32 to vector<128x1xf32>
    %cst_4 = arith.constant 0.000000e+00 : f32
    %6 = vector.broadcast %cst_4 : f32 to vector<128x1xf32>
    %c0_5 = arith.constant 0 : index
    %c0_6 = arith.constant 0 : index
    %c0_7 = arith.constant 0 : index
    %7 = vector.load %arg1[%c0_5, %c0_6, %c0_7] : memref<2x32x128xf32, #tpu.memory_space<vmem>>, vector<1x32x128xf32>
    %8 = vector.shape_cast %7 : vector<1x32x128xf32> to vector<32x128xf32>
    %cst_8 = arith.constant dense<0.000000e+00> : vector<128x128xf32>
    %9 = tpu.matmul %3, %8, %cst_8 {dimension_numbers = #tpu.dot_dimension_numbers<[1], [0], [0], [1], [0, 0, 1, 1], [], []>} : vector<128x32xf32>, vector<32x128xf32>, vector<128x128xf32> -> vector<128x128xf32>
    %10 = vector.broadcast %4 : vector<128x1xf32> to vector<128x128xf32>
    %11 = arith.addf %9, %10 : vector<128x128xf32>
    %c0_9 = arith.constant 0 : index
    %c0_10 = arith.constant 0 : index
    %c0_11 = arith.constant 0 : index
    %12 = vector.load %arg6[%c0_9, %c0_10, %c0_11] : memref<2x128x128xf32, #tpu.memory_space<vmem>>, vector<1x128x128xf32>
    %13 = vector.shape_cast %12 : vector<1x128x128xf32> to vector<128x128xf32>
    %14 = vector.shape_cast %11 : vector<128x128xf32> to vector<1x128x128xf32>
    tpu.vector_store %arg6[%c0_9, %c0_10, %c0_11], %14 {strides = array<i32>} : memref<2x128x128xf32, #tpu.memory_space<vmem>>, vector<1x128x128xf32>,
    %cst_12 = arith.constant dense<0.000000e+00> : vector<128xf32>
    %15 = vector.multi_reduction <add>, %9, %cst_12 [1] : vector<128x128xf32> to vector<128xf32>
    %16 = vector.shape_cast %15 : vector<128xf32> to vector<128x1xf32>
    %17 = arith.addf %5, %16 : vector<128x1xf32>
    %18 = arith.mulf %9, %9 : vector<128x128xf32>
    %cst_13 = arith.constant dense<0.000000e+00> : vector<128xf32>
    %19 = vector.multi_reduction <add>, %18, %cst_13 [1] : vector<128x128xf32> to vector<128xf32>
    %20 = vector.shape_cast %19 : vector<128xf32> to vector<128x1xf32>
    %21 = arith.addf %6, %20 : vector<128x1xf32>
    %c1 = arith.constant 1 : index
    %c0_14 = arith.constant 0 : index
    %c0_15 = arith.constant 0 : index
    %22 = vector.load %arg1[%c1, %c0_14, %c0_15] : memref<2x32x128xf32, #tpu.memory_space<vmem>>, vector<1x32x128xf32>
    %23 = vector.shape_cast %22 : vector<1x32x128xf32> to vector<32x128xf32>
    %cst_16 = arith.constant dense<0.000000e+00> : vector<128x128xf32>
    %24 = tpu.matmul %3, %23, %cst_16 {dimension_numbers = #tpu.dot_dimension_numbers<[1], [0], [0], [1], [0, 0, 1, 1], [], []>} : vector<128x32xf32>, vector<32x128xf32>, vector<128x128xf32> -> vector<128x128xf32>
    %25 = vector.broadcast %4 : vector<128x1xf32> to vector<128x128xf32>
    %26 = arith.addf %24, %25 : vector<128x128xf32>
    %c1_17 = arith.constant 1 : index
    %c0_18 = arith.constant 0 : index
    %c0_19 = arith.constant 0 : index
    %27 = vector.load %arg6[%c1_17, %c0_18, %c0_19] : memref<2x128x128xf32, #tpu.memory_space<vmem>>, vector<1x128x128xf32>
    %28 = vector.shape_cast %27 : vector<1x128x128xf32> to vector<128x128xf32>
    %29 = vector.shape_cast %26 : vector<128x128xf32> to vector<1x128x128xf32>
    tpu.vector_store %arg6[%c1_17, %c0_18, %c0_19], %29 {strides = array<i32>} : memref<2x128x128xf32, #tpu.memory_space<vmem>>, vector<1x128x128xf32>,
    %cst_20 = arith.constant dense<0.000000e+00> : vector<128xf32>
    %30 = vector.multi_reduction <add>, %24, %cst_20 [1] : vector<128x128xf32> to vector<128xf32>
    %31 = vector.shape_cast %30 : vector<128xf32> to vector<128x1xf32>
    %32 = arith.addf %17, %31 : vector<128x1xf32>
    %33 = arith.mulf %24, %24 : vector<128x128xf32>
    %cst_21 = arith.constant dense<0.000000e+00> : vector<128xf32>
    %34 = vector.multi_reduction <add>, %33, %cst_21 [1] : vector<128x128xf32> to vector<128xf32>
    %35 = vector.shape_cast %34 : vector<128xf32> to vector<128x1xf32>
    %36 = arith.addf %21, %35 : vector<128x1xf32>
    %c0_22 = arith.constant 0 : index
    %c0_23 = arith.constant 0 : index
    %37 = vector.load %arg8[%c0_22, %c0_23] : memref<128x1xf32, #tpu.memory_space<vmem>>, vector<128x1xf32>
    %38 = arith.addf %37, %32 : vector<128x1xf32>
    %c0_24 = arith.constant 0 : index
    %c0_25 = arith.constant 0 : index
    %39 = vector.load %arg8[%c0_24, %c0_25] : memref<128x1xf32, #tpu.memory_space<vmem>>, vector<128x1xf32>
    tpu.vector_store %arg8[%c0_24, %c0_25], %38 {strides = array<i32>} : memref<128x1xf32, #tpu.memory_space<vmem>>, vector<128x1xf32>,
    %c0_26 = arith.constant 0 : index
    %c0_27 = arith.constant 0 : index
    %40 = vector.load %arg9[%c0_26, %c0_27] : memref<128x1xf32, #tpu.memory_space<vmem>>, vector<128x1xf32>
    %41 = arith.addf %40, %36 : vector<128x1xf32>
    %c0_28 = arith.constant 0 : index
    %c0_29 = arith.constant 0 : index
    %42 = vector.load %arg9[%c0_28, %c0_29] : memref<128x1xf32, #tpu.memory_space<vmem>>, vector<128x1xf32>
    tpu.vector_store %arg9[%c0_28, %c0_29], %41 {strides = array<i32>} : memref<128x1xf32, #tpu.memory_space<vmem>>, vector<128x1xf32>,
    %c0_30 = arith.constant 0 : index
    %c0_31 = arith.constant 0 : index
    %43 = vector.load %arg5[%c0_30, %c0_31] : memref<128x8xf32, #tpu.memory_space<vmem>>, vector<128x8xf32>
    %cst_32 = arith.constant 0.000000e+00 : f32
    %44 = vector.broadcast %cst_32 : f32 to vector<128x1xf32>
    %cst_33 = arith.constant 0.000000e+00 : f32
    %45 = vector.broadcast %cst_33 : f32 to vector<128x1xf32>
    %c0_34 = arith.constant 0 : index
    %c0_35 = arith.constant 0 : index
    %c0_36 = arith.constant 0 : index
    %46 = vector.load %arg4[%c0_34, %c0_35, %c0_36] : memref<2x8x128xf32, #tpu.memory_space<vmem>>, vector<1x8x128xf32>
    %47 = vector.shape_cast %46 : vector<1x8x128xf32> to vector<8x128xf32>
    %cst_37 = arith.constant dense<0.000000e+00> : vector<128x128xf32>
    %48 = tpu.matmul %43, %47, %cst_37 {dimension_numbers = #tpu.dot_dimension_numbers<[1], [0], [0], [1], [0, 0, 1, 1], [], []>} : vector<128x8xf32>, vector<8x128xf32>, vector<128x128xf32> -> vector<128x128xf32>
    %c0_38 = arith.constant 0 : index
    %c0_39 = arith.constant 0 : index
    %c0_40 = arith.constant 0 : index
    %49 = vector.load %arg7[%c0_38, %c0_39, %c0_40] : memref<2x128x128xf32, #tpu.memory_space<vmem>>, vector<1x128x128xf32>
    %50 = vector.shape_cast %49 : vector<1x128x128xf32> to vector<128x128xf32>
    %51 = vector.shape_cast %48 : vector<128x128xf32> to vector<1x128x128xf32>
    tpu.vector_store %arg7[%c0_38, %c0_39, %c0_40], %51 {strides = array<i32>} : memref<2x128x128xf32, #tpu.memory_space<vmem>>, vector<1x128x128xf32>,
    %cst_41 = arith.constant dense<0.000000e+00> : vector<128xf32>
    %52 = vector.multi_reduction <add>, %48, %cst_41 [1] : vector<128x128xf32> to vector<128xf32>
    %53 = vector.shape_cast %52 : vector<128xf32> to vector<128x1xf32>
    %54 = arith.addf %44, %53 : vector<128x1xf32>
    %55 = arith.mulf %48, %48 : vector<128x128xf32>
    %cst_42 = arith.constant dense<0.000000e+00> : vector<128xf32>
    %56 = vector.multi_reduction <add>, %55, %cst_42 [1] : vector<128x128xf32> to vector<128xf32>
    %57 = vector.shape_cast %56 : vector<128xf32> to vector<128x1xf32>
    %58 = arith.addf %45, %57 : vector<128x1xf32>
    %c1_43 = arith.constant 1 : index
    %c0_44 = arith.constant 0 : index
    %c0_45 = arith.constant 0 : index
    %59 = vector.load %arg4[%c1_43, %c0_44, %c0_45] : memref<2x8x128xf32, #tpu.memory_space<vmem>>, vector<1x8x128xf32>
    %60 = vector.shape_cast %59 : vector<1x8x128xf32> to vector<8x128xf32>
    %cst_46 = arith.constant dense<0.000000e+00> : vector<128x128xf32>
    %61 = tpu.matmul %43, %60, %cst_46 {dimension_numbers = #tpu.dot_dimension_numbers<[1], [0], [0], [1], [0, 0, 1, 1], [], []>} : vector<128x8xf32>, vector<8x128xf32>, vector<128x128xf32> -> vector<128x128xf32>
    %c1_47 = arith.constant 1 : index
    %c0_48 = arith.constant 0 : index
    %c0_49 = arith.constant 0 : index
    %62 = vector.load %arg7[%c1_47, %c0_48, %c0_49] : memref<2x128x128xf32, #tpu.memory_space<vmem>>, vector<1x128x128xf32>
    %63 = vector.shape_cast %62 : vector<1x128x128xf32> to vector<128x128xf32>
    %64 = vector.shape_cast %61 : vector<128x128xf32> to vector<1x128x128xf32>
    tpu.vector_store %arg7[%c1_47, %c0_48, %c0_49], %64 {strides = array<i32>} : memref<2x128x128xf32, #tpu.memory_space<vmem>>, vector<1x128x128xf32>,
    %cst_50 = arith.constant dense<0.000000e+00> : vector<128xf32>
    %65 = vector.multi_reduction <add>, %61, %cst_50 [1] : vector<128x128xf32> to vector<128xf32>
    %66 = vector.shape_cast %65 : vector<128xf32> to vector<128x1xf32>
    %67 = arith.addf %54, %66 : vector<128x1xf32>
    %68 = arith.mulf %61, %61 : vector<128x128xf32>
    %cst_51 = arith.constant dense<0.000000e+00> : vector<128xf32>
    %69 = vector.multi_reduction <add>, %68, %cst_51 [1] : vector<128x128xf32> to vector<128xf32>
    %70 = vector.shape_cast %69 : vector<128xf32> to vector<128x1xf32>
    %71 = arith.addf %58, %70 : vector<128x1xf32>
    %c0_52 = arith.constant 0 : index
    %c0_53 = arith.constant 0 : index
    %72 = vector.load %arg10[%c0_52, %c0_53] : memref<128x1xf32, #tpu.memory_space<vmem>>, vector<128x1xf32>
    %73 = arith.addf %72, %67 : vector<128x1xf32>
    %c0_54 = arith.constant 0 : index
    %c0_55 = arith.constant 0 : index
    %74 = vector.load %arg10[%c0_54, %c0_55] : memref<128x1xf32, #tpu.memory_space<vmem>>, vector<128x1xf32>
    tpu.vector_store %arg10[%c0_54, %c0_55], %73 {strides = array<i32>} : memref<128x1xf32, #tpu.memory_space<vmem>>, vector<128x1xf32>,
    %c0_56 = arith.constant 0 : index
    %c0_57 = arith.constant 0 : index
    %75 = vector.load %arg11[%c0_56, %c0_57] : memref<128x1xf32, #tpu.memory_space<vmem>>, vector<128x1xf32>
    %76 = arith.addf %75, %71 : vector<128x1xf32>
    %c0_58 = arith.constant 0 : index
    %c0_59 = arith.constant 0 : index
    %77 = vector.load %arg11[%c0_58, %c0_59] : memref<128x1xf32, #tpu.memory_space<vmem>>, vector<128x1xf32>
    tpu.vector_store %arg11[%c0_58, %c0_59], %76 {strides = array<i32>} : memref<128x1xf32, #tpu.memory_space<vmem>>, vector<128x1xf32>,
    return
  }
  func.func @transform_0(%arg0: i32) -> (i32, i32, i32) {
    %c0_i32 = arith.constant 0 : i32
    %c0_i32_0 = arith.constant 0 : i32
    %c0_i32_1 = arith.constant 0 : i32
    return %c0_i32, %c0_i32_0, %arg0 : i32, i32, i32
  }
  func.func @transform_1(%arg0: i32) -> (i32, i32) {
    %c0_i32 = arith.constant 0 : i32
    %c0_i32_0 = arith.constant 0 : i32
    %c0_i32_1 = arith.constant 0 : i32
    return %c0_i32, %c0_i32_0 : i32, i32
  }
  func.func @transform_2(%arg0: i32) -> (i32, i32) {
    %c0_i32 = arith.constant 0 : i32
    %c0_i32_0 = arith.constant 0 : i32
    %c0_i32_1 = arith.constant 0 : i32
    return %c0_i32, %c0_i32_0 : i32, i32
  }
  func.func @transform_3(%arg0: i32) -> (i32, i32, i32) {
    %c0_i32 = arith.constant 0 : i32
    %c0_i32_0 = arith.constant 0 : i32
    %c0_i32_1 = arith.constant 0 : i32
    return %c0_i32, %c0_i32_0, %arg0 : i32, i32, i32
  }
  func.func @transform_4(%arg0: i32) -> (i32, i32) {
    %c0_i32 = arith.constant 0 : i32
    %c0_i32_0 = arith.constant 0 : i32
    %c0_i32_1 = arith.constant 0 : i32
    return %c0_i32, %c0_i32_0 : i32, i32
  }
  func.func @transform_5(%arg0: i32) -> (i32, i32, i32) {
    %c0_i32 = arith.constant 0 : i32
    %c0_i32_0 = arith.constant 0 : i32
    %c0_i32_1 = arith.constant 0 : i32
    return %c0_i32, %c0_i32_0, %arg0 : i32, i32, i32
  }
  func.func @transform_6(%arg0: i32) -> (i32, i32, i32) {
    %c0_i32 = arith.constant 0 : i32
    %c0_i32_0 = arith.constant 0 : i32
    %c0_i32_1 = arith.constant 0 : i32
    return %c0_i32, %c0_i32_0, %arg0 : i32, i32, i32
  }
  func.func @transform_7(%arg0: i32) -> (i32, i32) {
    %c0_i32 = arith.constant 0 : i32
    %c0_i32_0 = arith.constant 0 : i32
    %c0_i32_1 = arith.constant 0 : i32
    return %c0_i32, %c0_i32_0 : i32, i32
  }
  func.func @transform_8(%arg0: i32) -> (i32, i32) {
    %c0_i32 = arith.constant 0 : i32
    %c0_i32_0 = arith.constant 0 : i32
    %c0_i32_1 = arith.constant 0 : i32
    return %c0_i32, %c0_i32_0 : i32, i32
  }
  func.func @transform_9(%arg0: i32) -> (i32, i32) {
    %c0_i32 = arith.constant 0 : i32
    %c0_i32_0 = arith.constant 0 : i32
    %c0_i32_1 = arith.constant 0 : i32
    return %c0_i32, %c0_i32_0 : i32, i32
  }
  func.func @transform_10(%arg0: i32) -> (i32, i32) {
    %c0_i32 = arith.constant 0 : i32
    %c0_i32_0 = arith.constant 0 : i32
    %c0_i32_1 = arith.constant 0 : i32
    return %c0_i32, %c0_i32_0 : i32, i32
  }
}

module attributes {stable_mosaic.version = 11 : i64} {
  func.func @kernel(%arg0: i32, %arg1: memref<2x128x128xf32, #tpu.memory_space<vmem>>, %arg2: memref<2x128x128xf32, #tpu.memory_space<vmem>>, %arg3: memref<2x32x128xf32, #tpu.memory_space<vmem>>, %arg4: memref<128x1xf32, #tpu.memory_space<vmem>>, %arg5: memref<128x1xf32, #tpu.memory_space<vmem>>, %arg6: memref<128x1xf32, #tpu.memory_space<vmem>>, %arg7: memref<128x1xf32, #tpu.memory_space<vmem>>, %arg8: memref<2x32x128xf32, #tpu.memory_space<vmem>>, %arg9: memref<2x32x128xf32, #tpu.memory_space<vmem>>, %arg10: memref<32x1xf32, #tpu.memory_space<vmem>>, %arg11: memref<32x1xf32, #tpu.memory_space<vmem>>) attributes {dimension_semantics = [#tpu.dimension_semantics<arbitrary>], iteration_bounds = array<i64: 2>, scalar_prefetch = 0 : i64, scratch_operands = 0 : i64, tpu.core_type = #tpu.core_type<tc>, window_params = [{transform_indices = @transform_0, window_bounds = array<i64: 2, 128, 128>}, {transform_indices = @transform_1, window_bounds = array<i64: 2, 128, 128>}, {transform_indices = @transform_2, window_bounds = array<i64: 2, 32, 128>}, {pipeline_mode = #tpu.pipeline_mode<synchronous>, transform_indices = @transform_3, window_bounds = array<i64: 128, 1>}, {pipeline_mode = #tpu.pipeline_mode<synchronous>, transform_indices = @transform_4, window_bounds = array<i64: 128, 1>}, {pipeline_mode = #tpu.pipeline_mode<synchronous>, transform_indices = @transform_5, window_bounds = array<i64: 128, 1>}, {pipeline_mode = #tpu.pipeline_mode<synchronous>, transform_indices = @transform_6, window_bounds = array<i64: 128, 1>}, {transform_indices = @transform_7, window_bounds = array<i64: 2, 32, 128>}, {transform_indices = @transform_8, window_bounds = array<i64: 2, 32, 128>}, {pipeline_mode = #tpu.pipeline_mode<synchronous>, transform_indices = @transform_9, window_bounds = array<i64: 32, 1>}, {pipeline_mode = #tpu.pipeline_mode<synchronous>, transform_indices = @transform_10, window_bounds = array<i64: 32, 1>}]} {
    %c0_i32 = arith.constant 0 : i32
    %0 = arith.cmpi eq, %arg0, %c0_i32 : i32
    %1 = arith.extui %0 : i1 to i32
    %c0_i32_0 = arith.constant 0 : i32
    %2 = arith.cmpi ne, %1, %c0_i32_0 : i32
    scf.if %2 {
      %cst_82 = arith.constant 0.000000e+00 : f32
      %120 = vector.broadcast %cst_82 : f32 to vector<32x1xf32>
      %c0_83 = arith.constant 0 : index
      %c0_84 = arith.constant 0 : index
      %121 = vector.load %arg10[%c0_83, %c0_84] : memref<32x1xf32, #tpu.memory_space<vmem>>, vector<32x1xf32>
      tpu.vector_store %arg10[%c0_83, %c0_84], %120 {strides = array<i32>} : memref<32x1xf32, #tpu.memory_space<vmem>>, vector<32x1xf32>,
      %cst_85 = arith.constant 0.000000e+00 : f32
      %122 = vector.broadcast %cst_85 : f32 to vector<32x1xf32>
      %c0_86 = arith.constant 0 : index
      %c0_87 = arith.constant 0 : index
      %123 = vector.load %arg11[%c0_86, %c0_87] : memref<32x1xf32, #tpu.memory_space<vmem>>, vector<32x1xf32>
      tpu.vector_store %arg11[%c0_86, %c0_87], %122 {strides = array<i32>} : memref<32x1xf32, #tpu.memory_space<vmem>>, vector<32x1xf32>,
    } else {
    }
    %c0 = arith.constant 0 : index
    %c32 = arith.constant 32 : index
    %c0_1 = arith.constant 0 : index
    %3 = vector.load %arg1[%c0, %c32, %c0_1] : memref<2x128x128xf32, #tpu.memory_space<vmem>>, vector<2x32x128xf32>
    %c32_2 = arith.constant 32 : index
    %c0_3 = arith.constant 0 : index
    %4 = vector.load %arg4[%c32_2, %c0_3] : memref<128x1xf32, #tpu.memory_space<vmem>>, vector<32x1xf32>
    %5 = vector.shape_cast %4 : vector<32x1xf32> to vector<1x32x1xf32>
    %6 = vector.broadcast %5 : vector<1x32x1xf32> to vector<2x32x128xf32>
    %7 = arith.mulf %3, %6 : vector<2x32x128xf32>
    %c32_4 = arith.constant 32 : index
    %c0_5 = arith.constant 0 : index
    %8 = vector.load %arg5[%c32_4, %c0_5] : memref<128x1xf32, #tpu.memory_space<vmem>>, vector<32x1xf32>
    %9 = vector.shape_cast %8 : vector<32x1xf32> to vector<1x32x1xf32>
    %10 = vector.broadcast %9 : vector<1x32x1xf32> to vector<2x32x128xf32>
    %11 = arith.addf %7, %10 : vector<2x32x128xf32>
    %c0_6 = arith.constant 0 : index
    %c32_7 = arith.constant 32 : index
    %c0_8 = arith.constant 0 : index
    %12 = vector.load %arg2[%c0_6, %c32_7, %c0_8] : memref<2x128x128xf32, #tpu.memory_space<vmem>>, vector<2x32x128xf32>
    %c32_9 = arith.constant 32 : index
    %c0_10 = arith.constant 0 : index
    %13 = vector.load %arg6[%c32_9, %c0_10] : memref<128x1xf32, #tpu.memory_space<vmem>>, vector<32x1xf32>
    %14 = vector.shape_cast %13 : vector<32x1xf32> to vector<1x32x1xf32>
    %15 = vector.broadcast %14 : vector<1x32x1xf32> to vector<2x32x128xf32>
    %16 = arith.mulf %12, %15 : vector<2x32x128xf32>
    %17 = arith.addf %11, %16 : vector<2x32x128xf32>
    %c32_11 = arith.constant 32 : index
    %c0_12 = arith.constant 0 : index
    %18 = vector.load %arg7[%c32_11, %c0_12] : memref<128x1xf32, #tpu.memory_space<vmem>>, vector<32x1xf32>
    %19 = vector.shape_cast %18 : vector<32x1xf32> to vector<1x32x1xf32>
    %20 = vector.broadcast %19 : vector<1x32x1xf32> to vector<2x32x128xf32>
    %21 = arith.addf %17, %20 : vector<2x32x128xf32>
    %cst = arith.constant 5.000000e-01 : f32
    %22 = vector.broadcast %cst : f32 to vector<2x32x128xf32>
    %23 = arith.mulf %22, %21 : vector<2x32x128xf32>
    %24 = math.tanh %23 : vector<2x32x128xf32>
    %cst_13 = arith.constant 5.000000e-01 : f32
    %25 = vector.broadcast %cst_13 : f32 to vector<2x32x128xf32>
    %26 = arith.mulf %25, %24 : vector<2x32x128xf32>
    %cst_14 = arith.constant 5.000000e-01 : f32
    %27 = vector.broadcast %cst_14 : f32 to vector<2x32x128xf32>
    %28 = arith.addf %26, %27 : vector<2x32x128xf32>
    %c0_15 = arith.constant 0 : index
    %c0_16 = arith.constant 0 : index
    %c0_17 = arith.constant 0 : index
    %29 = vector.load %arg3[%c0_15, %c0_16, %c0_17] : memref<2x32x128xf32, #tpu.memory_space<vmem>>, vector<2x32x128xf32>
    %30 = arith.mulf %28, %29 : vector<2x32x128xf32>
    %c0_18 = arith.constant 0 : index
    %c0_19 = arith.constant 0 : index
    %c0_20 = arith.constant 0 : index
    %31 = vector.load %arg1[%c0_18, %c0_19, %c0_20] : memref<2x128x128xf32, #tpu.memory_space<vmem>>, vector<2x32x128xf32>
    %c0_21 = arith.constant 0 : index
    %c0_22 = arith.constant 0 : index
    %32 = vector.load %arg4[%c0_21, %c0_22] : memref<128x1xf32, #tpu.memory_space<vmem>>, vector<32x1xf32>
    %33 = vector.shape_cast %32 : vector<32x1xf32> to vector<1x32x1xf32>
    %34 = vector.broadcast %33 : vector<1x32x1xf32> to vector<2x32x128xf32>
    %35 = arith.mulf %31, %34 : vector<2x32x128xf32>
    %c0_23 = arith.constant 0 : index
    %c0_24 = arith.constant 0 : index
    %36 = vector.load %arg5[%c0_23, %c0_24] : memref<128x1xf32, #tpu.memory_space<vmem>>, vector<32x1xf32>
    %37 = vector.shape_cast %36 : vector<32x1xf32> to vector<1x32x1xf32>
    %38 = vector.broadcast %37 : vector<1x32x1xf32> to vector<2x32x128xf32>
    %39 = arith.addf %35, %38 : vector<2x32x128xf32>
    %c0_25 = arith.constant 0 : index
    %c0_26 = arith.constant 0 : index
    %c0_27 = arith.constant 0 : index
    %40 = vector.load %arg2[%c0_25, %c0_26, %c0_27] : memref<2x128x128xf32, #tpu.memory_space<vmem>>, vector<2x32x128xf32>
    %c0_28 = arith.constant 0 : index
    %c0_29 = arith.constant 0 : index
    %41 = vector.load %arg6[%c0_28, %c0_29] : memref<128x1xf32, #tpu.memory_space<vmem>>, vector<32x1xf32>
    %42 = vector.shape_cast %41 : vector<32x1xf32> to vector<1x32x1xf32>
    %43 = vector.broadcast %42 : vector<1x32x1xf32> to vector<2x32x128xf32>
    %44 = arith.mulf %40, %43 : vector<2x32x128xf32>
    %45 = arith.addf %39, %44 : vector<2x32x128xf32>
    %c0_30 = arith.constant 0 : index
    %c0_31 = arith.constant 0 : index
    %46 = vector.load %arg7[%c0_30, %c0_31] : memref<128x1xf32, #tpu.memory_space<vmem>>, vector<32x1xf32>
    %47 = vector.shape_cast %46 : vector<32x1xf32> to vector<1x32x1xf32>
    %48 = vector.broadcast %47 : vector<1x32x1xf32> to vector<2x32x128xf32>
    %49 = arith.addf %45, %48 : vector<2x32x128xf32>
    %cst_32 = arith.constant 5.000000e-01 : f32
    %50 = vector.broadcast %cst_32 : f32 to vector<2x32x128xf32>
    %51 = arith.mulf %50, %49 : vector<2x32x128xf32>
    %52 = math.tanh %51 : vector<2x32x128xf32>
    %cst_33 = arith.constant 5.000000e-01 : f32
    %53 = vector.broadcast %cst_33 : f32 to vector<2x32x128xf32>
    %54 = arith.mulf %53, %52 : vector<2x32x128xf32>
    %cst_34 = arith.constant 5.000000e-01 : f32
    %55 = vector.broadcast %cst_34 : f32 to vector<2x32x128xf32>
    %56 = arith.addf %54, %55 : vector<2x32x128xf32>
    %c0_35 = arith.constant 0 : index
    %c96 = arith.constant 96 : index
    %c0_36 = arith.constant 0 : index
    %57 = vector.load %arg1[%c0_35, %c96, %c0_36] : memref<2x128x128xf32, #tpu.memory_space<vmem>>, vector<2x32x128xf32>
    %c96_37 = arith.constant 96 : index
    %c0_38 = arith.constant 0 : index
    %58 = vector.load %arg4[%c96_37, %c0_38] : memref<128x1xf32, #tpu.memory_space<vmem>>, vector<32x1xf32>
    %59 = vector.shape_cast %58 : vector<32x1xf32> to vector<1x32x1xf32>
    %60 = vector.broadcast %59 : vector<1x32x1xf32> to vector<2x32x128xf32>
    %61 = arith.mulf %57, %60 : vector<2x32x128xf32>
    %c96_39 = arith.constant 96 : index
    %c0_40 = arith.constant 0 : index
    %62 = vector.load %arg5[%c96_39, %c0_40] : memref<128x1xf32, #tpu.memory_space<vmem>>, vector<32x1xf32>
    %63 = vector.shape_cast %62 : vector<32x1xf32> to vector<1x32x1xf32>
    %64 = vector.broadcast %63 : vector<1x32x1xf32> to vector<2x32x128xf32>
    %65 = arith.addf %61, %64 : vector<2x32x128xf32>
    %c0_41 = arith.constant 0 : index
    %c96_42 = arith.constant 96 : index
    %c0_43 = arith.constant 0 : index
    %66 = vector.load %arg2[%c0_41, %c96_42, %c0_43] : memref<2x128x128xf32, #tpu.memory_space<vmem>>, vector<2x32x128xf32>
    %c96_44 = arith.constant 96 : index
    %c0_45 = arith.constant 0 : index
    %67 = vector.load %arg6[%c96_44, %c0_45] : memref<128x1xf32, #tpu.memory_space<vmem>>, vector<32x1xf32>
    %68 = vector.shape_cast %67 : vector<32x1xf32> to vector<1x32x1xf32>
    %69 = vector.broadcast %68 : vector<1x32x1xf32> to vector<2x32x128xf32>
    %70 = arith.mulf %66, %69 : vector<2x32x128xf32>
    %71 = arith.addf %65, %70 : vector<2x32x128xf32>
    %c96_46 = arith.constant 96 : index
    %c0_47 = arith.constant 0 : index
    %72 = vector.load %arg7[%c96_46, %c0_47] : memref<128x1xf32, #tpu.memory_space<vmem>>, vector<32x1xf32>
    %73 = vector.shape_cast %72 : vector<32x1xf32> to vector<1x32x1xf32>
    %74 = vector.broadcast %73 : vector<1x32x1xf32> to vector<2x32x128xf32>
    %75 = arith.addf %71, %74 : vector<2x32x128xf32>
    %76 = math.tanh %75 : vector<2x32x128xf32>
    %77 = arith.mulf %56, %76 : vector<2x32x128xf32>
    %78 = arith.addf %30, %77 : vector<2x32x128xf32>
    %c0_48 = arith.constant 0 : index
    %c0_49 = arith.constant 0 : index
    %c0_50 = arith.constant 0 : index
    %79 = vector.load %arg8[%c0_48, %c0_49, %c0_50] : memref<2x32x128xf32, #tpu.memory_space<vmem>>, vector<2x32x128xf32>
    tpu.vector_store %arg8[%c0_48, %c0_49, %c0_50], %78 {strides = array<i32>} : memref<2x32x128xf32, #tpu.memory_space<vmem>>, vector<2x32x128xf32>,
    %c0_51 = arith.constant 0 : index
    %c0_52 = arith.constant 0 : index
    %80 = vector.load %arg10[%c0_51, %c0_52] : memref<32x1xf32, #tpu.memory_space<vmem>>, vector<32x1xf32>
    %cst_53 = arith.constant dense<0.000000e+00> : vector<2x32xf32>
    %81 = vector.multi_reduction <add>, %78, %cst_53 [2] : vector<2x32x128xf32> to vector<2x32xf32>
    %82 = vector.shape_cast %81 : vector<2x32xf32> to vector<2x32x1xf32>
    %cst_54 = arith.constant dense<0.000000e+00> : vector<32x1xf32>
    %83 = vector.multi_reduction <add>, %82, %cst_54 [0] : vector<2x32x1xf32> to vector<32x1xf32>
    %84 = arith.addf %80, %83 : vector<32x1xf32>
    %c0_55 = arith.constant 0 : index
    %c0_56 = arith.constant 0 : index
    %85 = vector.load %arg10[%c0_55, %c0_56] : memref<32x1xf32, #tpu.memory_space<vmem>>, vector<32x1xf32>
    tpu.vector_store %arg10[%c0_55, %c0_56], %84 {strides = array<i32>} : memref<32x1xf32, #tpu.memory_space<vmem>>, vector<32x1xf32>,
    %c0_57 = arith.constant 0 : index
    %c0_58 = arith.constant 0 : index
    %86 = vector.load %arg11[%c0_57, %c0_58] : memref<32x1xf32, #tpu.memory_space<vmem>>, vector<32x1xf32>
    %87 = arith.mulf %78, %78 : vector<2x32x128xf32>
    %cst_59 = arith.constant dense<0.000000e+00> : vector<2x32xf32>
    %88 = vector.multi_reduction <add>, %87, %cst_59 [2] : vector<2x32x128xf32> to vector<2x32xf32>
    %89 = vector.shape_cast %88 : vector<2x32xf32> to vector<2x32x1xf32>
    %cst_60 = arith.constant dense<0.000000e+00> : vector<32x1xf32>
    %90 = vector.multi_reduction <add>, %89, %cst_60 [0] : vector<2x32x1xf32> to vector<32x1xf32>
    %91 = arith.addf %86, %90 : vector<32x1xf32>
    %c0_61 = arith.constant 0 : index
    %c0_62 = arith.constant 0 : index
    %92 = vector.load %arg11[%c0_61, %c0_62] : memref<32x1xf32, #tpu.memory_space<vmem>>, vector<32x1xf32>
    tpu.vector_store %arg11[%c0_61, %c0_62], %91 {strides = array<i32>} : memref<32x1xf32, #tpu.memory_space<vmem>>, vector<32x1xf32>,
    %c0_63 = arith.constant 0 : index
    %c64 = arith.constant 64 : index
    %c0_64 = arith.constant 0 : index
    %93 = vector.load %arg1[%c0_63, %c64, %c0_64] : memref<2x128x128xf32, #tpu.memory_space<vmem>>, vector<2x32x128xf32>
    %c64_65 = arith.constant 64 : index
    %c0_66 = arith.constant 0 : index
    %94 = vector.load %arg4[%c64_65, %c0_66] : memref<128x1xf32, #tpu.memory_space<vmem>>, vector<32x1xf32>
    %95 = vector.shape_cast %94 : vector<32x1xf32> to vector<1x32x1xf32>
    %96 = vector.broadcast %95 : vector<1x32x1xf32> to vector<2x32x128xf32>
    %97 = arith.mulf %93, %96 : vector<2x32x128xf32>
    %c64_67 = arith.constant 64 : index
    %c0_68 = arith.constant 0 : index
    %98 = vector.load %arg5[%c64_67, %c0_68] : memref<128x1xf32, #tpu.memory_space<vmem>>, vector<32x1xf32>
    %99 = vector.shape_cast %98 : vector<32x1xf32> to vector<1x32x1xf32>
    %100 = vector.broadcast %99 : vector<1x32x1xf32> to vector<2x32x128xf32>
    %101 = arith.addf %97, %100 : vector<2x32x128xf32>
    %c0_69 = arith.constant 0 : index
    %c64_70 = arith.constant 64 : index
    %c0_71 = arith.constant 0 : index
    %102 = vector.load %arg2[%c0_69, %c64_70, %c0_71] : memref<2x128x128xf32, #tpu.memory_space<vmem>>, vector<2x32x128xf32>
    %c64_72 = arith.constant 64 : index
    %c0_73 = arith.constant 0 : index
    %103 = vector.load %arg6[%c64_72, %c0_73] : memref<128x1xf32, #tpu.memory_space<vmem>>, vector<32x1xf32>
    %104 = vector.shape_cast %103 : vector<32x1xf32> to vector<1x32x1xf32>
    %105 = vector.broadcast %104 : vector<1x32x1xf32> to vector<2x32x128xf32>
    %106 = arith.mulf %102, %105 : vector<2x32x128xf32>
    %107 = arith.addf %101, %106 : vector<2x32x128xf32>
    %c64_74 = arith.constant 64 : index
    %c0_75 = arith.constant 0 : index
    %108 = vector.load %arg7[%c64_74, %c0_75] : memref<128x1xf32, #tpu.memory_space<vmem>>, vector<32x1xf32>
    %109 = vector.shape_cast %108 : vector<32x1xf32> to vector<1x32x1xf32>
    %110 = vector.broadcast %109 : vector<1x32x1xf32> to vector<2x32x128xf32>
    %111 = arith.addf %107, %110 : vector<2x32x128xf32>
    %cst_76 = arith.constant 5.000000e-01 : f32
    %112 = vector.broadcast %cst_76 : f32 to vector<2x32x128xf32>
    %113 = arith.mulf %112, %111 : vector<2x32x128xf32>
    %114 = math.tanh %113 : vector<2x32x128xf32>
    %cst_77 = arith.constant 5.000000e-01 : f32
    %115 = vector.broadcast %cst_77 : f32 to vector<2x32x128xf32>
    %116 = arith.mulf %115, %114 : vector<2x32x128xf32>
    %cst_78 = arith.constant 5.000000e-01 : f32
    %117 = vector.broadcast %cst_78 : f32 to vector<2x32x128xf32>
    %118 = arith.addf %116, %117 : vector<2x32x128xf32>
    %c0_79 = arith.constant 0 : index
    %c0_80 = arith.constant 0 : index
    %c0_81 = arith.constant 0 : index
    %119 = vector.load %arg9[%c0_79, %c0_80, %c0_81] : memref<2x32x128xf32, #tpu.memory_space<vmem>>, vector<2x32x128xf32>
    tpu.vector_store %arg9[%c0_79, %c0_80, %c0_81], %118 {strides = array<i32>} : memref<2x32x128xf32, #tpu.memory_space<vmem>>, vector<2x32x128xf32>,
    return
  }
  func.func @transform_0(%arg0: i32) -> (i32, i32, i32) {
    %c0_i32 = arith.constant 0 : i32
    %c0_i32_0 = arith.constant 0 : i32
    %c0_i32_1 = arith.constant 0 : i32
    return %c0_i32, %c0_i32_0, %arg0 : i32, i32, i32
  }
  func.func @transform_1(%arg0: i32) -> (i32, i32, i32) {
    %c0_i32 = arith.constant 0 : i32
    %c0_i32_0 = arith.constant 0 : i32
    %c0_i32_1 = arith.constant 0 : i32
    return %c0_i32, %c0_i32_0, %arg0 : i32, i32, i32
  }
  func.func @transform_2(%arg0: i32) -> (i32, i32, i32) {
    %c0_i32 = arith.constant 0 : i32
    %c0_i32_0 = arith.constant 0 : i32
    %c0_i32_1 = arith.constant 0 : i32
    return %c0_i32, %c0_i32_0, %arg0 : i32, i32, i32
  }
  func.func @transform_3(%arg0: i32) -> (i32, i32) {
    %c0_i32 = arith.constant 0 : i32
    %c0_i32_0 = arith.constant 0 : i32
    %c0_i32_1 = arith.constant 0 : i32
    return %c0_i32, %c0_i32_0 : i32, i32
  }
  func.func @transform_4(%arg0: i32) -> (i32, i32) {
    %c0_i32 = arith.constant 0 : i32
    %c0_i32_0 = arith.constant 0 : i32
    %c0_i32_1 = arith.constant 0 : i32
    return %c0_i32, %c0_i32_0 : i32, i32
  }
  func.func @transform_5(%arg0: i32) -> (i32, i32) {
    %c0_i32 = arith.constant 0 : i32
    %c0_i32_0 = arith.constant 0 : i32
    %c0_i32_1 = arith.constant 0 : i32
    return %c0_i32, %c0_i32_0 : i32, i32
  }
  func.func @transform_6(%arg0: i32) -> (i32, i32) {
    %c0_i32 = arith.constant 0 : i32
    %c0_i32_0 = arith.constant 0 : i32
    %c0_i32_1 = arith.constant 0 : i32
    return %c0_i32, %c0_i32_0 : i32, i32
  }
  func.func @transform_7(%arg0: i32) -> (i32, i32, i32) {
    %c0_i32 = arith.constant 0 : i32
    %c0_i32_0 = arith.constant 0 : i32
    %c0_i32_1 = arith.constant 0 : i32
    return %c0_i32, %c0_i32_0, %arg0 : i32, i32, i32
  }
  func.func @transform_8(%arg0: i32) -> (i32, i32, i32) {
    %c0_i32 = arith.constant 0 : i32
    %c0_i32_0 = arith.constant 0 : i32
    %c0_i32_1 = arith.constant 0 : i32
    return %c0_i32, %c0_i32_0, %arg0 : i32, i32, i32
  }
  func.func @transform_9(%arg0: i32) -> (i32, i32) {
    %c0_i32 = arith.constant 0 : i32
    %c0_i32_0 = arith.constant 0 : i32
    %c0_i32_1 = arith.constant 0 : i32
    return %c0_i32, %c0_i32_0 : i32, i32
  }
  func.func @transform_10(%arg0: i32) -> (i32, i32) {
    %c0_i32 = arith.constant 0 : i32
    %c0_i32_0 = arith.constant 0 : i32
    %c0_i32_1 = arith.constant 0 : i32
    return %c0_i32, %c0_i32_0 : i32, i32
  }
}

module attributes {stable_mosaic.version = 11 : i64} {
  func.func @kernel(%arg0: i32, %arg1: memref<2x32x128xf32, #tpu.memory_space<vmem>>, %arg2: memref<2x32x128xf32, #tpu.memory_space<vmem>>, %arg3: memref<32x1xf32, #tpu.memory_space<vmem>>, %arg4: memref<32x1xf32, #tpu.memory_space<vmem>>, %arg5: memref<2x32x128xf32, #tpu.memory_space<vmem>>) attributes {dimension_semantics = [#tpu.dimension_semantics<parallel>], iteration_bounds = array<i64: 2>, scalar_prefetch = 0 : i64, scratch_operands = 0 : i64, tpu.core_type = #tpu.core_type<tc>, window_params = [{transform_indices = @transform_0, window_bounds = array<i64: 2, 32, 128>}, {transform_indices = @transform_1, window_bounds = array<i64: 2, 32, 128>}, {pipeline_mode = #tpu.pipeline_mode<synchronous>, transform_indices = @transform_2, window_bounds = array<i64: 32, 1>}, {pipeline_mode = #tpu.pipeline_mode<synchronous>, transform_indices = @transform_3, window_bounds = array<i64: 32, 1>}, {transform_indices = @transform_4, window_bounds = array<i64: 2, 32, 128>}]} {
    %c0 = arith.constant 0 : index
    %c0_0 = arith.constant 0 : index
    %c0_1 = arith.constant 0 : index
    %0 = vector.load %arg1[%c0, %c0_0, %c0_1] : memref<2x32x128xf32, #tpu.memory_space<vmem>>, vector<2x32x128xf32>
    %c0_2 = arith.constant 0 : index
    %c0_3 = arith.constant 0 : index
    %1 = vector.load %arg3[%c0_2, %c0_3] : memref<32x1xf32, #tpu.memory_space<vmem>>, vector<32x1xf32>
    %2 = vector.shape_cast %1 : vector<32x1xf32> to vector<1x32x1xf32>
    %3 = vector.broadcast %2 : vector<1x32x1xf32> to vector<2x32x128xf32>
    %4 = arith.mulf %0, %3 : vector<2x32x128xf32>
    %c0_4 = arith.constant 0 : index
    %c0_5 = arith.constant 0 : index
    %5 = vector.load %arg4[%c0_4, %c0_5] : memref<32x1xf32, #tpu.memory_space<vmem>>, vector<32x1xf32>
    %6 = vector.shape_cast %5 : vector<32x1xf32> to vector<1x32x1xf32>
    %7 = vector.broadcast %6 : vector<1x32x1xf32> to vector<2x32x128xf32>
    %8 = arith.addf %4, %7 : vector<2x32x128xf32>
    %c0_6 = arith.constant 0 : index
    %c0_7 = arith.constant 0 : index
    %c0_8 = arith.constant 0 : index
    %9 = vector.load %arg2[%c0_6, %c0_7, %c0_8] : memref<2x32x128xf32, #tpu.memory_space<vmem>>, vector<2x32x128xf32>
    %10 = math.tanh %8 : vector<2x32x128xf32>
    %11 = arith.mulf %9, %10 : vector<2x32x128xf32>
    %c0_9 = arith.constant 0 : index
    %c0_10 = arith.constant 0 : index
    %c0_11 = arith.constant 0 : index
    %12 = vector.load %arg5[%c0_9, %c0_10, %c0_11] : memref<2x32x128xf32, #tpu.memory_space<vmem>>, vector<2x32x128xf32>
    tpu.vector_store %arg5[%c0_9, %c0_10, %c0_11], %11 {strides = array<i32>} : memref<2x32x128xf32, #tpu.memory_space<vmem>>, vector<2x32x128xf32>,
    return
  }
  func.func @transform_0(%arg0: i32) -> (i32, i32, i32) {
    %c0_i32 = arith.constant 0 : i32
    %c0_i32_0 = arith.constant 0 : i32
    %c0_i32_1 = arith.constant 0 : i32
    return %c0_i32, %c0_i32_0, %arg0 : i32, i32, i32
  }
  func.func @transform_1(%arg0: i32) -> (i32, i32, i32) {
    %c0_i32 = arith.constant 0 : i32
    %c0_i32_0 = arith.constant 0 : i32
    %c0_i32_1 = arith.constant 0 : i32
    return %c0_i32, %c0_i32_0, %arg0 : i32, i32, i32
  }
  func.func @transform_2(%arg0: i32) -> (i32, i32) {
    %c0_i32 = arith.constant 0 : i32
    %c0_i32_0 = arith.constant 0 : i32
    %c0_i32_1 = arith.constant 0 : i32
    return %c0_i32, %c0_i32_0 : i32, i32
  }
  func.func @transform_3(%arg0: i32) -> (i32, i32) {
    %c0_i32 = arith.constant 0 : i32
    %c0_i32_0 = arith.constant 0 : i32
    %c0_i32_1 = arith.constant 0 : i32
    return %c0_i32, %c0_i32_0 : i32, i32
  }
  func.func @transform_4(%arg0: i32) -> (i32, i32, i32) {
    %c0_i32 = arith.constant 0 : i32
    %c0_i32_0 = arith.constant 0 : i32
    %c0_i32_1 = arith.constant 0 : i32
    return %c0_i32, %c0_i32_0, %arg0 : i32, i32, i32
  }
}

</mosaic_0001>

<bundles_post_ra>
// kernel: lstm_cell_2d_bn_forward.5
= control target key start
LH: loop header
LB: loop body
LE: loop exit
PB: predicated region body
PF: predicated region fallthrough
CT: control target
= control target key end

     0   :  { %s692_s15 = smov 0   ;;  %s694_s16 = smov 0   ;;  %s812_s0 = inlined_call_operand.vmem [shape: f32[2,32,256], index: 0, kind: input, shape index: {}]   ;;  %s813_s1 = inlined_call_operand.vmem [shape: f32[2,32,256], index: 1, kind: input, shape index: {}]   ;;  %s814_s2 = inlined_call_operand.vmem [shape: f32[32,1], index: 2, kind: input, shape index: {}]   ;;  %s815_s3 = inlined_call_operand.vmem [shape: f32[32,1], index: 3, kind: input, shape index: {}]   ;;  %s816_s4 = inlined_call_operand.vmem [shape: f32[2,32,256], index: 4, kind: output, shape index: {}]  }
   0x1   :  { %s696_s17 = smov 0  }
   0x2 LB: > { %s583_s18 = sadd.s32 4294967295, %s664_s17   ;;  %s709_s19 = sadd.s32 1, %s664_s17   ;;  %s664_s17 = sphi %s696_s17, %s821_s17   ;;  %s660_s16 = sphi %s694_s16, %s820_s16   ;;  %s656_s15 = sphi %s692_s15, %s819_s15  }
   0x3   : > { %s18_s20 = ssub.s32 %s664_s17, %s709_s19  ;;  %s21_s21 = sadd.s32 1, %s660_s16 }
   0x4   : > { %p19_p0 = scmp.eq.s32.totalorder %s18_s20, 0  ;;  %p28_p1 = scmp.ne.s32.totalorder %s660_s16, %s656_s15 }
   0x5   : > { %p29_p2 = scmp.eq.s32.totalorder %s664_s17, 0  ;;  %p126_p3 = scmp.eq.s32.totalorder %s583_s18, 1 }
   0x6   : > { %s720_s22 = scalar_select %p19_p0, %s660_s16, %s21_s21  }
   0x7   : > { %p722_p4 = por %p29_p2, %p28_p1  ;;  %p726_p5 = por %p126_p3, %p28_p1 }
   0x8   : > { %p586_p6 = scmp.ge.s32.totalorder %s664_s17, 2 }
   0xa   : > { %154 = sbr.rel (%p586_p6) target bundleno = 33 (0x21), region = 24 }
  0x11   : > { %157 = sbr.rel (!%p722_p4) target bundleno = 25 (0x19), region = 28  ;;  %s159_s25 = sand.u32 (%p722_p4), 1, %s660_s16  }
  0x12   : > { %s588_s26 = sshll.u32 (%p722_p4), %s664_s17, 3  ;;  %s587_s27 = sshll.u32 (%p722_p4), %s159_s25, 6 }
  0x13   : > { %s163_s30 = scalar_lea.vmem (%p722_p4), %s812_s0, %s588_s26  ;;  %s161_s5 = scalar_lea.vmem (%p722_p4), [#allocation2], %s587_s27 }
  0x14   : > { %v205_v0 = vld [vmem:[%s163_s30] sm:$0xff] (%p722_p4)  ;;  %v207_v1 = vld [vmem:[%s163_s30 + $0x10] sm:$0xff] (%p722_p4) }
  0x15   : > { %v209_v2 = vld [vmem:[%s163_s30 + $0x20] sm:$0xff] (%p722_p4)  ;;  %206 = vst [vmem:[%s161_s5] sm:$0xff] (%p722_p4), %v205_v0  ;;  %208 = vst [vmem:[%s161_s5 + $0x8] sm:$0xff] (%p722_p4), %v207_v1  ;;  %v211_v3 = vld [vmem:[%s163_s30 + $0x30] sm:$0xff] (%p722_p4) }
  0x16   : > { %210 = vst [vmem:[%s161_s5 + $0x10] sm:$0xff] (%p722_p4), %v209_v2  ;;  %v213_v4 = vld [vmem:[%s163_s30 + $0x40] sm:$0xff] (%p722_p4)  ;;  %v215_v5 = vld [vmem:[%s163_s30 + $0x50] sm:$0xff] (%p722_p4)  ;;  %212 = vst [vmem:[%s161_s5 + $0x18] sm:$0xff] (%p722_p4), %v211_v3 }
  0x17   : > { %214 = vst [vmem:[%s161_s5 + $0x20] sm:$0xff] (%p722_p4), %v213_v4  ;;  %216 = vst [vmem:[%s161_s5 + $0x28] sm:$0xff] (%p722_p4), %v215_v5  ;;  %v217_v6 = vld [vmem:[%s163_s30 + $0x60] sm:$0xff] (%p722_p4)  ;;  %v219_v7 = vld [vmem:[%s163_s30 + $0x70] sm:$0xff] (%p722_p4) }
  0x18   : > { %218 = vst [vmem:[%s161_s5 + $0x30] sm:$0xff] %v217_v6  ;;  %220 = vst [vmem:[%s161_s5 + $0x38] sm:$0xff] %v219_v7 }
  0x19 PF: > { %226 = sbr.rel (!%p722_p4) target bundleno = 33 (0x21), region = 66  ;;  %s228_s6 = sand.u32 (%p722_p4), 1, %s660_s16  }
  0x1a   : > { %s590_s7 = sshll.u32 (%p722_p4), %s664_s17, 3  ;;  %s589_s8 = sshll.u32 (%p722_p4), %s228_s6, 6 }
  0x1b   : > { %s232_s11 = scalar_lea.vmem (%p722_p4), %s813_s1, %s590_s7  ;;  %s230_s12 = scalar_lea.vmem (%p722_p4), [#allocation3], %s589_s8 }
  0x1c   : > { %v274_v8 = vld [vmem:[%s232_s11] sm:$0xff] (%p722_p4)  ;;  %v276_v9 = vld [vmem:[%s232_s11 + $0x10] sm:$0xff] (%p722_p4) }
  0x1d   : > { %v278_v10 = vld [vmem:[%s232_s11 + $0x20] sm:$0xff] (%p722_p4)  ;;  %275 = vst [vmem:[%s230_s12] sm:$0xff] (%p722_p4), %v274_v8  ;;  %277 = vst [vmem:[%s230_s12 + $0x8] sm:$0xff] (%p722_p4), %v276_v9  ;;  %v280_v11 = vld [vmem:[%s232_s11 + $0x30] sm:$0xff] (%p722_p4) }
  0x1e   : > { %279 = vst [vmem:[%s230_s12 + $0x10] sm:$0xff] (%p722_p4), %v278_v10  ;;  %v282_v12 = vld [vmem:[%s232_s11 + $0x40] sm:$0xff] (%p722_p4)  ;;  %v284_v13 = vld [vmem:[%s232_s11 + $0x50] sm:$0xff] (%p722_p4)  ;;  %281 = vst [vmem:[%s230_s12 + $0x18] sm:$0xff] (%p722_p4), %v280_v11 }
  0x1f   : > { %283 = vst [vmem:[%s230_s12 + $0x20] sm:$0xff] (%p722_p4), %v282_v12  ;;  %285 = vst [vmem:[%s230_s12 + $0x28] sm:$0xff] (%p722_p4), %v284_v13  ;;  %v286_v14 = vld [vmem:[%s232_s11 + $0x60] sm:$0xff] (%p722_p4)  ;;  %v288_v15 = vld [vmem:[%s232_s11 + $0x70] sm:$0xff] (%p722_p4) }
  0x20   : > { %287 = vst [vmem:[%s230_s12 + $0x30] sm:$0xff] %v286_v14  ;;  %289 = vst [vmem:[%s230_s12 + $0x38] sm:$0xff] %v288_v15 }
  0x21 PF: > { %p591_p7 = scmp.ge.s32.totalorder %s664_s17, 1  ;;  %p294_p8 = scmp.lt.s32.totalorder %s664_s17, 3 }
  0x23   : > { %p295_p9 = pnand %p591_p7, %p294_p8 }
  0x24   : > { %v346_v16 = vld [vmem:[%s814_s2 + $0x10] sm:$0xff] (!%p295_p9)  ;;  %v344_v17 = vld [vmem:[%s814_s2] sm:$0xff] (!%p295_p9)  ;;  %v666_v18 = vmov (!%p295_p9), 0   ;;  %v347_v19 = vld [vmem:[%s814_s2 + $0x18] sm:$0xff] (!%p295_p9)  ;;  %s301_s10 = sand.u32 (!%p295_p9), 1, %s656_s15  }
  0x25   : > { %298 = sbr.rel (%p295_p9) target bundleno = 205 (0xcd), region = 104  ;;  %625 = vset.pattern.permute.xlu1 (!%p295_p9), %v666_v18  ;;  %624 = vset.pattern.permute.xlu0 (!%p295_p9), %v666_v18  ;;  %v345_v20 = vld [vmem:[%s814_s2 + $0x8] sm:$0xff] (!%p295_p9)  ;;  %v376_v22 = vld [vmem:[%s815_s3] sm:$0xff] (!%p295_p9)  ;;  %v379_v23 = vld [vmem:[%s815_s3 + $0x18] sm:$0xff] (!%p295_p9)  ;;  %s772_s11 = sshll.u32 (!%p295_p9), %s301_s10, 6 }
  0x26   : > { %360 = vperm.xlu1 (!%p295_p9), %625, %v346_v16   ;;  %350 = vperm.xlu0 (!%p295_p9), %624, %v344_v17   ;;  %v377_v21 = vld [vmem:[%s815_s3 + $0x8] sm:$0xff] (!%p295_p9)  ;;  %v378_v24 = vld [vmem:[%s815_s3 + $0x10] sm:$0xff] (!%p295_p9)  ;;  %s303_s12 = scalar_lea.vmem (!%p295_p9), [#allocation2], %s772_s11  ;;  %s310_s15 = scalar_lea.vmem (!%p295_p9), [#allocation3], %s772_s11 }
  0x27   : > { %v336_v27 = vld [vmem:[%s303_s12] sm:$0xff] (!%p295_p9)  ;;  %v337_v30 = vld [vmem:[%s303_s12 + $0x8] sm:$0xff] (!%p295_p9)  ;;  %v338_v36 = vld [vmem:[%s303_s12 + $0x10] sm:$0xff] (!%p295_p9)  ;;  %s777_s13 = scalar_lea.vmem (!%p295_p9), [#allocation4], %s772_s11 }
  0x28   : > { %v341_v31 = vld [vmem:[%s303_s12 + $0x28] sm:$0xff] (!%p295_p9)  ;;  %v340_v32 = vld [vmem:[%s303_s12 + $0x20] sm:$0xff] (!%p295_p9)  ;;  %v339_v38 = vld [vmem:[%s303_s12 + $0x18] sm:$0xff] (!%p295_p9) }
  0x29   : > { %v343_v39 = vld [vmem:[%s303_s12 + $0x38] sm:$0xff] (!%p295_p9)  ;;  %v342_v42 = vld [vmem:[%s303_s12 + $0x30] sm:$0xff] (!%p295_p9)  ;;  %v409_v57 = vld [vmem:[%s310_s15 + $0x8] sm:$0xff] (!%p295_p9) }
  0x2a   : > { %365 = vperm.xlu1 (!%p295_p9), %625, %v347_v19   ;;  %355 = vperm.xlu0 (!%p295_p9), %624, %v345_v20   ;;  %v413_v58 = vld [vmem:[%s310_s15 + $0x28] sm:$0xff] (!%p295_p9)  ;;  %v408_v60 = vld [vmem:[%s310_s15] sm:$0xff] (!%p295_p9)  ;;  %v411_v2 = vld [vmem:[%s310_s15 + $0x18] sm:$0xff] (!%p295_p9) }
  0x2b   : > { %v412_v63 = vld [vmem:[%s310_s15 + $0x20] sm:$0xff] (!%p295_p9)  ;;  %v415_v5 = vld [vmem:[%s310_s15 + $0x38] sm:$0xff] (!%p295_p9)  ;;  %v410_v8 = vld [vmem:[%s310_s15 + $0x10] sm:$0xff] (!%p295_p9) }
  0x2c   : > { %v414_v11 = vld [vmem:[%s310_s15 + $0x30] sm:$0xff]  ;;  %s596_s14 = sshll.u32 (%p726_p5), %s583_s18, 3 }
  0x2d   : > { %s448_s23 = scalar_lea.vmem (%p726_p5), %s816_s4, %s596_s14 }
  0x2e   : > { %387 = vperm.xlu1 %625, %v377_v21   ;;  %382 = vperm.xlu0 %624, %v376_v22  }
  0x32   : > { %397 = vperm.xlu1 %625, %v379_v23   ;;  %392 = vperm.xlu0 %624, %v378_v24  }
  0xa5   : > { %v361_v25 = vpop.permute.xlu1 %360  ;;  %v351_v26 = vpop.permute.xlu0 %350 }
  0xa6   : > { %v368_v33 = vmul.f32 %v351_v26, %v336_v27  ;;  %v372_v37 = vmul.f32 %v351_v26, %v340_v32  ;;  %v370_v47 = vmul.f32 %v361_v25, %v338_v36  ;;  %v374_v50 = vmul.f32 %v361_v25, %v342_v42 }
  0xa9   : > { %v366_v28 = vpop.permute.xlu1 %365  ;;  %v356_v29 = vpop.permute.xlu0 %355 }
  0xaa   : > { %v369_v34 = vmul.f32 %v356_v29, %v337_v30  ;;  %v373_v35 = vmul.f32 %v356_v29, %v341_v31  ;;  %v371_v48 = vmul.f32 %v366_v28, %v339_v38  ;;  %v375_v49 = vmul.f32 %v366_v28, %v343_v39 }
  0xad   : > { %v388_v40 = vpop.permute.xlu1 %387  ;;  %v383_v41 = vpop.permute.xlu0 %382 }
  0xae   : > { %v401_v43 = vadd.f32 %v388_v40, %v369_v34  ;;  %v405_v44 = vadd.f32 %v388_v40, %v373_v35  ;;  %v400_v45 = vadd.f32 %v383_v41, %v368_v33  ;;  %v404_v46 = vadd.f32 %v383_v41, %v372_v37 }
  0xb0   : > { %626 = vtanh.f32 %v401_v43 }
  0xb1   : > { %628 = vtanh.f32 %v405_v44  ;;  %v398_v51 = vpop.permute.xlu1 %397  ;;  %v393_v52 = vpop.permute.xlu0 %392 }
  0xb2   : > { %630 = vtanh.f32 %v400_v45  ;;  %v403_v53 = vadd.f32 %v398_v51, %v371_v48  ;;  %v407_v54 = vadd.f32 %v398_v51, %v375_v49  ;;  %v402_v55 = vadd.f32 %v393_v52, %v370_v47 }
  0xb3   : > { %632 = vtanh.f32 %v404_v46  ;;  %v406_v56 = vadd.f32 %v393_v52, %v374_v50 }
  0xb4   : > { %634 = vtanh.f32 %v403_v53 }
  0xb5   : > { %636 = vtanh.f32 %v407_v54 }
  0xb6   : > { %638 = vtanh.f32 %v402_v55 }
  0xb7   : > { %640 = vtanh.f32 %v406_v56 }
  0xba   : > { %v627_v59 = vpop.eup %626 }
  0xbb   : > { %v629_v61 = vpop.eup %628  ;;  %v425_v62 = vmul.f32 %v627_v59, %v409_v57 }
  0xbc   : > { %v631_v0 = vpop.eup %630  ;;  %v429_v1 = vmul.f32 %v629_v61, %v413_v58 }
  0xbd   : > { %v633_v3 = vpop.eup %632  ;;  %433 = vst [vmem:[%s777_s13 + $0x8] sm:$0xff] %v425_v62  ;;  %v424_v4 = vmul.f32 %v631_v0, %v408_v60 }
  0xbe   : > { %v635_v6 = vpop.eup %634  ;;  %437 = vst [vmem:[%s777_s13 + $0x28] sm:$0xff] %v429_v1  ;;  %v428_v7 = vmul.f32 %v633_v3, %v412_v63  ;;  %446 = sbr.rel (!%p726_p5) target bundleno = 205 (0xcd), region = 116 }
  0xbf   : > { %v637_v9 = vpop.eup %636  ;;  %432 = vst [vmem:[%s777_s13] sm:$0xff] %v424_v4  ;;  %v427_v10 = vmul.f32 %v635_v6, %v411_v2 }
  0xc0   : > { %v639_v12 = vpop.eup %638  ;;  %436 = vst [vmem:[%s777_s13 + $0x20] sm:$0xff] %v428_v7  ;;  %v431_v13 = vmul.f32 %v637_v9, %v415_v5 }
  0xc1   : > { %v641_v14 = vpop.eup %640  ;;  %435 = vst [vmem:[%s777_s13 + $0x18] sm:$0xff] %v427_v10  ;;  %v426_v15 = vmul.f32 %v639_v12, %v410_v8 }
  0xc2   : > { %439 = vst [vmem:[%s777_s13 + $0x38] sm:$0xff] %v431_v13  ;;  %v430_v16 = vmul.f32 %v641_v14, %v414_v11 }
  0xc3   : > { %434 = vst [vmem:[%s777_s13 + $0x10] sm:$0xff] %v426_v15 }
  0xc4   : > { %438 = vst [vmem:[%s777_s13 + $0x30] sm:$0xff] %v430_v16  ;;  %v492_v18 = vld [vmem:[%s777_s13 + $0x8] sm:$0xff] (%p726_p5) }
  0xc5   : > { %v500_v22 = vld [vmem:[%s777_s13 + $0x28] sm:$0xff]  ;;  %493 = vst [vmem:[%s448_s23 + $0x10] sm:$0xff] %v492_v18 }
  0xc6   : > { %v490_v17 = vld [vmem:[%s777_s13] sm:$0xff]  ;;  %501 = vst [vmem:[%s448_s23 + $0x50] sm:$0xff] %v500_v22 }
  0xc7   : > { %v498_v21 = vld [vmem:[%s777_s13 + $0x20] sm:$0xff]  ;;  %491 = vst [vmem:[%s448_s23] sm:$0xff] %v490_v17 }
  0xc8   : > { %v496_v20 = vld [vmem:[%s777_s13 + $0x18] sm:$0xff]  ;;  %499 = vst [vmem:[%s448_s23 + $0x40] sm:$0xff] %v498_v21 }
  0xc9   : > { %497 = vst [vmem:[%s448_s23 + $0x30] sm:$0xff] %v496_v20  ;;  %v504_v24 = vld [vmem:[%s777_s13 + $0x38] sm:$0xff] }
  0xca   : > { %v494_v19 = vld [vmem:[%s777_s13 + $0x10] sm:$0xff]  ;;  %505 = vst [vmem:[%s448_s23 + $0x70] sm:$0xff] %v504_v24 }
  0xcb   : > { %495 = vst [vmem:[%s448_s23 + $0x20] sm:$0xff] %v494_v19  ;;  %v502_v23 = vld [vmem:[%s777_s13 + $0x30] sm:$0xff] }
  0xcc   : > { %503 = vst [vmem:[%s448_s23 + $0x60] sm:$0xff] %v502_v23 }
  0xcd PF: > { %p11_p10 = scmp.ge.s32.totalorder %s709_s19, 4   ;;  %s819_s15 = smov %s660_s16 }
  0xce   : > { %s820_s16 = smov %s720_s22  ;;  %s821_s17 = smov %s709_s19 }
  0xcf   :  { %13 = sbr.rel (!%p11_p10) target bundleno = 2 (0x2), region = 193 }

// kernel: lstm_cell_2d_bn_forward.4
= control target key start
LH: loop header
LB: loop body
LE: loop exit
PB: predicated region body
PF: predicated region fallthrough
CT: control target
= control target key end

     0   :  { %s2838_s0 = inlined_call_operand.vmem [shape: f32[2,128,256], index: 0, kind: input, shape index: {}]   ;;  %s2839_s1 = inlined_call_operand.vmem [shape: f32[2,128,256], index: 1, kind: input, shape index: {}]   ;;  %s2840_s2 = inlined_call_operand.vmem [shape: f32[2,32,256], index: 2, kind: input, shape index: {}]   ;;  %s2841_s3 = inlined_call_operand.vmem [shape: f32[128,1], index: 3, kind: input, shape index: {}]   ;;  %s2842_s4 = inlined_call_operand.vmem [shape: f32[128,1], index: 4, kind: input, shape index: {}]   ;;  %s2843_s5 = inlined_call_operand.vmem [shape: f32[128,1], index: 5, kind: input, shape index: {}]   ;;  %s2844_s6 = inlined_call_operand.vmem [shape: f32[128,1], index: 6, kind: input, shape index: {}]   ;;  %s2845_s7 = inlined_call_operand.vmem [shape: f32[2,32,256], index: 7, kind: output, shape index: {0}]   ;;  %s2846_s8 = inlined_call_operand.vmem [shape: f32[2,32,256], index: 8, kind: output, shape index: {1}]   ;;  %s2847_s9 = inlined_call_operand.vmem [shape: f32[32,1], index: 9, kind: output, shape index: {2}]   ;;  %s2848_s10 = inlined_call_operand.vmem [shape: f32[32,1], index: 10, kind: output, shape index: {3}]  }
   0x1   :  { %2849 = sst [smem:[#allocation7_spill]] %s2838_s0 }
   0x2   :  { %2850 = sst [smem:[#allocation8_spill]] %s2839_s1 }
   0x3   :  { %s2085_s13 = smov 0   ;;  %s2087_s14 = smov 0  }
   0x4   :  { %s2089_s15 = smov 0  }
   0x5 LB: > { %s2101_s16 = sadd.s32 4294967295, %s2026_s15   ;;  %s2104_s17 = sadd.s32 1, %s2026_s15   ;;  %s2026_s15 = sphi %s2089_s15, %s2857_s15   ;;  %s2022_s14 = sphi %s2087_s14, %s2856_s14   ;;  %s2018_s13 = sphi %s2085_s13, %s2855_s13  }
   0x6   : > { %s25_s18 = ssub.s32 %s2026_s15, %s2104_s17  ;;  %s28_s19 = sadd.s32 1, %s2022_s14 }
   0x7   : > { %p26_p0 = scmp.eq.s32.totalorder %s25_s18, 0  ;;  %p35_p1 = scmp.ne.s32.totalorder %s2022_s14, %s2018_s13 }
   0x8   : > { %p36_p2 = scmp.eq.s32.totalorder %s2026_s15, 0  ;;  %p201_p3 = scmp.eq.s32.totalorder %s2101_s16, 1 }
   0x9   : > { %s2114_s20 = scalar_select %p26_p0, %s2022_s14, %s28_s19  }
   0xa   : > { %p2116_p4 = por %p36_p2, %p35_p1  ;;  %p2120_p5 = por %p201_p3, %p35_p1 }
   0xb   : > { %p1892_p6 = scmp.ge.s32.totalorder %s2026_s15, 2 }
   0xd   : > { %303 = sbr.rel (%p1892_p6) target bundleno = 80 (0x50), region = 32 }
  0x14   : > { %306 = sbr.rel (!%p2116_p4) target bundleno = 46 (0x2e), region = 36  ;;  %s308_s23 = sand.u32 (%p2116_p4), 1, %s2022_s14  }
  0x15   : > { %s1894_s24 = sshll.u32 (%p2116_p4), %s2026_s15, 3  ;;  %s1893_s25 = sshll.u32 (%p2116_p4), %s308_s23, 8 }
  0x16   : > { %s2853_s0 = sld [smem:[#allocation7_spill]] (%p2116_p4)  ;;  %s2137_s29 = scalar_lea.vmem (%p2116_p4), [#allocation2], %s1893_s25 }
  0x1c   : > { %s2132_s28 = scalar_lea.vmem %s2853_s0, %s1894_s24 }
  0x1d   : > { %v402_v0 = vld [vmem:[%s2132_s28] sm:$0xff]  ;;  %v404_v1 = vld [vmem:[%s2132_s28 + $0x10] sm:$0xff] }
  0x1e   : > { %v406_v2 = vld [vmem:[%s2132_s28 + $0x20] sm:$0xff]  ;;  %403 = vst [vmem:[%s2137_s29] sm:$0xff] %v402_v0  ;;  %405 = vst [vmem:[%s2137_s29 + $0x8] sm:$0xff] %v404_v1  ;;  %v408_v3 = vld [vmem:[%s2132_s28 + $0x30] sm:$0xff] }
  0x1f   : > { %407 = vst [vmem:[%s2137_s29 + $0x10] sm:$0xff] %v406_v2  ;;  %v410_v4 = vld [vmem:[%s2132_s28 + $0x40] sm:$0xff]  ;;  %v412_v5 = vld [vmem:[%s2132_s28 + $0x50] sm:$0xff]  ;;  %409 = vst [vmem:[%s2137_s29 + $0x18] sm:$0xff] %v408_v3 }
  0x20   : > { %411 = vst [vmem:[%s2137_s29 + $0x20] sm:$0xff] %v410_v4  ;;  %413 = vst [vmem:[%s2137_s29 + $0x28] sm:$0xff] %v412_v5  ;;  %v414_v6 = vld [vmem:[%s2132_s28 + $0x60] sm:$0xff]  ;;  %v416_v7 = vld [vmem:[%s2132_s28 + $0x70] sm:$0xff] }
  0x21   : > { %v418_v8 = vld [vmem:[%s2132_s28 + $0x80] sm:$0xff]  ;;  %415 = vst [vmem:[%s2137_s29 + $0x30] sm:$0xff] %v414_v6  ;;  %417 = vst [vmem:[%s2137_s29 + $0x38] sm:$0xff] %v416_v7  ;;  %v420_v9 = vld [vmem:[%s2132_s28 + $0x90] sm:$0xff] }
  0x22   : > { %419 = vst [vmem:[%s2137_s29 + $0x40] sm:$0xff] %v418_v8  ;;  %v422_v10 = vld [vmem:[%s2132_s28 + $0xa0] sm:$0xff]  ;;  %v424_v11 = vld [vmem:[%s2132_s28 + $0xb0] sm:$0xff]  ;;  %421 = vst [vmem:[%s2137_s29 + $0x48] sm:$0xff] %v420_v9 }
  0x23   : > { %423 = vst [vmem:[%s2137_s29 + $0x50] sm:$0xff] %v422_v10  ;;  %425 = vst [vmem:[%s2137_s29 + $0x58] sm:$0xff] %v424_v11  ;;  %v426_v12 = vld [vmem:[%s2132_s28 + $0xc0] sm:$0xff]  ;;  %v428_v13 = vld [vmem:[%s2132_s28 + $0xd0] sm:$0xff] }
  0x24   : > { %v430_v14 = vld [vmem:[%s2132_s28 + $0xe0] sm:$0xff]  ;;  %427 = vst [vmem:[%s2137_s29 + $0x60] sm:$0xff] %v426_v12  ;;  %429 = vst [vmem:[%s2137_s29 + $0x68] sm:$0xff] %v428_v13  ;;  %v432_v15 = vld [vmem:[%s2132_s28 + $0xf0] sm:$0xff] }
  0x25   : > { %431 = vst [vmem:[%s2137_s29 + $0x70] sm:$0xff] %v430_v14  ;;  %v434_v16 = vld [vmem:[%s2132_s28 + $0x100] sm:$0xff]  ;;  %v436_v17 = vld [vmem:[%s2132_s28 + $0x110] sm:$0xff]  ;;  %433 = vst [vmem:[%s2137_s29 + $0x78] sm:$0xff] %v432_v15 }
  0x26   : > { %435 = vst [vmem:[%s2137_s29 + $0x80] sm:$0xff] %v434_v16  ;;  %437 = vst [vmem:[%s2137_s29 + $0x88] sm:$0xff] %v436_v17  ;;  %v438_v18 = vld [vmem:[%s2132_s28 + $0x120] sm:$0xff]  ;;  %v440_v19 = vld [vmem:[%s2132_s28 + $0x130] sm:$0xff] }
  0x27   : > { %v442_v20 = vld [vmem:[%s2132_s28 + $0x140] sm:$0xff]  ;;  %439 = vst [vmem:[%s2137_s29 + $0x90] sm:$0xff] %v438_v18  ;;  %441 = vst [vmem:[%s2137_s29 + $0x98] sm:$0xff] %v440_v19  ;;  %v444_v21 = vld [vmem:[%s2132_s28 + $0x150] sm:$0xff] }
  0x28   : > { %443 = vst [vmem:[%s2137_s29 + $0xa0] sm:$0xff] %v442_v20  ;;  %v446_v22 = vld [vmem:[%s2132_s28 + $0x160] sm:$0xff]  ;;  %v448_v23 = vld [vmem:[%s2132_s28 + $0x170] sm:$0xff]  ;;  %445 = vst [vmem:[%s2137_s29 + $0xa8] sm:$0xff] %v444_v21 }
  0x29   : > { %447 = vst [vmem:[%s2137_s29 + $0xb0] sm:$0xff] %v446_v22  ;;  %449 = vst [vmem:[%s2137_s29 + $0xb8] sm:$0xff] %v448_v23  ;;  %v450_v24 = vld [vmem:[%s2132_s28 + $0x180] sm:$0xff]  ;;  %v452_v25 = vld [vmem:[%s2132_s28 + $0x190] sm:$0xff] }
  0x2a   : > { %v454_v26 = vld [vmem:[%s2132_s28 + $0x1a0] sm:$0xff]  ;;  %451 = vst [vmem:[%s2137_s29 + $0xc0] sm:$0xff] %v450_v24  ;;  %453 = vst [vmem:[%s2137_s29 + $0xc8] sm:$0xff] %v452_v25  ;;  %v456_v27 = vld [vmem:[%s2132_s28 + $0x1b0] sm:$0xff] }
  0x2b   : > { %455 = vst [vmem:[%s2137_s29 + $0xd0] sm:$0xff] %v454_v26  ;;  %v458_v28 = vld [vmem:[%s2132_s28 + $0x1c0] sm:$0xff]  ;;  %v460_v29 = vld [vmem:[%s2132_s28 + $0x1d0] sm:$0xff]  ;;  %457 = vst [vmem:[%s2137_s29 + $0xd8] sm:$0xff] %v456_v27 }
  0x2c   : > { %459 = vst [vmem:[%s2137_s29 + $0xe0] sm:$0xff] %v458_v28  ;;  %461 = vst [vmem:[%s2137_s29 + $0xe8] sm:$0xff] %v460_v29  ;;  %v462_v30 = vld [vmem:[%s2132_s28 + $0x1e0] sm:$0xff]  ;;  %v464_v31 = vld [vmem:[%s2132_s28 + $0x1f0] sm:$0xff] }
  0x2d   : > { %463 = vst [vmem:[%s2137_s29 + $0xf0] sm:$0xff] %v462_v30  ;;  %465 = vst [vmem:[%s2137_s29 + $0xf8] sm:$0xff] %v464_v31 }
  0x2e PF: > { %471 = sbr.rel (!%p2116_p4) target bundleno = 72 (0x48), region = 74  ;;  %s473_s30 = sand.u32 (%p2116_p4), 1, %s2022_s14  }
  0x2f   : > { %s1896_s11 = sshll.u32 (%p2116_p4), %s2026_s15, 3  ;;  %s1895_s12 = sshll.u32 (%p2116_p4), %s473_s30, 8 }
  0x30   : > { %s2854_s1 = sld [smem:[#allocation8_spill]] (%p2116_p4)  ;;  %s2212_s24 = scalar_lea.vmem (%p2116_p4), [#allocation3], %s1895_s12 }
  0x36   : > { %s2207_s23 = scalar_lea.vmem %s2854_s1, %s1896_s11 }
  0x37   : > { %v567_v32 = vld [vmem:[%s2207_s23] sm:$0xff]  ;;  %v569_v33 = vld [vmem:[%s2207_s23 + $0x10] sm:$0xff] }
  0x38   : > { %v571_v34 = vld [vmem:[%s2207_s23 + $0x20] sm:$0xff]  ;;  %568 = vst [vmem:[%s2212_s24] sm:$0xff] %v567_v32  ;;  %570 = vst [vmem:[%s2212_s24 + $0x8] sm:$0xff] %v569_v33  ;;  %v573_v35 = vld [vmem:[%s2207_s23 + $0x30] sm:$0xff] }
  0x39   : > { %572 = vst [vmem:[%s2212_s24 + $0x10] sm:$0xff] %v571_v34  ;;  %v575_v36 = vld [vmem:[%s2207_s23 + $0x40] sm:$0xff]  ;;  %v577_v37 = vld [vmem:[%s2207_s23 + $0x50] sm:$0xff]  ;;  %574 = vst [vmem:[%s2212_s24 + $0x18] sm:$0xff] %v573_v35 }
  0x3a   : > { %576 = vst [vmem:[%s2212_s24 + $0x20] sm:$0xff] %v575_v36  ;;  %578 = vst [vmem:[%s2212_s24 + $0x28] sm:$0xff] %v577_v37  ;;  %v579_v38 = vld [vmem:[%s2207_s23 + $0x60] sm:$0xff]  ;;  %v581_v39 = vld [vmem:[%s2207_s23 + $0x70] sm:$0xff] }
  0x3b   : > { %v583_v40 = vld [vmem:[%s2207_s23 + $0x80] sm:$0xff]  ;;  %580 = vst [vmem:[%s2212_s24 + $0x30] sm:$0xff] %v579_v38  ;;  %582 = vst [vmem:[%s2212_s24 + $0x38] sm:$0xff] %v581_v39  ;;  %v585_v41 = vld [vmem:[%s2207_s23 + $0x90] sm:$0xff] }
  0x3c   : > { %584 = vst [vmem:[%s2212_s24 + $0x40] sm:$0xff] %v583_v40  ;;  %v587_v42 = vld [vmem:[%s2207_s23 + $0xa0] sm:$0xff]  ;;  %v589_v43 = vld [vmem:[%s2207_s23 + $0xb0] sm:$0xff]  ;;  %586 = vst [vmem:[%s2212_s24 + $0x48] sm:$0xff] %v585_v41 }
  0x3d   : > { %588 = vst [vmem:[%s2212_s24 + $0x50] sm:$0xff] %v587_v42  ;;  %590 = vst [vmem:[%s2212_s24 + $0x58] sm:$0xff] %v589_v43  ;;  %v591_v44 = vld [vmem:[%s2207_s23 + $0xc0] sm:$0xff]  ;;  %v593_v45 = vld [vmem:[%s2207_s23 + $0xd0] sm:$0xff] }
  0x3e   : > { %v595_v46 = vld [vmem:[%s2207_s23 + $0xe0] sm:$0xff]  ;;  %592 = vst [vmem:[%s2212_s24 + $0x60] sm:$0xff] %v591_v44  ;;  %594 = vst [vmem:[%s2212_s24 + $0x68] sm:$0xff] %v593_v45  ;;  %v597_v47 = vld [vmem:[%s2207_s23 + $0xf0] sm:$0xff] }
  0x3f   : > { %596 = vst [vmem:[%s2212_s24 + $0x70] sm:$0xff] %v595_v46  ;;  %v599_v48 = vld [vmem:[%s2207_s23 + $0x100] sm:$0xff]  ;;  %v601_v49 = vld [vmem:[%s2207_s23 + $0x110] sm:$0xff]  ;;  %598 = vst [vmem:[%s2212_s24 + $0x78] sm:$0xff] %v597_v47 }
  0x40   : > { %600 = vst [vmem:[%s2212_s24 + $0x80] sm:$0xff] %v599_v48  ;;  %602 = vst [vmem:[%s2212_s24 + $0x88] sm:$0xff] %v601_v49  ;;  %v603_v50 = vld [vmem:[%s2207_s23 + $0x120] sm:$0xff]  ;;  %v605_v51 = vld [vmem:[%s2207_s23 + $0x130] sm:$0xff] }
  0x41   : > { %v607_v52 = vld [vmem:[%s2207_s23 + $0x140] sm:$0xff]  ;;  %604 = vst [vmem:[%s2212_s24 + $0x90] sm:$0xff] %v603_v50  ;;  %606 = vst [vmem:[%s2212_s24 + $0x98] sm:$0xff] %v605_v51  ;;  %v609_v53 = vld [vmem:[%s2207_s23 + $0x150] sm:$0xff] }
  0x42   : > { %608 = vst [vmem:[%s2212_s24 + $0xa0] sm:$0xff] %v607_v52  ;;  %v611_v54 = vld [vmem:[%s2207_s23 + $0x160] sm:$0xff]  ;;  %v613_v55 = vld [vmem:[%s2207_s23 + $0x170] sm:$0xff]  ;;  %610 = vst [vmem:[%s2212_s24 + $0xa8] sm:$0xff] %v609_v53 }
  0x43   : > { %612 = vst [vmem:[%s2212_s24 + $0xb0] sm:$0xff] %v611_v54  ;;  %614 = vst [vmem:[%s2212_s24 + $0xb8] sm:$0xff] %v613_v55  ;;  %v615_v56 = vld [vmem:[%s2207_s23 + $0x180] sm:$0xff]  ;;  %v617_v57 = vld [vmem:[%s2207_s23 + $0x190] sm:$0xff] }
  0x44   : > { %v619_v58 = vld [vmem:[%s2207_s23 + $0x1a0] sm:$0xff]  ;;  %616 = vst [vmem:[%s2212_s24 + $0xc0] sm:$0xff] %v615_v56  ;;  %618 = vst [vmem:[%s2212_s24 + $0xc8] sm:$0xff] %v617_v57  ;;  %v621_v59 = vld [vmem:[%s2207_s23 + $0x1b0] sm:$0xff] }
  0x45   : > { %620 = vst [vmem:[%s2212_s24 + $0xd0] sm:$0xff] %v619_v58  ;;  %v623_v60 = vld [vmem:[%s2207_s23 + $0x1c0] sm:$0xff]  ;;  %v625_v61 = vld [vmem:[%s2207_s23 + $0x1d0] sm:$0xff]  ;;  %622 = vst [vmem:[%s2212_s24 + $0xd8] sm:$0xff] %v621_v59 }
  0x46   : > { %624 = vst [vmem:[%s2212_s24 + $0xe0] sm:$0xff] %v623_v60  ;;  %626 = vst [vmem:[%s2212_s24 + $0xe8] sm:$0xff] %v625_v61  ;;  %v627_v62 = vld [vmem:[%s2207_s23 + $0x1e0] sm:$0xff]  ;;  %v629_v63 = vld [vmem:[%s2207_s23 + $0x1f0] sm:$0xff] }
  0x47   : > { %628 = vst [vmem:[%s2212_s24 + $0xf0] sm:$0xff] %v627_v62  ;;  %630 = vst [vmem:[%s2212_s24 + $0xf8] sm:$0xff] %v629_v63 }
  0x48 PF: > { %636 = sbr.rel (!%p2116_p4) target bundleno = 80 (0x50), region = 112  ;;  %s638_s25 = sand.u32 (%p2116_p4), 1, %s2022_s14  }
  0x49   : > { %s1898_s26 = sshll.u32 (%p2116_p4), %s2026_s15, 3  ;;  %s1897_s27 = sshll.u32 (%p2116_p4), %s638_s25, 6 }
  0x4a   : > { %s642_s30 = scalar_lea.vmem (%p2116_p4), %s2840_s2, %s1898_s26  ;;  %s640_s11 = scalar_lea.vmem (%p2116_p4), [#allocation4], %s1897_s27 }
  0x4b   : > { %v684_v0 = vld [vmem:[%s642_s30] sm:$0xff] (%p2116_p4)  ;;  %v686_v1 = vld [vmem:[%s642_s30 + $0x10] sm:$0xff] (%p2116_p4) }
  0x4c   : > { %v688_v2 = vld [vmem:[%s642_s30 + $0x20] sm:$0xff] (%p2116_p4)  ;;  %685 = vst [vmem:[%s640_s11] sm:$0xff] (%p2116_p4), %v684_v0  ;;  %687 = vst [vmem:[%s640_s11 + $0x8] sm:$0xff] (%p2116_p4), %v686_v1  ;;  %v690_v3 = vld [vmem:[%s642_s30 + $0x30] sm:$0xff] (%p2116_p4) }
  0x4d   : > { %689 = vst [vmem:[%s640_s11 + $0x10] sm:$0xff] (%p2116_p4), %v688_v2  ;;  %v692_v4 = vld [vmem:[%s642_s30 + $0x40] sm:$0xff] (%p2116_p4)  ;;  %v694_v5 = vld [vmem:[%s642_s30 + $0x50] sm:$0xff] (%p2116_p4)  ;;  %691 = vst [vmem:[%s640_s11 + $0x18] sm:$0xff] (%p2116_p4), %v690_v3 }
  0x4e   : > { %693 = vst [vmem:[%s640_s11 + $0x20] sm:$0xff] (%p2116_p4), %v692_v4  ;;  %695 = vst [vmem:[%s640_s11 + $0x28] sm:$0xff] (%p2116_p4), %v694_v5  ;;  %v696_v6 = vld [vmem:[%s642_s30 + $0x60] sm:$0xff] (%p2116_p4)  ;;  %v698_v7 = vld [vmem:[%s642_s30 + $0x70] sm:$0xff] (%p2116_p4) }
  0x4f   : > { %697 = vst [vmem:[%s640_s11 + $0x30] sm:$0xff] %v696_v6  ;;  %699 = vst [vmem:[%s640_s11 + $0x38] sm:$0xff] %v698_v7 }
  0x50 PF: > { %p1899_p7 = scmp.ge.s32.totalorder %s2026_s15, 1  ;;  %p704_p8 = scmp.lt.s32.totalorder %s2026_s15, 3 }
  0x52   : > { %p705_p9 = pnand %p1899_p7, %p704_p8 }
  0x53   : > { %s711_s21 = sand.u32 (!%p705_p9), 1, %s2018_s13   ;;  %p1905_p10 = scmp.ne.s32.totalorder (!%p705_p9), %s2101_s16, 0 }
  0x54   : > { %708 = sbr.rel (%p705_p9) target bundleno = 598 (0x256), region = 150  ;;  %s1900_s12 = sshll.u32 (!%p705_p9), %s711_s21, 8 }
  0x55   : > { %s1902_s18 = sshll.u32 (!%p705_p9), %s711_s21, 6  ;;  %s2285_s19 = scalar_lea.vmem (!%p705_p9), [#allocation2], %s1900_s12 }
  0x56   : > { %s2287_s23 = scalar_lea.vmem (!%p705_p9), [#allocation3], %s1900_s12  ;;  %s2289_s24 = scalar_lea.vmem (!%p705_p9), [#allocation4], %s1902_s18 }
  0x57   : > { %s2291_s25 = scalar_lea.vmem (!%p705_p9), [#allocation5], %s1902_s18  ;;  %s2293_s26 = scalar_lea.vmem (!%p705_p9), [#allocation6], %s1902_s18 }
  0x5b   : > { %776 = sbr.rel (%p1905_p10) target bundleno = 98 (0x62), region = 166  ;;  %vm777_vm0 = vcmask (!%p1905_p10), 7168   ;;  %v2028_v8 = vmov (!%p1905_p10), 0.0  }
  0x5c   : > { %778 = vst.msk [vmem:[%s2847_s9] sm:$0xff] (!%p1905_p10), %vm777_vm0, %v2028_v8  ;;  %779 = vst.msk [vmem:[%s2847_s9 + $0x8] sm:$0xff] (!%p1905_p10), %vm777_vm0, %v2028_v8 }
  0x5d   : > { %780 = vst.msk [vmem:[%s2847_s9 + $0x10] sm:$0xff] (!%p1905_p10), %vm777_vm0, %v2028_v8  ;;  %781 = vst.msk [vmem:[%s2847_s9 + $0x18] sm:$0xff] (!%p1905_p10), %vm777_vm0, %v2028_v8 }
  0x5e   : > { %782 = vst.msk [vmem:[%s2848_s10] sm:$0xff] (!%p1905_p10), %vm777_vm0, %v2028_v8  ;;  %783 = vst.msk [vmem:[%s2848_s10 + $0x8] sm:$0xff] (!%p1905_p10), %vm777_vm0, %v2028_v8 }
  0x5f   : > { %784 = vst.msk [vmem:[%s2848_s10 + $0x10] sm:$0xff] (!%p1905_p10), %vm777_vm0, %v2028_v8  ;;  %785 = vst.msk [vmem:[%s2848_s10 + $0x18] sm:$0xff] (!%p1905_p10), %vm777_vm0, %v2028_v8 }
  0x62 PF: > { %v796_v9 = vld [vmem:[%s2841_s3 + $0x30] sm:$0xff]  ;;  %v794_v10 = vld [vmem:[%s2841_s3 + $0x20] sm:$0xff]  ;;  %v2029_v11 = vmov 0   ;;  %v797_v12 = vld [vmem:[%s2841_s3 + $0x38] sm:$0xff]  ;;  %vm1382_vm1 = vcmask 7168  }
  0x63   : > { %1939 = vset.pattern.permute.xlu1 %v2029_v11  ;;  %1938 = vset.pattern.permute.xlu0 %v2029_v11  ;;  %v795_v13 = vld [vmem:[%s2841_s3 + $0x28] sm:$0xff]  ;;  %v826_v15 = vld [vmem:[%s2842_s4 + $0x20] sm:$0xff]  ;;  %v829_v16 = vld [vmem:[%s2842_s4 + $0x38] sm:$0xff] }
  0x64   : > { %810 = vperm.xlu1 %1939, %v796_v9   ;;  %800 = vperm.xlu0 %1938, %v794_v10   ;;  %v827_v14 = vld [vmem:[%s2842_s4 + $0x28] sm:$0xff]  ;;  %v828_v17 = vld [vmem:[%s2842_s4 + $0x30] sm:$0xff]  ;;  %v866_v19 = vld [vmem:[%s2843_s5 + $0x20] sm:$0xff] }
  0x65   : > { %v867_v18 = vld [vmem:[%s2843_s5 + $0x28] sm:$0xff]  ;;  %v869_v20 = vld [vmem:[%s2843_s5 + $0x38] sm:$0xff]  ;;  %v868_v21 = vld [vmem:[%s2843_s5 + $0x30] sm:$0xff] }
  0x66   : > { %v907_v22 = vld [vmem:[%s2844_s6 + $0x28] sm:$0xff]  ;;  %v906_v23 = vld [vmem:[%s2844_s6 + $0x20] sm:$0xff]  ;;  %v909_v24 = vld [vmem:[%s2844_s6 + $0x38] sm:$0xff] }
  0x67   : > { %v908_v25 = vld [vmem:[%s2844_s6 + $0x30] sm:$0xff]  ;;  %v995_v26 = vld [vmem:[%s2841_s3 + $0x8] sm:$0xff]  ;;  %v994_v27 = vld [vmem:[%s2841_s3] sm:$0xff] }
  0x68   : > { %815 = vperm.xlu1 %1939, %v797_v12   ;;  %805 = vperm.xlu0 %1938, %v795_v13   ;;  %v997_v28 = vld [vmem:[%s2841_s3 + $0x18] sm:$0xff]  ;;  %v996_v29 = vld [vmem:[%s2841_s3 + $0x10] sm:$0xff]  ;;  %v1027_v30 = vld [vmem:[%s2842_s4 + $0x8] sm:$0xff] }
  0x69   : > { %v1026_v31 = vld [vmem:[%s2842_s4] sm:$0xff]  ;;  %v1029_v32 = vld [vmem:[%s2842_s4 + $0x18] sm:$0xff]  ;;  %v1028_v33 = vld [vmem:[%s2842_s4 + $0x10] sm:$0xff] }
  0x6a   : > { %v1067_v34 = vld [vmem:[%s2843_s5 + $0x8] sm:$0xff]  ;;  %v1066_v35 = vld [vmem:[%s2843_s5] sm:$0xff]  ;;  %v1069_v36 = vld [vmem:[%s2843_s5 + $0x18] sm:$0xff] }
  0x6b   : > { %v1068_v37 = vld [vmem:[%s2843_s5 + $0x10] sm:$0xff]  ;;  %v1107_v38 = vld [vmem:[%s2844_s6 + $0x8] sm:$0xff]  ;;  %v1106_v39 = vld [vmem:[%s2844_s6] sm:$0xff] }
  0x6c   : > { %837 = vperm.xlu1 %1939, %v827_v14   ;;  %832 = vperm.xlu0 %1938, %v826_v15   ;;  %v1109_v40 = vld [vmem:[%s2844_s6 + $0x18] sm:$0xff]  ;;  %v1108_v41 = vld [vmem:[%s2844_s6 + $0x10] sm:$0xff]  ;;  %v1179_v42 = vld [vmem:[%s2841_s3 + $0x68] sm:$0xff] }
  0x6d   : > { %v1178_v43 = vld [vmem:[%s2841_s3 + $0x60] sm:$0xff]  ;;  %v1181_v44 = vld [vmem:[%s2841_s3 + $0x78] sm:$0xff]  ;;  %v1180_v45 = vld [vmem:[%s2841_s3 + $0x70] sm:$0xff] }
  0x6e   : > { %v1211_v46 = vld [vmem:[%s2842_s4 + $0x68] sm:$0xff]  ;;  %v1210_v47 = vld [vmem:[%s2842_s4 + $0x60] sm:$0xff]  ;;  %v1213_v48 = vld [vmem:[%s2842_s4 + $0x78] sm:$0xff] }
  0x6f   : > { %v1212_v49 = vld [vmem:[%s2842_s4 + $0x70] sm:$0xff]  ;;  %v1251_v50 = vld [vmem:[%s2843_s5 + $0x68] sm:$0xff]  ;;  %v1250_v51 = vld [vmem:[%s2843_s5 + $0x60] sm:$0xff] }
  0x70   : > { %847 = vperm.xlu1 %1939, %v829_v16   ;;  %842 = vperm.xlu0 %1938, %v828_v17   ;;  %v1253_v52 = vld [vmem:[%s2843_s5 + $0x78] sm:$0xff]  ;;  %v1252_v53 = vld [vmem:[%s2843_s5 + $0x70] sm:$0xff]  ;;  %v1291_v54 = vld [vmem:[%s2844_s6 + $0x68] sm:$0xff] }
  0x71   : > { %v1290_v55 = vld [vmem:[%s2844_s6 + $0x60] sm:$0xff]  ;;  %v1293_v56 = vld [vmem:[%s2844_s6 + $0x78] sm:$0xff]  ;;  %v1292_v57 = vld [vmem:[%s2844_s6 + $0x70] sm:$0xff] }
  0x72   : > { %v1435_v58 = vld [vmem:[%s2841_s3 + $0x40] sm:$0xff]  ;;  %v787_v1 = vld [vmem:[%s2285_s19 + $0x28] sm:$0xff]  ;;  %v788_v3 = vld [vmem:[%s2285_s19 + $0x30] sm:$0xff] }
  0x73   : > { %v786_v61 = vld [vmem:[%s2285_s19 + $0x20] sm:$0xff]  ;;  %v791_v2 = vld [vmem:[%s2285_s19 + $0xa8] sm:$0xff]  ;;  %v792_v8 = vld [vmem:[%s2285_s19 + $0xb0] sm:$0xff] }
  0x74   : > { %877 = vperm.xlu1 %1939, %v867_v18   ;;  %872 = vperm.xlu0 %1938, %v866_v19   ;;  %v790_v62 = vld [vmem:[%s2285_s19 + $0xa0] sm:$0xff]  ;;  %v789_v9 = vld [vmem:[%s2285_s19 + $0x38] sm:$0xff] }
  0x75   : > { %v793_v10 = vld [vmem:[%s2285_s19 + $0xb8] sm:$0xff] }
  0x78   : > { %887 = vperm.xlu1 %1939, %v869_v20   ;;  %882 = vperm.xlu0 %1938, %v868_v21  }
  0x7c   : > { %917 = vperm.xlu1 %1939, %v907_v22   ;;  %912 = vperm.xlu0 %1938, %v906_v23  }
  0x80   : > { %927 = vperm.xlu1 %1939, %v909_v24   ;;  %922 = vperm.xlu0 %1938, %v908_v25  }
  0x84   : > { %1005 = vperm.xlu1 %1939, %v995_v26   ;;  %1000 = vperm.xlu0 %1938, %v994_v27  }
  0x88   : > { %1015 = vperm.xlu1 %1939, %v997_v28   ;;  %1010 = vperm.xlu0 %1938, %v996_v29  }
  0x8c   : > { %1037 = vperm.xlu1 %1939, %v1027_v30   ;;  %1032 = vperm.xlu0 %1938, %v1026_v31  }
  0x90   : > { %1047 = vperm.xlu1 %1939, %v1029_v32   ;;  %1042 = vperm.xlu0 %1938, %v1028_v33  }
  0x94   : > { %1077 = vperm.xlu1 %1939, %v1067_v34   ;;  %1072 = vperm.xlu0 %1938, %v1066_v35  }
  0x98   : > { %1087 = vperm.xlu1 %1939, %v1069_v36   ;;  %1082 = vperm.xlu0 %1938, %v1068_v37  }
  0x9c   : > { %1117 = vperm.xlu1 %1939, %v1107_v38   ;;  %1112 = vperm.xlu0 %1938, %v1106_v39  }
  0xa0   : > { %1127 = vperm.xlu1 %1939, %v1109_v40   ;;  %1122 = vperm.xlu0 %1938, %v1108_v41   ;;  %v859_v41 = vld [vmem:[%s2287_s23 + $0x28] sm:$0xff] }
  0xa4   : > { %1189 = vperm.xlu1 %1939, %v1179_v42   ;;  %1184 = vperm.xlu0 %1938, %v1178_v43  }
  0xa8   : > { %1199 = vperm.xlu1 %1939, %v1181_v44   ;;  %1194 = vperm.xlu0 %1938, %v1180_v45   ;;  %v863_v44 = vld [vmem:[%s2287_s23 + $0xa8] sm:$0xff]  ;;  %v858_v45 = vld [vmem:[%s2287_s23 + $0x20] sm:$0xff] }
  0xac   : > { %1221 = vperm.xlu1 %1939, %v1211_v46   ;;  %1216 = vperm.xlu0 %1938, %v1210_v47  }
  0xb0   : > { %1231 = vperm.xlu1 %1939, %v1213_v48   ;;  %1226 = vperm.xlu0 %1938, %v1212_v49  }
  0xb4   : > { %1261 = vperm.xlu1 %1939, %v1251_v50   ;;  %1256 = vperm.xlu0 %1938, %v1250_v51   ;;  %v862_v50 = vld [vmem:[%s2287_s23 + $0xa0] sm:$0xff] }
  0xb8   : > { %1271 = vperm.xlu1 %1939, %v1253_v52   ;;  %1266 = vperm.xlu0 %1938, %v1252_v53   ;;  %v861_v52 = vld [vmem:[%s2287_s23 + $0x38] sm:$0xff] }
  0xb9   : > { %v865_v53 = vld [vmem:[%s2287_s23 + $0xb8] sm:$0xff] }
  0xbc   : > { %1301 = vperm.xlu1 %1939, %v1291_v54   ;;  %1296 = vperm.xlu0 %1938, %v1290_v55  }
  0xc0   : > { %1311 = vperm.xlu1 %1939, %v1293_v56   ;;  %1306 = vperm.xlu0 %1938, %v1292_v57   ;;  %v860_v56 = vld [vmem:[%s2287_s23 + $0x30] sm:$0xff] }
  0xc4   : > { %1441 = vperm.xlu1 %1939, %v1435_v58  }
  0xe3   : > { %v811_v59 = vpop.permute.xlu1 %810  ;;  %v801_v60 = vpop.permute.xlu0 %800 }
  0xe4   : > { %v818_v4 = vmul.f32 %v801_v60, %v786_v61  ;;  %v822_v5 = vmul.f32 %v801_v60, %v790_v62  ;;  %v820_v17 = vmul.f32 %v811_v59, %v788_v3  ;;  %v824_v18 = vmul.f32 %v811_v59, %v792_v8 }
  0xe7   : > { %v816_v63 = vpop.permute.xlu1 %815  ;;  %v806_v0 = vpop.permute.xlu0 %805 }
  0xe8   : > { %v819_v6 = vmul.f32 %v806_v0, %v787_v1  ;;  %v823_v7 = vmul.f32 %v806_v0, %v791_v2  ;;  %v821_v19 = vmul.f32 %v816_v63, %v789_v9  ;;  %v825_v20 = vmul.f32 %v816_v63, %v793_v10  ;;  %v864_v0 = vld [vmem:[%s2287_s23 + $0xb0] sm:$0xff] }
  0xeb   : > { %v838_v11 = vpop.permute.xlu1 %837  ;;  %v833_v12 = vpop.permute.xlu0 %832 }
  0xec   : > { %v851_v13 = vadd.f32 %v838_v11, %v819_v6  ;;  %v855_v14 = vadd.f32 %v838_v11, %v823_v7  ;;  %v850_v15 = vadd.f32 %v833_v12, %v818_v4  ;;  %v854_v16 = vadd.f32 %v833_v12, %v822_v5 }
  0xef   : > { %v848_v21 = vpop.permute.xlu1 %847  ;;  %v843_v22 = vpop.permute.xlu0 %842 }
  0xf0   : > { %v853_v23 = vadd.f32 %v848_v21, %v821_v19  ;;  %v857_v24 = vadd.f32 %v848_v21, %v825_v20  ;;  %v852_v25 = vadd.f32 %v843_v22, %v820_v17  ;;  %v856_v26 = vadd.f32 %v843_v22, %v824_v18  ;;  %v987_v18 = vld [vmem:[%s2285_s19 + $0x8] sm:$0xff] }
  0xf3   : > { %v878_v27 = vpop.permute.xlu1 %877  ;;  %v873_v28 = vpop.permute.xlu0 %872 }
  0xf4   : > { %v891_v46 = vmul.f32 %v878_v27, %v859_v41  ;;  %v895_v47 = vmul.f32 %v878_v27, %v863_v44  ;;  %v890_v51 = vmul.f32 %v873_v28, %v858_v45  ;;  %v894_v55 = vmul.f32 %v873_v28, %v862_v50  ;;  %v1058_v28 = vld [vmem:[%s2287_s23] sm:$0xff]  ;;  %v989_v45 = vld [vmem:[%s2285_s19 + $0x18] sm:$0xff] }
  0xf6   : > { %v899_v54 = vadd.f32 %v891_v46, %v851_v13  ;;  %v903_v57 = vadd.f32 %v895_v47, %v855_v14  ;;  %v898_v61 = vadd.f32 %v890_v51, %v850_v15  ;;  %v902_v4 = vadd.f32 %v894_v55, %v854_v16  ;;  %v1059_v16 = vld [vmem:[%s2287_s23 + $0x8] sm:$0xff]  ;;  %v1061_v47 = vld [vmem:[%s2287_s23 + $0x18] sm:$0xff] }
  0xf7   : > { %v888_v29 = vpop.permute.xlu1 %887  ;;  %v883_v30 = vpop.permute.xlu0 %882 }
  0xf8   : > { %v893_v62 = vmul.f32 %v888_v29, %v861_v52  ;;  %v897_v63 = vmul.f32 %v888_v29, %v865_v53  ;;  %v892_v2 = vmul.f32 %v883_v30, %v860_v56  ;;  %v896_v7 = vmul.f32 %v883_v30, %v864_v0  ;;  %v993_v53 = vld [vmem:[%s2285_s19 + $0x98] sm:$0xff] }
  0xfa   : > { %v901_v11 = vadd.f32 %v893_v62, %v853_v23  ;;  %v905_v12 = vadd.f32 %v897_v63, %v857_v24  ;;  %v900_v14 = vadd.f32 %v892_v2, %v852_v25  ;;  %v904_v21 = vadd.f32 %v896_v7, %v856_v26  ;;  %v991_v23 = vld [vmem:[%s2285_s19 + $0x88] sm:$0xff]  ;;  %v986_v25 = vld [vmem:[%s2285_s19] sm:$0xff]  ;;  %v992_v62 = vld [vmem:[%s2285_s19 + $0x90] sm:$0xff] }
  0xfb   : > { %v918_v31 = vpop.permute.xlu1 %917  ;;  %v913_v32 = vpop.permute.xlu0 %912  ;;  %v1063_v24 = vld [vmem:[%s2287_s23 + $0x88] sm:$0xff]  ;;  %v1064_v7 = vld [vmem:[%s2287_s23 + $0x90] sm:$0xff] }
  0xfc   : > { %v931_v60 = vadd.f32 %v918_v31, %v899_v54  ;;  %v935_v1 = vadd.f32 %v918_v31, %v903_v57  ;;  %v930_v3 = vadd.f32 %v913_v32, %v898_v61  ;;  %v934_v10 = vadd.f32 %v913_v32, %v902_v4  ;;  %v990_v31 = vld [vmem:[%s2285_s19 + $0x80] sm:$0xff]  ;;  %v988_v54 = vld [vmem:[%s2285_s19 + $0x10] sm:$0xff] }
  0xfe   : > { %v939_v8 = vmul.f32 0.5, %v931_v60  ;;  %v943_v9 = vmul.f32 0.5, %v935_v1  ;;  %v938_v13 = vmul.f32 0.5, %v930_v3  ;;  %v942_v27 = vmul.f32 0.5, %v934_v10  ;;  %v1065_v60 = vld [vmem:[%s2287_s23 + $0x98] sm:$0xff]  ;;  %v1060_v1 = vld [vmem:[%s2287_s23 + $0x10] sm:$0xff] }
  0xff   : > { %v928_v33 = vpop.permute.xlu1 %927  ;;  %v923_v34 = vpop.permute.xlu0 %922 }
 0x100   : > { %v933_v15 = vadd.f32 %v928_v33, %v901_v11  ;;  %v937_v17 = vadd.f32 %v928_v33, %v905_v12  ;;  %1940 = vtanh.f32 %v939_v8  ;;  %v932_v22 = vadd.f32 %v923_v34, %v900_v14  ;;  %v1062_v33 = vld [vmem:[%s2287_s23 + $0x80] sm:$0xff] }
 0x101   : > { %1942 = vtanh.f32 %v943_v9  ;;  %v936_v29 = vadd.f32 %v923_v34, %v904_v21 }
 0x102   : > { %1944 = vtanh.f32 %v938_v13  ;;  %v941_v41 = vmul.f32 0.5, %v933_v15  ;;  %v945_v26 = vmul.f32 0.5, %v937_v17  ;;  %v940_v34 = vmul.f32 0.5, %v932_v22 }
 0x103   : > { %v2475_v35 = vpop.permute.xlu1 %1005  ;;  %v2477_v36 = vpop.permute.xlu0 %1000  ;;  %1946 = vtanh.f32 %v942_v27  ;;  %v944_v22 = vmul.f32 0.5, %v936_v29 }
 0x104   : > { %v1019_v30 = vmul.f32 %v2475_v35, %v987_v18  ;;  %v1023_v44 = vmul.f32 %v2475_v35, %v991_v23  ;;  %v1018_v52 = vmul.f32 %v2477_v36, %v986_v25  ;;  %1948 = vtanh.f32 %v941_v41 }
 0x105   : > { %1950 = vtanh.f32 %v945_v26 }
 0x106   : > { %1952 = vtanh.f32 %v940_v34  ;;  %v1175_v34 = vld [vmem:[%s2285_s19 + $0xe8] sm:$0xff] }
 0x107   : > { %v2479_v37 = vpop.permute.xlu1 %1015  ;;  %v2481_v38 = vpop.permute.xlu0 %1010  ;;  %1954 = vtanh.f32 %v944_v22 }
 0x108   : > { %v1021_v61 = vmul.f32 %v2479_v37, %v989_v45  ;;  %v1025_v3 = vmul.f32 %v2479_v37, %v993_v53  ;;  %v1020_v4 = vmul.f32 %v2481_v38, %v988_v54  ;;  %v1024_v13 = vmul.f32 %v2481_v38, %v992_v62  ;;  %v1247_v53 = vld [vmem:[%s2287_s23 + $0xe8] sm:$0xff] }
 0x10a   : > { %v2557_v15 = vpop.eup %1940 }
 0x10b   : > { %v2483_v39 = vpop.permute.xlu1 %1037  ;;  %v2485_v40 = vpop.permute.xlu0 %1032 }
 0x10c   : > { %v1051_v55 = vadd.f32 %v2483_v39, %v1019_v30  ;;  %v1055_v56 = vadd.f32 %v2483_v39, %v1023_v44  ;;  %v1050_v63 = vadd.f32 %v2485_v40, %v1018_v52  ;;  %v1243_v52 = vld [vmem:[%s2287_s23 + $0x68] sm:$0xff] }
 0x10f   : > { %v2488_v42 = vpop.permute.xlu1 %1047  ;;  %v2490_v43 = vpop.permute.xlu0 %1042 }
 0x110   : > { %v1053_v9 = vadd.f32 %v2488_v42, %v1021_v61  ;;  %v1057_v17 = vadd.f32 %v2488_v42, %v1025_v3  ;;  %v1052_v38 = vadd.f32 %v2490_v43, %v1020_v4  ;;  %v1056_v42 = vadd.f32 %v2490_v43, %v1024_v13  ;;  %v1245_v13 = vld [vmem:[%s2287_s23 + $0x78] sm:$0xff] }
 0x113   : > { %v1078_v48 = vpop.permute.xlu1 %1077  ;;  %v2494_v49 = vpop.permute.xlu0 %1072 }
 0x114   : > { %v1091_v32 = vmul.f32 %v1078_v48, %v1059_v16  ;;  %v1095_v46 = vmul.f32 %v1078_v48, %v1063_v24  ;;  %v1090_v35 = vmul.f32 %v2494_v49, %v1058_v28  ;;  %v1022_v48 = vmul.f32 %v2477_v36, %v990_v31 }
 0x115   : > { %v1094_v57 = vmul.f32 %v2494_v49, %v1062_v33 }
 0x116   : > { %v1099_v2 = vadd.f32 %v1091_v32, %v1051_v55  ;;  %v1054_v36 = vadd.f32 %v2485_v40, %v1022_v48  ;;  %v1103_v39 = vadd.f32 %v1095_v46, %v1055_v56  ;;  %v1098_v12 = vadd.f32 %v1090_v35, %v1050_v63  ;;  %v1171_v46 = vld [vmem:[%s2285_s19 + $0x68] sm:$0xff]  ;;  %v1170_v55 = vld [vmem:[%s2285_s19 + $0x60] sm:$0xff] }
 0x117   : > { %v2500_v58 = vpop.permute.xlu1 %1087  ;;  %v2502_v59 = vpop.permute.xlu0 %1082  ;;  %v1174_v35 = vld [vmem:[%s2285_s19 + $0xe0] sm:$0xff] }
 0x118   : > { %v1093_v0 = vmul.f32 %v2500_v58, %v1061_v47  ;;  %v1097_v10 = vmul.f32 %v2500_v58, %v1065_v60  ;;  %v1092_v37 = vmul.f32 %v2502_v59, %v1060_v1  ;;  %v1102_v40 = vadd.f32 %v1094_v57, %v1054_v36  ;;  %v2562_v58 = vpop.eup %1942  ;;  %v1242_v56 = vld [vmem:[%s2287_s23 + $0x60] sm:$0xff]  ;;  %v1177_v1 = vld [vmem:[%s2285_s19 + $0xf8] sm:$0xff] }
 0x119   : > { %v1096_v18 = vmul.f32 %v2502_v59, %v1064_v7  ;;  %v2568_v27 = vpop.eup %1944  ;;  %v1246_v60 = vld [vmem:[%s2287_s23 + $0xe0] sm:$0xff] }
 0x11a   : > { %v1101_v21 = vadd.f32 %v1093_v0, %v1053_v9  ;;  %v1105_v59 = vadd.f32 %v1097_v10, %v1057_v17  ;;  %v1100_v31 = vadd.f32 %v1092_v37, %v1052_v38  ;;  %v2573_v33 = vpop.eup %1946  ;;  %v1173_v0 = vld [vmem:[%s2285_s19 + $0x78] sm:$0xff]  ;;  %v1248_v38 = vld [vmem:[%s2287_s23 + $0xf0] sm:$0xff] }
 0x11b   : > { %v2505_v5 = vpop.permute.xlu1 %1117  ;;  %v2507_v6 = vpop.permute.xlu0 %1112  ;;  %v1104_v32 = vadd.f32 %v1096_v18, %v1056_v42  ;;  %v1249_v37 = vld [vmem:[%s2287_s23 + $0xf8] sm:$0xff] }
 0x11c   : > { %v1131_v11 = vadd.f32 %v2505_v5, %v1099_v2  ;;  %v1135_v14 = vadd.f32 %v2505_v5, %v1103_v39  ;;  %v1130_v16 = vadd.f32 %v2507_v6, %v1098_v12  ;;  %v1134_v23 = vadd.f32 %v2507_v6, %v1102_v40  ;;  %v2589_v61 = vpop.eup %1948  ;;  %v1172_v2 = vld [vmem:[%s2285_s19 + $0x70] sm:$0xff] }
 0x11d   : > { %v1176_v39 = vld [vmem:[%s2285_s19 + $0xf0] sm:$0xff]  ;;  %v2599_v10 = vpop.eup %1950 }
 0x11e   : > { %v1139_v25 = vmul.f32 0.5, %v1131_v11  ;;  %v1143_v30 = vmul.f32 0.5, %v1135_v14  ;;  %v1138_v29 = vmul.f32 0.5, %v1130_v16  ;;  %v1142_v43 = vmul.f32 0.5, %v1134_v23  ;;  %v1244_v40 = vld [vmem:[%s2287_s23 + $0x70] sm:$0xff]  ;;  %v2604_v18 = vpop.eup %1952 }
 0x11f   : > { %v2511_v19 = vpop.permute.xlu1 %1127  ;;  %v2513_v20 = vpop.permute.xlu0 %1122 }
 0x120   : > { %v1133_v28 = vadd.f32 %v2511_v19, %v1101_v21  ;;  %v1137_v6 = vadd.f32 %v2511_v19, %v1105_v59  ;;  %v1132_v41 = vadd.f32 %v2513_v20, %v1100_v31  ;;  %1956 = vtanh.f32 %v1139_v25  ;;  %v2611_v23 = vpop.eup %1954 }
 0x121   : > { %v1136_v19 = vadd.f32 %v2513_v20, %v1104_v32  ;;  %1958 = vtanh.f32 %v1143_v30 }
 0x122   : > { %v1141_v45 = vmul.f32 0.5, %v1133_v28  ;;  %1960 = vtanh.f32 %v1138_v29  ;;  %v1145_v47 = vmul.f32 0.5, %v1137_v6  ;;  %v1140_v54 = vmul.f32 0.5, %v1132_v41 }
 0x123   : > { %v2525_v50 = vpop.permute.xlu1 %1189  ;;  %v2527_v51 = vpop.permute.xlu0 %1184  ;;  %1962 = vtanh.f32 %v1142_v43  ;;  %v1144_v20 = vmul.f32 0.5, %v1136_v19 }
 0x124   : > { %1964 = vtanh.f32 %v1141_v45  ;;  %v1203_v62 = vmul.f32 %v2525_v50, %v1171_v46  ;;  %v1207_v63 = vmul.f32 %v2525_v50, %v1175_v34  ;;  %v1202_v36 = vmul.f32 %v2527_v51, %v1170_v55 }
 0x125   : > { %1966 = vtanh.f32 %v1145_v47  ;;  %v1206_v7 = vmul.f32 %v2527_v51, %v1174_v35 }
 0x126   : > { %1968 = vtanh.f32 %v1140_v54  ;;  %v955_v54 = vmul.f32 0.5, %v2557_v15 }
 0x127   : > { %v2547_v8 = vpop.permute.xlu1 %1199  ;;  %v2549_v49 = vpop.permute.xlu0 %1194  ;;  %1970 = vtanh.f32 %v1144_v20 }
 0x128   : > { %v1205_v16 = vmul.f32 %v2547_v8, %v1173_v0  ;;  %v1209_v51 = vmul.f32 %v2547_v8, %v1177_v1  ;;  %v1204_v21 = vmul.f32 %v2549_v49, %v1172_v2 }
 0x12a   : > { %v1957_v28 = vpop.eup %1956 }
 0x12b   : > { %v1222_v24 = vpop.permute.xlu1 %1221  ;;  %v2566_v5 = vpop.permute.xlu0 %1216 }
 0x12c   : > { %v1235_v50 = vadd.f32 %v1222_v24, %v1203_v62  ;;  %v1239_v11 = vadd.f32 %v1222_v24, %v1207_v63  ;;  %v1234_v22 = vadd.f32 %v2566_v5, %v1202_v36  ;;  %v1208_v24 = vmul.f32 %v2549_v49, %v1176_v39  ;;  %v1959_v32 = vpop.eup %1958 }
 0x12d   : > { %v1238_v42 = vadd.f32 %v2566_v5, %v1206_v7  ;;  %v1961_v47 = vpop.eup %1960  ;;  %v959_v36 = vmul.f32 0.5, %v2562_v58  ;;  %v963_v7 = vadd.f32 0.5, %v955_v54  ;;  %v961_v39 = vmul.f32 0.5, %v2599_v10 }
 0x12e   : > { %v956_v10 = vmul.f32 0.5, %v2604_v18 }
 0x12f   : > { %v2576_v26 = vpop.permute.xlu1 %1231  ;;  %v2578_v44 = vpop.permute.xlu0 %1226 }
 0x130   : > { %v1237_v8 = vadd.f32 %v2576_v26, %v1205_v16  ;;  %v1241_v43 = vadd.f32 %v2576_v26, %v1209_v51  ;;  %v1236_v49 = vadd.f32 %v2578_v44, %v1204_v21  ;;  %v1240_v55 = vadd.f32 %v2578_v44, %v1208_v24 }
 0x131   : > { %v958_v44 = vmul.f32 0.5, %v2573_v33  ;;  %v969_v51 = vadd.f32 0.5, %v961_v39 }
 0x133   : > { %v1262_v48 = vpop.permute.xlu1 %1261  ;;  %v1257_v57 = vpop.permute.xlu0 %1256  ;;  %v966_v33 = vadd.f32 0.5, %v958_v44 }
 0x134   : > { %v1275_v3 = vmul.f32 %v1262_v48, %v1243_v52  ;;  %v1279_v4 = vmul.f32 %v1262_v48, %v1247_v53  ;;  %v1274_v9 = vmul.f32 %v1257_v57, %v1242_v56  ;;  %v1278_v12 = vmul.f32 %v1257_v57, %v1246_v60  ;;  %v1963_v53 = vpop.eup %1962 }
 0x135   : > { %v1965_v48 = vpop.eup %1964  ;;  %v954_v60 = vmul.f32 0.5, %v2568_v27  ;;  %v957_v27 = vmul.f32 0.5, %v2589_v61  ;;  %v974_v61 = vld [vmem:[%s2289_s24 + $0x20] sm:$0xff] }
 0x136   : > { %v1283_v25 = vadd.f32 %v1275_v3, %v1235_v50  ;;  %v1287_v59 = vadd.f32 %v1279_v4, %v1239_v11  ;;  %v1282_v6 = vadd.f32 %v1274_v9, %v1234_v22  ;;  %v1286_v19 = vadd.f32 %v1278_v12, %v1238_v42  ;;  %v1967_v1 = vpop.eup %1966  ;;  %v971_v50 = vld [vmem:[%s2289_s24 + $0x8] sm:$0xff] }
 0x137   : > { %v1272_v14 = vpop.permute.xlu1 %1271  ;;  %v1267_v17 = vpop.permute.xlu0 %1266  ;;  %v1155_v9 = vmul.f32 0.5, %v1957_v28  ;;  %v962_v11 = vadd.f32 0.5, %v954_v60  ;;  %v1159_v12 = vmul.f32 0.5, %v1959_v32  ;;  %v965_v58 = vadd.f32 0.5, %v957_v27  ;;  %v976_v60 = vld [vmem:[%s2289_s24 + $0x30] sm:$0xff] }
 0x138   : > { %v1277_v30 = vmul.f32 %v1272_v14, %v1245_v13  ;;  %v1281_v31 = vmul.f32 %v1272_v14, %v1249_v37  ;;  %v1276_v29 = vmul.f32 %v1267_v17, %v1244_v40  ;;  %v1280_v41 = vmul.f32 %v1267_v17, %v1248_v38  ;;  %v1969_v3 = vpop.eup %1968  ;;  %v970_v37 = vld [vmem:[%s2289_s24] sm:$0xff]  ;;  %v975_v38 = vld [vmem:[%s2289_s24 + $0x28] sm:$0xff] }
 0x139   : > { %v1154_v13 = vmul.f32 0.5, %v1961_v47  ;;  %v967_v14 = vadd.f32 0.5, %v959_v36  ;;  %v1158_v40 = vmul.f32 0.5, %v1963_v53  ;;  %v979_v17 = vmul.f32 %v971_v50, %v963_v7  ;;  %v1971_v16 = vpop.eup %1970 }
 0x13a   : > { %v1285_v26 = vadd.f32 %v1277_v30, %v1237_v8  ;;  %v1289_v56 = vadd.f32 %v1281_v31, %v1241_v43  ;;  %v1284_v57 = vadd.f32 %v1276_v29, %v1236_v49  ;;  %v1288_v63 = vadd.f32 %v1280_v41, %v1240_v55  ;;  %v973_v41 = vld [vmem:[%s2289_s24 + $0x18] sm:$0xff] }
 0x13b   : > { %v1302_v45 = vpop.permute.xlu1 %1301  ;;  %v1297_v46 = vpop.permute.xlu0 %1296  ;;  %v1163_v21 = vadd.f32 0.5, %v1155_v9  ;;  %v1157_v22 = vmul.f32 0.5, %v1965_v48  ;;  %v960_v42 = vmul.f32 0.5, %v2611_v23  ;;  %v978_v28 = vmul.f32 %v970_v37, %v962_v11  ;;  %v1437_v37 = vld [vmem:[%s2841_s3 + $0x50] sm:$0xff] }
 0x13c   : > { %v1315_v5 = vadd.f32 %v1302_v45, %v1283_v25  ;;  %v1319_v34 = vadd.f32 %v1302_v45, %v1287_v59  ;;  %v1314_v52 = vadd.f32 %v1297_v46, %v1282_v6  ;;  %v1318_v35 = vadd.f32 %v1297_v46, %v1286_v19 }
 0x13d   : > { %v1167_v25 = vadd.f32 0.5, %v1159_v12  ;;  %v1161_v59 = vmul.f32 0.5, %v1967_v1  ;;  %v1162_v31 = vadd.f32 0.5, %v1154_v13  ;;  %v1156_v29 = vmul.f32 0.5, %v1969_v3 }
 0x13e   : > { %1972 = vtanh.f32 %v1315_v5  ;;  %v982_v32 = vmul.f32 %v974_v61, %v966_v33  ;;  %v1166_v43 = vadd.f32 0.5, %v1158_v40  ;;  %v1160_v18 = vmul.f32 0.5, %v1971_v16  ;;  %v1470_v40 = vld [vmem:[%s2842_s4 + $0x58] sm:$0xff]  ;;  %v1508_v61 = vld [vmem:[%s2843_s5 + $0x48] sm:$0xff]  ;;  %v1467_v16 = vld [vmem:[%s2842_s4 + $0x40] sm:$0xff] }
 0x13f   : > { %1974 = vtanh.f32 %v1319_v34  ;;  %v1312_v62 = vpop.permute.xlu1 %1311  ;;  %v1307_v0 = vpop.permute.xlu0 %1306  ;;  %v983_v45 = vmul.f32 %v975_v38, %v967_v14  ;;  %v964_v47 = vadd.f32 0.5, %v956_v10  ;;  %v1165_v23 = vadd.f32 0.5, %v1157_v22  ;;  %v977_v34 = vld [vmem:[%s2289_s24 + $0x38] sm:$0xff]  ;;  %v1469_v10 = vld [vmem:[%s2842_s4 + $0x50] sm:$0xff]  ;;  %v1507_v22 = vld [vmem:[%s2843_s5 + $0x40] sm:$0xff] }
 0x140   : > { %1976 = vtanh.f32 %v1314_v52  ;;  %v1317_v2 = vadd.f32 %v1312_v62, %v1285_v26  ;;  %v1321_v15 = vadd.f32 %v1312_v62, %v1289_v56  ;;  %v1316_v20 = vadd.f32 %v1307_v0, %v1284_v57  ;;  %v1438_v14 = vld [vmem:[%s2841_s3 + $0x58] sm:$0xff] }
 0x141   : > { %1978 = vtanh.f32 %v1318_v35  ;;  %v1320_v4 = vadd.f32 %v1307_v0, %v1288_v63  ;;  %v968_v53 = vadd.f32 0.5, %v960_v42  ;;  %v1169_v54 = vadd.f32 0.5, %v1161_v59  ;;  %v972_v35 = vld [vmem:[%s2289_s24 + $0x10] sm:$0xff]  ;;  %v1550_v38 = vld [vmem:[%s2844_s6 + $0x58] sm:$0xff]  ;;  %v1547_v42 = vld [vmem:[%s2844_s6 + $0x40] sm:$0xff] }
 0x142   : > { %1980 = vtanh.f32 %v1317_v2  ;;  %v1164_v56 = vadd.f32 0.5, %v1156_v29  ;;  %v981_v62 = vmul.f32 %v973_v41, %v965_v58  ;;  %v1168_v1 = vadd.f32 0.5, %v1160_v18  ;;  %v1468_v58 = vld [vmem:[%s2842_s4 + $0x48] sm:$0xff] }
 0x143   : > { %1982 = vtanh.f32 %v1321_v15  ;;  %v985_v15 = vmul.f32 %v977_v34, %v969_v51  ;;  %v980_v44 = vmul.f32 %v972_v35, %v964_v47  ;;  %v984_v7 = vmul.f32 %v976_v60, %v968_v53  ;;  %v1510_v51 = vld [vmem:[%s2843_s5 + $0x58] sm:$0xff]  ;;  %v2700_v29 = vpop.permute.xlu1 %1441  ;;  %v1355_v34 = vld [vmem:[%s2847_s9 + $0x8] sm:$0xff] }
 0x144   : > { %1984 = vtanh.f32 %v1316_v20  ;;  %v1357_v35 = vld [vmem:[%s2847_s9 + $0x18] sm:$0xff] }
 0x145   : > { %1986 = vtanh.f32 %v1320_v4 }
 0x148   : > { %v1973_v24 = vpop.eup %1972 }
 0x149   : > { %v1975_v30 = vpop.eup %1974  ;;  %v1331_v6 = vmul.f32 %v1973_v24, %v1163_v21  ;;  %v1548_v21 = vld [vmem:[%s2844_s6 + $0x48] sm:$0xff]  ;;  %v1509_v24 = vld [vmem:[%s2843_s5 + $0x50] sm:$0xff] }
 0x14a   : > { %v1977_v8 = vpop.eup %1976  ;;  %v1335_v19 = vmul.f32 %v1975_v30, %v1167_v25  ;;  %v1549_v25 = vld [vmem:[%s2844_s6 + $0x50] sm:$0xff] }
 0x14b   : > { %v1979_v46 = vpop.eup %1978  ;;  %v1339_v49 = vadd.f32 %v1331_v6, %v979_v17  ;;  %v1330_v5 = vmul.f32 %v1977_v8, %v1162_v31  ;;  %v1436_v17 = vld [vmem:[%s2841_s3 + $0x48] sm:$0xff]  ;;  %v1354_v8 = vld [vmem:[%s2847_s9] sm:$0xff] }
 0x14c   : > { %v1981_v52 = vpop.eup %1980  ;;  %v1334_v55 = vmul.f32 %v1979_v46, %v1166_v43  ;;  %v2634_v48 = vadd.f32 %v1335_v19, %v983_v45  ;;  %v1356_v19 = vld [vmem:[%s2847_s9 + $0x10] sm:$0xff] }
 0x14d   : > { %v1983_v26 = vpop.eup %1982  ;;  %1360 = vadd.xlane.f32.xlu1 %v1339_v49  ;;  %1347 = vst [vmem:[%s2291_s25 + $0x8] sm:$0xff] %v1339_v49  ;;  %v1338_v57 = vadd.f32 %v1330_v5, %v978_v28  ;;  %v1333_v63 = vmul.f32 %v1981_v52, %v1165_v23  ;;  %v1392_v33 = vmul.f32 %v1339_v49, %v1339_v49 }
 0x14e   : > { %v1985_v0 = vpop.eup %1984  ;;  %v2638_v2 = vadd.f32 %v1334_v55, %v982_v32  ;;  %1351 = vst [vmem:[%s2291_s25 + $0x28] sm:$0xff] %v2634_v48  ;;  %v1337_v20 = vmul.f32 %v1983_v26, %v1169_v54  ;;  %v1396_v59 = vmul.f32 %v2634_v48, %v2634_v48 }
 0x14f   : > { %v1987_v3 = vpop.eup %1986  ;;  %1358 = vadd.xlane.f32.xlu0 %v1338_v57  ;;  %1346 = vst [vmem:[%s2291_s25] sm:$0xff] %v1338_v57  ;;  %v1332_v4 = vmul.f32 %v1985_v0, %v1164_v56  ;;  %v1341_v36 = vadd.f32 %v1333_v63, %v981_v62  ;;  %v1391_v11 = vmul.f32 %v1338_v57, %v1338_v57 }
 0x150   : > { %1350 = vst [vmem:[%s2291_s25 + $0x20] sm:$0xff] %v2638_v2  ;;  %v1336_v27 = vmul.f32 %v1987_v3, %v1168_v1  ;;  %v1345_v39 = vadd.f32 %v1337_v20, %v985_v15  ;;  %v1395_v28 = vmul.f32 %v2638_v2, %v2638_v2  ;;  %v1432_v15 = vld [vmem:[%s2285_s19 + $0xc8] sm:$0xff] }
 0x151   : > { %1366 = vadd.xlane.f32.xlu1 %v2638_v2  ;;  %v1340_v9 = vadd.f32 %v1332_v4, %v980_v44  ;;  %1349 = vst [vmem:[%s2291_s25 + $0x18] sm:$0xff] %v1341_v36  ;;  %v1394_v13 = vmul.f32 %v1341_v36, %v1341_v36  ;;  %v1428_v2 = vld [vmem:[%s2285_s19 + $0x48] sm:$0xff] }
 0x152   : > { %v1344_v50 = vadd.f32 %v1336_v27, %v984_v7  ;;  %1353 = vst [vmem:[%s2291_s25 + $0x38] sm:$0xff] %v1345_v39  ;;  %v1398_v31 = vmul.f32 %v1345_v39, %v1345_v39  ;;  %v1500_v3 = vld [vmem:[%s2287_s23 + $0x48] sm:$0xff] }
 0x153   : > { %1348 = vst [vmem:[%s2291_s25 + $0x10] sm:$0xff] %v1340_v9  ;;  %1362 = vadd.xlane.f32.xlu0 %v1340_v9  ;;  %v1393_v12 = vmul.f32 %v1340_v9, %v1340_v9  ;;  %v1504_v44 = vld [vmem:[%s2287_s23 + $0xc8] sm:$0xff]  ;;  %v1434_v9 = vld [vmem:[%s2285_s19 + $0xd8] sm:$0xff] }
 0x154   : > { %1352 = vst [vmem:[%s2291_s25 + $0x30] sm:$0xff] %v1344_v50  ;;  %v1397_v30 = vmul.f32 %v1344_v50, %v1344_v50 }
 0x155   : > { %1370 = vadd.xlane.f32.xlu1 %v1344_v50 }
 0x157   : > { %1364 = vadd.xlane.f32.xlu0 %v1341_v36 }
 0x159   : > { %1399 = vadd.xlane.f32.xlu1 %v1391_v11 }
 0x15b   : > { %1368 = vadd.xlane.f32.xlu0 %v2634_v48 }
 0x15d   : > { %1403 = vadd.xlane.f32.xlu1 %v1393_v12  ;;  %v1502_v12 = vld [vmem:[%s2287_s23 + $0x58] sm:$0xff] }
 0x15f   : > { %1372 = vadd.xlane.f32.xlu0 %v1345_v39  ;;  %v1430_v39 = vld [vmem:[%s2285_s19 + $0x58] sm:$0xff] }
 0x163   : > { %1401 = vadd.xlane.f32.xlu0 %v1392_v33  ;;  %v1506_v33 = vld [vmem:[%s2287_s23 + $0xd8] sm:$0xff] }
 0x167   : > { %1405 = vadd.xlane.f32.xlu0 %v1394_v13 }
 0x16e   : > { %1451 = vperm.xlu1 %1939, %v1437_v37  }
 0x172   : > { %1456 = vperm.xlu1 %1939, %v1438_v14  }
 0x176   : > { %1478 = vperm.xlu1 %1939, %v1468_v58  }
 0x17a   : > { %1488 = vperm.xlu1 %1939, %v1470_v40  }
 0x17d   : > { %1446 = vperm.xlu0 %1938, %v1436_v17  }
 0x17e   : > { %1518 = vperm.xlu1 %1939, %v1508_v61  }
 0x181   : > { %1473 = vperm.xlu0 %1938, %v1467_v16  }
 0x182   : > { %1528 = vperm.xlu1 %1939, %v1510_v51  }
 0x185   : > { %1483 = vperm.xlu0 %1938, %v1469_v10  }
 0x186   : > { %1558 = vperm.xlu1 %1939, %v1548_v21  }
 0x189   : > { %1513 = vperm.xlu0 %1938, %v1507_v22   ;;  %v1427_v22 = vld [vmem:[%s2285_s19 + $0x40] sm:$0xff] }
 0x18a   : > { %1568 = vperm.xlu1 %1939, %v1550_v38   ;;  %v1431_v38 = vld [vmem:[%s2285_s19 + $0xc0] sm:$0xff] }
 0x18d   : > { %1523 = vperm.xlu0 %1938, %v1509_v24  }
 0x191   : > { %1553 = vperm.xlu0 %1938, %v1547_v42  }
 0x195   : > { %1563 = vperm.xlu0 %1938, %v1549_v25   ;;  %v1499_v25 = vld [vmem:[%s2287_s23 + $0x40] sm:$0xff] }
 0x1ae   : > { %1409 = vadd.xlane.f32.xlu1 %v1396_v59 }
 0x1b4   : > { %1407 = vadd.xlane.f32.xlu0 %v1395_v28 }
 0x1b8   : > { %1411 = vadd.xlane.f32.xlu0 %v1397_v30  ;;  %v1503_v30 = vld [vmem:[%s2287_s23 + $0xc0] sm:$0xff] }
 0x1bc   : > { %1413 = vadd.xlane.f32.xlu0 %v1398_v31 }
 0x1da   : > { %v1361_v6 = vpop.xlane.xlu1 %1360 }
 0x1dc   : > { %v1359_v32 = vpop.xlane.xlu0 %1358 }
 0x1de   : > { %v1367_v43 = vpop.xlane.xlu1 %1366 }
 0x1df   : > { %v1374_v18 = vadd.f32 %v1367_v43, %v1359_v32 }
 0x1e0   : > { %v1363_v41 = vpop.xlane.xlu0 %1362 }
 0x1e1   : > { %v1378_v45 = vadd.f32 %v1374_v18, %v1354_v8  ;;  %v1459_v18 = vmul.f32 %v2700_v29, %v1427_v22 }
 0x1e2   : > { %v1371_v46 = vpop.xlane.xlu1 %1370 }
 0x1e3   : > { %1383 = vst.msk [vmem:[%s2847_s9] sm:$0xff] %vm1382_vm1, %v1378_v45  ;;  %v1376_v47 = vadd.f32 %v1371_v46, %v1363_v41  ;;  %v1463_v41 = vmul.f32 %v2700_v29, %v1431_v38  ;;  %v1429_v46 = vld [vmem:[%s2285_s19 + $0x50] sm:$0xff] }
 0x1e4   : > { %v1365_v23 = vpop.xlane.xlu0 %1364 }
 0x1e5   : > { %v1380_v49 = vadd.f32 %v1376_v47, %v1356_v19  ;;  %v1433_v47 = vld [vmem:[%s2285_s19 + $0xd0] sm:$0xff] }
 0x1e6   : > { %v2712_v5 = vpop.xlane.xlu1 %1399 }
 0x1e7   : > { %1385 = vst.msk [vmem:[%s2847_s9 + $0x10] sm:$0xff] %vm1382_vm1, %v1380_v49 }
 0x1e8   : > { %v1369_v52 = vpop.xlane.xlu0 %1368 }
 0x1e9   : > { %v1375_v53 = vadd.f32 %v1369_v52, %v1361_v6 }
 0x1ea   : > { %v2721_v54 = vpop.xlane.xlu1 %1403 }
 0x1eb   : > { %v1379_v55 = vadd.f32 %v1375_v53, %v1355_v34  ;;  %v1501_v53 = vld [vmem:[%s2287_s23 + $0x50] sm:$0xff] }
 0x1ec   : > { %v1373_v48 = vpop.xlane.xlu0 %1372 }
 0x1ed   : > { %1384 = vst.msk [vmem:[%s2847_s9 + $0x8] sm:$0xff] %vm1382_vm1, %v1379_v55  ;;  %v1377_v26 = vadd.f32 %v1373_v48, %v1365_v23  ;;  %v1505_v55 = vld [vmem:[%s2287_s23 + $0xd0] sm:$0xff]  ;;  %s1908_s23 = sshll.u32 (%p2120_p5), %s2101_s16, 3 }
 0x1ee   : > { %v2730_v56 = vpop.permute.xlu1 %1451  ;;  %s1631_s13 = scalar_lea.vmem (%p2120_p5), %s2845_s7, %s1908_s23 }
 0x1ef   : > { %v1381_v57 = vadd.f32 %v1377_v26, %v1357_v35  ;;  %v1465_v29 = vmul.f32 %v2730_v56, %v1433_v47 }
 0x1f0   : > { %v2736_v60 = vpop.xlane.xlu0 %1401 }
 0x1f1   : > { %1386 = vst.msk [vmem:[%s2847_s9 + $0x18] sm:$0xff] %vm1382_vm1, %v1381_v57 }
 0x1f2   : > { %v1457_v62 = vpop.permute.xlu1 %1456 }
 0x1f3   : > { %v1462_v58 = vmul.f32 %v1457_v62, %v1430_v39  ;;  %v1466_v40 = vmul.f32 %v1457_v62, %v1434_v9  ;;  %v1461_v62 = vmul.f32 %v2730_v56, %v1429_v46  ;;  %v1387_v46 = vld [vmem:[%s2848_s10] sm:$0xff] }
 0x1f4   : > { %v2738_v0 = vpop.xlane.xlu0 %1405 }
 0x1f6   : > { %v1479_v63 = vpop.permute.xlu1 %1478 }
 0x1fa   : > { %v1489_v1 = vpop.permute.xlu1 %1488 }
 0x1fb   : > { %v1494_v24 = vadd.f32 %v1489_v1, %v1462_v58  ;;  %v1498_v42 = vadd.f32 %v1489_v1, %v1466_v40 }
 0x1fc   : > { %v1447_v20 = vpop.permute.xlu0 %1446 }
 0x1fd   : > { %v1460_v36 = vmul.f32 %v1447_v20, %v1428_v2  ;;  %v1464_v7 = vmul.f32 %v1447_v20, %v1432_v15 }
 0x1fe   : > { %v1519_v4 = vpop.permute.xlu1 %1518 }
 0x1ff   : > { %v1532_v50 = vmul.f32 %v1519_v4, %v1500_v3  ;;  %v1536_v11 = vmul.f32 %v1519_v4, %v1504_v44  ;;  %v1492_v37 = vadd.f32 %v1479_v63, %v1460_v36  ;;  %v1496_v14 = vadd.f32 %v1479_v63, %v1464_v7 }
 0x200   : > { %v1474_v27 = vpop.permute.xlu0 %1473 }
 0x201   : > { %v1540_v51 = vadd.f32 %v1532_v50, %v1492_v37  ;;  %v1544_v10 = vadd.f32 %v1536_v11, %v1496_v14  ;;  %v1491_v52 = vadd.f32 %v1474_v27, %v1459_v18  ;;  %v1495_v48 = vadd.f32 %v1474_v27, %v1463_v41  ;;  %v1388_v18 = vld [vmem:[%s2848_s10 + $0x8] sm:$0xff] }
 0x202   : > { %v1529_v13 = vpop.permute.xlu1 %1528 }
 0x203   : > { %v1534_v61 = vmul.f32 %v1529_v13, %v1502_v12  ;;  %v1538_v16 = vmul.f32 %v1529_v13, %v1506_v33 }
 0x204   : > { %v1484_v17 = vpop.permute.xlu0 %1483 }
 0x205   : > { %v1542_v8 = vadd.f32 %v1534_v61, %v1494_v24  ;;  %v1546_v43 = vadd.f32 %v1538_v16, %v1498_v42  ;;  %v1493_v3 = vadd.f32 %v1484_v17, %v1461_v62  ;;  %v1497_v44 = vadd.f32 %v1484_v17, %v1465_v29  ;;  %v1681_v62 = vld [vmem:[%s2291_s25 + $0x20] sm:$0xff] (%p2120_p5)  ;;  %v1683_v29 = vld [vmem:[%s2291_s25 + $0x28] sm:$0xff] (%p2120_p5) }
 0x206   : > { %v1559_v21 = vpop.permute.xlu1 %1558  ;;  %1682 = vst [vmem:[%s1631_s13 + $0x40] sm:$0xff] (%p2120_p5), %v1681_v62  ;;  %1684 = vst [vmem:[%s1631_s13 + $0x50] sm:$0xff] (%p2120_p5), %v1683_v29 }
 0x207   : > { %v1572_v59 = vadd.f32 %v1559_v21, %v1540_v51  ;;  %v1576_v28 = vadd.f32 %v1559_v21, %v1544_v10 }
 0x208   : > { %v1514_v31 = vpop.permute.xlu0 %1513 }
 0x209   : > { %v1580_v6 = vmul.f32 0.5, %v1572_v59  ;;  %v1584_v32 = vmul.f32 0.5, %v1576_v28  ;;  %v1531_v45 = vmul.f32 %v1514_v31, %v1499_v25  ;;  %v1535_v23 = vmul.f32 %v1514_v31, %v1503_v30 }
 0x20a   : > { %v1569_v19 = vpop.permute.xlu1 %1568 }
 0x20b   : > { %1988 = vtanh.f32 %v1580_v6  ;;  %v1574_v49 = vadd.f32 %v1569_v19, %v1542_v8  ;;  %v1578_v34 = vadd.f32 %v1569_v19, %v1546_v43  ;;  %v1539_v63 = vadd.f32 %v1531_v45, %v1491_v52 }
 0x20c   : > { %1990 = vtanh.f32 %v1584_v32  ;;  %v1524_v35 = vpop.permute.xlu0 %1523  ;;  %v1543_v15 = vadd.f32 %v1535_v23, %v1495_v48 }
 0x20d   : > { %v1582_v26 = vmul.f32 0.5, %v1574_v49  ;;  %v1586_v57 = vmul.f32 0.5, %v1578_v34  ;;  %v1533_v1 = vmul.f32 %v1524_v35, %v1501_v53  ;;  %v1537_v2 = vmul.f32 %v1524_v35, %v1505_v55  ;;  %v1389_v34 = vld [vmem:[%s2848_s10 + $0x10] sm:$0xff]  ;;  %v1390_v55 = vld [vmem:[%s2848_s10 + $0x18] sm:$0xff] }
 0x20f   : > { %1992 = vtanh.f32 %v1582_v26  ;;  %v1541_v27 = vadd.f32 %v1533_v1, %v1493_v3  ;;  %v1545_v9 = vadd.f32 %v1537_v2, %v1497_v44  ;;  %v1677_v26 = vld [vmem:[%s2291_s25 + $0x10] sm:$0xff] (%p2120_p5)  ;;  %v1687_v1 = vld [vmem:[%s2291_s25 + $0x38] sm:$0xff] (%p2120_p5) }
 0x210   : > { %1994 = vtanh.f32 %v1586_v57  ;;  %v1554_v20 = vpop.permute.xlu0 %1553  ;;  %v1679_v57 = vld [vmem:[%s2291_s25 + $0x18] sm:$0xff] (%p2120_p5)  ;;  %1678 = vst [vmem:[%s1631_s13 + $0x20] sm:$0xff] (%p2120_p5), %v1677_v26  ;;  %1688 = vst [vmem:[%s1631_s13 + $0x70] sm:$0xff] (%p2120_p5), %v1687_v1 }
 0x211   : > { %v1571_v4 = vadd.f32 %v1554_v20, %v1539_v63  ;;  %v1575_v36 = vadd.f32 %v1554_v20, %v1543_v15  ;;  %1680 = vst [vmem:[%s1631_s13 + $0x30] sm:$0xff] (%p2120_p5), %v1679_v57  ;;  %v1685_v63 = vld [vmem:[%s2291_s25 + $0x30] sm:$0xff] (%p2120_p5) }
 0x212   : > { %1686 = vst [vmem:[%s1631_s13 + $0x60] sm:$0xff] (%p2120_p5), %v1685_v63 }
 0x213   : > { %v1579_v7 = vmul.f32 0.5, %v1571_v4  ;;  %v1583_v39 = vmul.f32 0.5, %v1575_v36 }
 0x214   : > { %v1564_v50 = vpop.permute.xlu0 %1563 }
 0x215   : > { %v1989_v11 = vpop.eup %1988  ;;  %1996 = vtanh.f32 %v1579_v7  ;;  %v1573_v56 = vadd.f32 %v1564_v50, %v1541_v27  ;;  %v1577_v12 = vadd.f32 %v1564_v50, %v1545_v9 }
 0x216   : > { %v1991_v33 = vpop.eup %1990  ;;  %v1596_v13 = vmul.f32 0.5, %v1989_v11  ;;  %1998 = vtanh.f32 %v1583_v39 }
 0x217   : > { %v1600_v37 = vmul.f32 0.5, %v1991_v33  ;;  %v1581_v14 = vmul.f32 0.5, %v1573_v56  ;;  %v1585_v58 = vmul.f32 0.5, %v1577_v12 }
 0x218   : > { %v1604_v40 = vadd.f32 0.5, %v1596_v13 }
 0x219   : > { %v1993_v17 = vpop.eup %1992  ;;  %v1608_v61 = vadd.f32 0.5, %v1600_v37  ;;  %2000 = vtanh.f32 %v1581_v14 }
 0x21a   : > { %v1995_v16 = vpop.eup %1994  ;;  %1612 = vst [vmem:[%s2293_s26 + $0x8] sm:$0xff] %v1604_v40  ;;  %v1598_v51 = vmul.f32 0.5, %v1993_v17  ;;  %2002 = vtanh.f32 %v1585_v58 }
 0x21b   : > { %1616 = vst [vmem:[%s2293_s26 + $0x28] sm:$0xff] %v1608_v61  ;;  %v1602_v10 = vmul.f32 0.5, %v1995_v16 }
 0x21c   : > { %v1606_v21 = vadd.f32 0.5, %v1598_v51 }
 0x21d   : > { %v1610_v22 = vadd.f32 0.5, %v1602_v10 }
 0x21e   : > { %1614 = vst [vmem:[%s2293_s26 + $0x18] sm:$0xff] %v1606_v21 }
 0x21f   : > { %v1997_v38 = vpop.eup %1996  ;;  %1618 = vst [vmem:[%s2293_s26 + $0x38] sm:$0xff] %v1610_v22 }
 0x220   : > { %v1999_v24 = vpop.eup %1998  ;;  %v1595_v42 = vmul.f32 0.5, %v1997_v38 }
 0x221   : > { %v1599_v25 = vmul.f32 0.5, %v1999_v24 }
 0x222   : > { %v1603_v59 = vadd.f32 0.5, %v1595_v42 }
 0x223   : > { %v2001_v28 = vpop.eup %2000  ;;  %v1607_v30 = vadd.f32 0.5, %v1599_v25 }
 0x224   : > { %v2003_v31 = vpop.eup %2002  ;;  %1611 = vst [vmem:[%s2293_s26] sm:$0xff] %v1603_v59  ;;  %v1597_v6 = vmul.f32 0.5, %v2001_v28 }
 0x225   : > { %1615 = vst [vmem:[%s2293_s26 + $0x20] sm:$0xff] %v1607_v30  ;;  %v1601_v32 = vmul.f32 0.5, %v2003_v31 }
 0x226   : > { %v1605_v8 = vadd.f32 0.5, %v1597_v6 }
 0x227   : > { %v1609_v43 = vadd.f32 0.5, %v1601_v32 }
 0x228   : > { %1613 = vst [vmem:[%s2293_s26 + $0x10] sm:$0xff] %v1605_v8 }
 0x229   : > { %1617 = vst [vmem:[%s2293_s26 + $0x30] sm:$0xff] %v1609_v43 }
 0x23b   : > { %v1410_v41 = vpop.xlane.xlu1 %1409 }
 0x23c   : > { %v1416_v45 = vadd.f32 %v1410_v41, %v2736_v60 }
 0x23e   : > { %v1420_v19 = vadd.f32 %v1416_v45, %v1388_v18 }
 0x240   : > { %1424 = vst.msk [vmem:[%s2848_s10 + $0x8] sm:$0xff] %vm1382_vm1, %v1420_v19 }
 0x241   : > { %v1408_v47 = vpop.xlane.xlu0 %1407 }
 0x242   : > { %v1415_v23 = vadd.f32 %v1408_v47, %v2712_v5 }
 0x244   : > { %v1419_v49 = vadd.f32 %v1415_v23, %v1387_v46 }
 0x245   : > { %v1412_v52 = vpop.xlane.xlu0 %1411 }
 0x246   : > { %1423 = vst.msk [vmem:[%s2848_s10] sm:$0xff] %vm1382_vm1, %v1419_v49  ;;  %v1417_v60 = vadd.f32 %v1412_v52, %v2721_v54  ;;  %v1673_v54 = vld [vmem:[%s2291_s25] sm:$0xff] (%p2120_p5) }
 0x247   : > { %1674 = vst [vmem:[%s1631_s13] sm:$0xff] (%p2120_p5), %v1673_v54 }
 0x248   : > { %v1421_v53 = vadd.f32 %v1417_v60, %v1389_v34  ;;  %1629 = sbr.rel (!%p2120_p5) target bundleno = 591 (0x24f), region = 170 }
 0x249   : > { %v1414_v35 = vpop.xlane.xlu0 %1413 }
 0x24a   : > { %1425 = vst.msk [vmem:[%s2848_s10 + $0x10] sm:$0xff] %vm1382_vm1, %v1421_v53  ;;  %v1418_v5 = vadd.f32 %v1414_v35, %v2738_v0  ;;  %v1675_v0 = vld [vmem:[%s2291_s25 + $0x8] sm:$0xff] (%p2120_p5) }
 0x24b   : > { %1676 = vst [vmem:[%s1631_s13 + $0x10] sm:$0xff] (%p2120_p5), %v1675_v0 }
 0x24c   : > { %v1422_v48 = vadd.f32 %v1418_v5, %v1390_v55 }
 0x24e   : > { %1426 = vst.msk [vmem:[%s2848_s10 + $0x18] sm:$0xff] %vm1382_vm1, %v1422_v48 }
 0x24f PF: > { %1694 = sbr.rel (!%p2120_p5) target bundleno = 598 (0x256), region = 208  ;;  %s1909_s28 = sshll.u32 (%p2120_p5), %s2101_s16, 3  ;;  %v1738_v2 = vld [vmem:[%s2293_s26] sm:$0xff] (%p2120_p5)  ;;  %v1740_v15 = vld [vmem:[%s2293_s26 + $0x8] sm:$0xff] (%p2120_p5)  ;;  %v1742_v20 = vld [vmem:[%s2293_s26 + $0x10] sm:$0xff] (%p2120_p5) }
 0x250   : > { %s1696_s30 = scalar_lea.vmem (%p2120_p5), %s2846_s8, %s1909_s28  ;;  %v1744_v3 = vld [vmem:[%s2293_s26 + $0x18] sm:$0xff] (%p2120_p5)  ;;  %v1746_v44 = vld [vmem:[%s2293_s26 + $0x20] sm:$0xff] (%p2120_p5)  ;;  %v1748_v4 = vld [vmem:[%s2293_s26 + $0x28] sm:$0xff] (%p2120_p5) }
 0x251   : > { %1739 = vst [vmem:[%s1696_s30] sm:$0xff] (%p2120_p5), %v1738_v2  ;;  %1741 = vst [vmem:[%s1696_s30 + $0x10] sm:$0xff] (%p2120_p5), %v1740_v15  ;;  %v1750_v36 = vld [vmem:[%s2293_s26 + $0x30] sm:$0xff] (%p2120_p5)  ;;  %v1752_v7 = vld [vmem:[%s2293_s26 + $0x38] sm:$0xff] (%p2120_p5) }
 0x252   : > { %1743 = vst [vmem:[%s1696_s30 + $0x20] sm:$0xff] (%p2120_p5), %v1742_v20  ;;  %1745 = vst [vmem:[%s1696_s30 + $0x30] sm:$0xff] (%p2120_p5), %v1744_v3 }
 0x253   : > { %1747 = vst [vmem:[%s1696_s30 + $0x40] sm:$0xff] (%p2120_p5), %v1746_v44  ;;  %1749 = vst [vmem:[%s1696_s30 + $0x50] sm:$0xff] (%p2120_p5), %v1748_v4 }
 0x254   : > { %1751 = vst [vmem:[%s1696_s30 + $0x60] sm:$0xff] (%p2120_p5), %v1750_v36  ;;  %1753 = vst [vmem:[%s1696_s30 + $0x70] sm:$0xff] (%p2120_p5), %v1752_v7 }
 0x256 PF: > { %p18_p11 = scmp.ge.s32.totalorder %s2104_s17, 4   ;;  %s2855_s13 = smov %s2022_s14 }
 0x257   : > { %s2856_s14 = smov %s2114_s20  ;;  %s2857_s15 = smov %s2104_s17 }
 0x258   :  { %20 = sbr.rel (!%p18_p11) target bundleno = 5 (0x5), region = 321 }

// kernel: lstm_cell_2d_bn_forward.3
= control target key start
LH: loop header
LB: loop body
LE: loop exit
PB: predicated region body
PF: predicated region fallthrough
CT: control target
= control target key end

     0   :  { %s2987_s13 = smov 0   ;;  %s2989_s14 = smov 0   ;;  %s4662_s0 = inlined_call_operand.vmem [shape: f32[2,32,256], index: 0, kind: input, shape index: {}]   ;;  %s4663_s1 = inlined_call_operand.vmem [shape: f32[128,32], index: 1, kind: input, shape index: {}]   ;;  %s4664_s2 = inlined_call_operand.vmem [shape: f32[128,1], index: 2, kind: input, shape index: {}]   ;;  %s4665_s3 = inlined_call_operand.vmem [shape: f32[2,8,256], index: 3, kind: input, shape index: {}]   ;;  %s4666_s4 = inlined_call_operand.vmem [shape: f32[128,8], index: 4, kind: input, shape index: {}]   ;;  %s4667_s5 = inlined_call_operand.vmem [shape: f32[2,128,256], index: 5, kind: output, shape index: {0}]   ;;  %s4668_s6 = inlined_call_operand.vmem [shape: f32[2,128,256], index: 6, kind: output, shape index: {1}]   ;;  %s4669_s7 = inlined_call_operand.vmem [shape: f32[128,1], index: 7, kind: output, shape index: {2}]   ;;  %s4670_s8 = inlined_call_operand.vmem [shape: f32[128,1], index: 8, kind: output, shape index: {3}]   ;;  %s4671_s9 = inlined_call_operand.vmem [shape: f32[128,1], index: 9, kind: output, shape index: {4}]   ;;  %s4672_s10 = inlined_call_operand.vmem [shape: f32[128,1], index: 10, kind: output, shape index: {5}]  }
   0x1   :  { %s2991_s15 = smov 0  }
   0x2 LB: > { %s3003_s16 = sadd.s32 4294967295, %s2928_s15   ;;  %s3006_s17 = sadd.s32 1, %s2928_s15   ;;  %s2928_s15 = sphi %s2991_s15, %s4677_s15   ;;  %s2924_s14 = sphi %s2989_s14, %s4676_s14   ;;  %s2920_s13 = sphi %s2987_s13, %s4675_s13  }
   0x3   : > { %s25_s18 = ssub.s32 %s2928_s15, %s3006_s17  ;;  %s28_s19 = sadd.s32 1, %s2924_s14 }
   0x4   : > { %p26_p0 = scmp.eq.s32.totalorder %s25_s18, 0  ;;  %p35_p1 = scmp.ne.s32.totalorder %s2924_s14, %s2920_s13 }
   0x5   : > { %p36_p2 = scmp.eq.s32.totalorder %s2928_s15, 0  ;;  %p154_p3 = scmp.eq.s32.totalorder %s3003_s16, 1 }
   0x6   : > { %s3016_s20 = scalar_select %p26_p0, %s2924_s14, %s28_s19  }
   0x7   : > { %p3018_p4 = por %p36_p2, %p35_p1  ;;  %p3022_p5 = por %p154_p3, %p35_p1 }
   0x8   : > { %p2554_p6 = scmp.ge.s32.totalorder %s2928_s15, 2 }
   0xa   : > { %295 = sbr.rel (%p2554_p6) target bundleno = 32 (0x20), region = 28 }
  0x11   : > { %298 = sbr.rel (!%p3018_p4) target bundleno = 25 (0x19), region = 32  ;;  %s300_s23 = sand.u32 (%p3018_p4), 1, %s2924_s14  }
  0x12   : > { %s2556_s24 = sshll.u32 (%p3018_p4), %s2928_s15, 3  ;;  %s2555_s25 = sshll.u32 (%p3018_p4), %s300_s23, 6 }
  0x13   : > { %s304_s28 = scalar_lea.vmem (%p3018_p4), %s4662_s0, %s2556_s24  ;;  %s302_s29 = scalar_lea.vmem (%p3018_p4), [#allocation2], %s2555_s25 }
  0x14   : > { %v346_v0 = vld [vmem:[%s304_s28] sm:$0xff] (%p3018_p4)  ;;  %v348_v1 = vld [vmem:[%s304_s28 + $0x10] sm:$0xff] (%p3018_p4) }
  0x15   : > { %v350_v2 = vld [vmem:[%s304_s28 + $0x20] sm:$0xff] (%p3018_p4)  ;;  %347 = vst [vmem:[%s302_s29] sm:$0xff] (%p3018_p4), %v346_v0  ;;  %349 = vst [vmem:[%s302_s29 + $0x8] sm:$0xff] (%p3018_p4), %v348_v1  ;;  %v352_v3 = vld [vmem:[%s304_s28 + $0x30] sm:$0xff] (%p3018_p4) }
  0x16   : > { %351 = vst [vmem:[%s302_s29 + $0x10] sm:$0xff] (%p3018_p4), %v350_v2  ;;  %v354_v4 = vld [vmem:[%s304_s28 + $0x40] sm:$0xff] (%p3018_p4)  ;;  %v356_v5 = vld [vmem:[%s304_s28 + $0x50] sm:$0xff] (%p3018_p4)  ;;  %353 = vst [vmem:[%s302_s29 + $0x18] sm:$0xff] (%p3018_p4), %v352_v3 }
  0x17   : > { %355 = vst [vmem:[%s302_s29 + $0x20] sm:$0xff] (%p3018_p4), %v354_v4  ;;  %357 = vst [vmem:[%s302_s29 + $0x28] sm:$0xff] (%p3018_p4), %v356_v5  ;;  %v358_v6 = vld [vmem:[%s304_s28 + $0x60] sm:$0xff] (%p3018_p4)  ;;  %v360_v7 = vld [vmem:[%s304_s28 + $0x70] sm:$0xff] (%p3018_p4) }
  0x18   : > { %359 = vst [vmem:[%s302_s29 + $0x30] sm:$0xff] %v358_v6  ;;  %361 = vst [vmem:[%s302_s29 + $0x38] sm:$0xff] %v360_v7 }
  0x19 PF: > { %367 = sbr.rel (!%p3018_p4) target bundleno = 32 (0x20), region = 70  ;;  %s369_s30 = sand.u32 (%p3018_p4), 1, %s2924_s14  }
  0x1a   : > { %s2558_s11 = sshll.u32 (%p3018_p4), %s2928_s15, 3  ;;  %s2557_s12 = sshll.u32 (%p3018_p4), %s369_s30, 4 }
  0x1b   : > { %s373_s23 = scalar_lea.vmem (%p3018_p4), %s4665_s3, %s2558_s11  ;;  %s371_s24 = scalar_lea.vmem (%p3018_p4), [#allocation3], %s2557_s12 }
  0x1c   : > { %v403_v8 = vld [vmem:[%s373_s23] sm:$0xff] (%p3018_p4)  ;;  %v405_v9 = vld [vmem:[%s373_s23 + $0x10] sm:$0xff] (%p3018_p4) }
  0x1d   : > { %404 = vst [vmem:[%s371_s24] sm:$0xff] (%p3018_p4), %v403_v8  ;;  %406 = vst [vmem:[%s371_s24 + $0x8] sm:$0xff] (%p3018_p4), %v405_v9 }
  0x20 PF: > { %p2559_p7 = scmp.ge.s32.totalorder %s2928_s15, 1  ;;  %p411_p8 = scmp.lt.s32.totalorder %s2928_s15, 3 }
  0x22   : > { %p412_p9 = pnand %p2559_p7, %p411_p8 }
  0x23   : > { %s418_s21 = sand.u32 (!%p412_p9), 1, %s2920_s13   ;;  %p2564_p10 = scmp.ne.s32.totalorder (!%p412_p9), %s3003_s16, 0 }
  0x24   : > { %415 = sbr.rel (%p412_p9) target bundleno = 721 (0x2d1), region = 108  ;;  %s2560_s25 = sshll.u32 (!%p412_p9), %s418_s21, 6 }
  0x25   : > { %s2561_s26 = sshll.u32 (!%p412_p9), %s418_s21, 4  ;;  %s2562_s27 = sshll.u32 (!%p412_p9), %s418_s21, 8 }
  0x26   : > { %s3044_s28 = scalar_lea.vmem (!%p412_p9), [#allocation2], %s2560_s25  ;;  %s3046_s29 = scalar_lea.vmem (!%p412_p9), [#allocation3], %s2561_s26 }
  0x27   : > { %s3048_s30 = scalar_lea.vmem (!%p412_p9), [#allocation4], %s2562_s27  ;;  %s3050_s11 = scalar_lea.vmem (!%p412_p9), [#allocation5], %s2562_s27 }
  0x2b   : > { %472 = sbr.rel (%p2564_p10) target bundleno = 76 (0x4c), region = 120  ;;  %vm473_vm0 = vcmask (!%p2564_p10), 7168   ;;  %v2930_v10 = vmov (!%p2564_p10), 0.0  }
  0x2c   : > { %474 = vst.msk [vmem:[%s4669_s7] sm:$0xff] (!%p2564_p10), %vm473_vm0, %v2930_v10  ;;  %475 = vst.msk [vmem:[%s4669_s7 + $0x8] sm:$0xff] (!%p2564_p10), %vm473_vm0, %v2930_v10 }
  0x2d   : > { %476 = vst.msk [vmem:[%s4669_s7 + $0x10] sm:$0xff] (!%p2564_p10), %vm473_vm0, %v2930_v10  ;;  %477 = vst.msk [vmem:[%s4669_s7 + $0x18] sm:$0xff] (!%p2564_p10), %vm473_vm0, %v2930_v10 }
  0x2e   : > { %478 = vst.msk [vmem:[%s4669_s7 + $0x20] sm:$0xff] (!%p2564_p10), %vm473_vm0, %v2930_v10  ;;  %479 = vst.msk [vmem:[%s4669_s7 + $0x28] sm:$0xff] (!%p2564_p10), %vm473_vm0, %v2930_v10 }
  0x2f   : > { %480 = vst.msk [vmem:[%s4669_s7 + $0x30] sm:$0xff] (!%p2564_p10), %vm473_vm0, %v2930_v10  ;;  %481 = vst.msk [vmem:[%s4669_s7 + $0x38] sm:$0xff] (!%p2564_p10), %vm473_vm0, %v2930_v10 }
  0x30   : > { %482 = vst.msk [vmem:[%s4669_s7 + $0x40] sm:$0xff] (!%p2564_p10), %vm473_vm0, %v2930_v10  ;;  %483 = vst.msk [vmem:[%s4669_s7 + $0x48] sm:$0xff] (!%p2564_p10), %vm473_vm0, %v2930_v10 }
  0x31   : > { %484 = vst.msk [vmem:[%s4669_s7 + $0x50] sm:$0xff] (!%p2564_p10), %vm473_vm0, %v2930_v10  ;;  %485 = vst.msk [vmem:[%s4669_s7 + $0x58] sm:$0xff] (!%p2564_p10), %vm473_vm0, %v2930_v10 }
  0x32   : > { %486 = vst.msk [vmem:[%s4669_s7 + $0x60] sm:$0xff] %vm473_vm0, %v2930_v10  ;;  %487 = vst.msk [vmem:[%s4669_s7 + $0x68] sm:$0xff] %vm473_vm0, %v2930_v10 }
  0x33   : > { %488 = vst.msk [vmem:[%s4669_s7 + $0x70] sm:$0xff] %vm473_vm0, %v2930_v10  ;;  %489 = vst.msk [vmem:[%s4669_s7 + $0x78] sm:$0xff] %vm473_vm0, %v2930_v10 }
  0x34   : > { %490 = vst.msk [vmem:[%s4670_s8] sm:$0xff] %vm473_vm0, %v2930_v10  ;;  %491 = vst.msk [vmem:[%s4670_s8 + $0x8] sm:$0xff] %vm473_vm0, %v2930_v10 }
  0x35   : > { %492 = vst.msk [vmem:[%s4670_s8 + $0x10] sm:$0xff] %vm473_vm0, %v2930_v10  ;;  %493 = vst.msk [vmem:[%s4670_s8 + $0x18] sm:$0xff] %vm473_vm0, %v2930_v10 }
  0x36   : > { %494 = vst.msk [vmem:[%s4670_s8 + $0x20] sm:$0xff] %vm473_vm0, %v2930_v10  ;;  %495 = vst.msk [vmem:[%s4670_s8 + $0x28] sm:$0xff] %vm473_vm0, %v2930_v10 }
  0x37   : > { %496 = vst.msk [vmem:[%s4670_s8 + $0x30] sm:$0xff] %vm473_vm0, %v2930_v10  ;;  %497 = vst.msk [vmem:[%s4670_s8 + $0x38] sm:$0xff] %vm473_vm0, %v2930_v10 }
  0x38   : > { %498 = vst.msk [vmem:[%s4670_s8 + $0x40] sm:$0xff] %vm473_vm0, %v2930_v10  ;;  %499 = vst.msk [vmem:[%s4670_s8 + $0x48] sm:$0xff] %vm473_vm0, %v2930_v10 }
  0x39   : > { %500 = vst.msk [vmem:[%s4670_s8 + $0x50] sm:$0xff] %vm473_vm0, %v2930_v10  ;;  %501 = vst.msk [vmem:[%s4670_s8 + $0x58] sm:$0xff] %vm473_vm0, %v2930_v10 }
  0x3a   : > { %502 = vst.msk [vmem:[%s4670_s8 + $0x60] sm:$0xff] %vm473_vm0, %v2930_v10  ;;  %503 = vst.msk [vmem:[%s4670_s8 + $0x68] sm:$0xff] %vm473_vm0, %v2930_v10 }
  0x3b   : > { %504 = vst.msk [vmem:[%s4670_s8 + $0x70] sm:$0xff] %vm473_vm0, %v2930_v10  ;;  %505 = vst.msk [vmem:[%s4670_s8 + $0x78] sm:$0xff] %vm473_vm0, %v2930_v10 }
  0x3c   : > { %506 = vst.msk [vmem:[%s4671_s9] sm:$0xff] %vm473_vm0, %v2930_v10  ;;  %507 = vst.msk [vmem:[%s4671_s9 + $0x8] sm:$0xff] %vm473_vm0, %v2930_v10 }
  0x3d   : > { %508 = vst.msk [vmem:[%s4671_s9 + $0x10] sm:$0xff] %vm473_vm0, %v2930_v10  ;;  %509 = vst.msk [vmem:[%s4671_s9 + $0x18] sm:$0xff] %vm473_vm0, %v2930_v10 }
  0x3e   : > { %510 = vst.msk [vmem:[%s4671_s9 + $0x20] sm:$0xff] %vm473_vm0, %v2930_v10  ;;  %511 = vst.msk [vmem:[%s4671_s9 + $0x28] sm:$0xff] %vm473_vm0, %v2930_v10 }
  0x3f   : > { %512 = vst.msk [vmem:[%s4671_s9 + $0x30] sm:$0xff] %vm473_vm0, %v2930_v10  ;;  %513 = vst.msk [vmem:[%s4671_s9 + $0x38] sm:$0xff] %vm473_vm0, %v2930_v10 }
  0x40   : > { %514 = vst.msk [vmem:[%s4671_s9 + $0x40] sm:$0xff] %vm473_vm0, %v2930_v10  ;;  %515 = vst.msk [vmem:[%s4671_s9 + $0x48] sm:$0xff] %vm473_vm0, %v2930_v10 }
  0x41   : > { %516 = vst.msk [vmem:[%s4671_s9 + $0x50] sm:$0xff] %vm473_vm0, %v2930_v10  ;;  %517 = vst.msk [vmem:[%s4671_s9 + $0x58] sm:$0xff] %vm473_vm0, %v2930_v10 }
  0x42   : > { %518 = vst.msk [vmem:[%s4671_s9 + $0x60] sm:$0xff] %vm473_vm0, %v2930_v10  ;;  %519 = vst.msk [vmem:[%s4671_s9 + $0x68] sm:$0xff] %vm473_vm0, %v2930_v10 }
  0x43   : > { %520 = vst.msk [vmem:[%s4671_s9 + $0x70] sm:$0xff] %vm473_vm0, %v2930_v10  ;;  %521 = vst.msk [vmem:[%s4671_s9 + $0x78] sm:$0xff] %vm473_vm0, %v2930_v10 }
  0x44   : > { %522 = vst.msk [vmem:[%s4672_s10] sm:$0xff] %vm473_vm0, %v2930_v10  ;;  %523 = vst.msk [vmem:[%s4672_s10 + $0x8] sm:$0xff] %vm473_vm0, %v2930_v10 }
  0x45   : > { %524 = vst.msk [vmem:[%s4672_s10 + $0x10] sm:$0xff] %vm473_vm0, %v2930_v10  ;;  %525 = vst.msk [vmem:[%s4672_s10 + $0x18] sm:$0xff] %vm473_vm0, %v2930_v10 }
  0x46   : > { %526 = vst.msk [vmem:[%s4672_s10 + $0x20] sm:$0xff] %vm473_vm0, %v2930_v10  ;;  %527 = vst.msk [vmem:[%s4672_s10 + $0x28] sm:$0xff] %vm473_vm0, %v2930_v10 }
  0x47   : > { %528 = vst.msk [vmem:[%s4672_s10 + $0x30] sm:$0xff] %vm473_vm0, %v2930_v10  ;;  %529 = vst.msk [vmem:[%s4672_s10 + $0x38] sm:$0xff] %vm473_vm0, %v2930_v10 }
  0x48   : > { %530 = vst.msk [vmem:[%s4672_s10 + $0x40] sm:$0xff] %vm473_vm0, %v2930_v10  ;;  %531 = vst.msk [vmem:[%s4672_s10 + $0x48] sm:$0xff] %vm473_vm0, %v2930_v10 }
  0x49   : > { %532 = vst.msk [vmem:[%s4672_s10 + $0x50] sm:$0xff] %vm473_vm0, %v2930_v10  ;;  %533 = vst.msk [vmem:[%s4672_s10 + $0x58] sm:$0xff] %vm473_vm0, %v2930_v10 }
  0x4a   : > { %534 = vst.msk [vmem:[%s4672_s10 + $0x60] sm:$0xff] %vm473_vm0, %v2930_v10  ;;  %535 = vst.msk [vmem:[%s4672_s10 + $0x68] sm:$0xff] %vm473_vm0, %v2930_v10 }
  0x4b   : > { %536 = vst.msk [vmem:[%s4672_s10 + $0x70] sm:$0xff] %vm473_vm0, %v2930_v10  ;;  %537 = vst.msk [vmem:[%s4672_s10 + $0x78] sm:$0xff] %vm473_vm0, %v2930_v10 }
  0x4c PF: > { %v570_v11 = vld [vmem:[%s3044_s28] sm:$0xff]  ;;  %v571_v12 = vld [vmem:[%s3044_s28 + $0x8] sm:$0xff]  ;;  %vm574_vm1 = vcmask 261120   ;;  %v572_v16 = vld [vmem:[%s3044_s28 + $0x10] sm:$0xff]  ;;  %v2931_v18 = vmov 0   ;;  %vm1401_vm2 = vcmask 64512  }
  0x4d   : > { %v2581_v13 = vld [vmem:[%s3044_s28 + $0x20] sm:$0xff]  ;;  %v2862_v14 = vpack.c.bf16 %v571_v12, %v570_v11  ;;  %v2582_v15 = vld [vmem:[%s3044_s28 + $0x28] sm:$0xff]  ;;  %v573_v17 = vld [vmem:[%s3044_s28 + $0x18] sm:$0xff]  ;;  %2904 = vset.pattern.permute.xlu0 %v2931_v18  ;;  %2905 = vset.pattern.permute.xlu1 %v2931_v18  ;;  %vm1319_vm3 = vcmask 7168   ;;  %s2668_s26 = sshll.u32 (%p3022_p5), %s3003_s16, 3 }
  0x4e   : > { %v2870_v19 = vpack.c.bf16 %v2582_v15, %v2581_v13  ;;  %v2866_v20 = vpack.c.bf16 %v573_v17, %v572_v16  ;;  %v2583_v21 = vld [vmem:[%s3044_s28 + $0x30] sm:$0xff]  ;;  %v2584_v22 = vld [vmem:[%s3044_s28 + $0x38] sm:$0xff]  ;;  %v538_v23 = vld [vmem:[%s4663_s1] sm:$0xff]  ;;  %s4517_s27 = scalar_lea.vmem (%p3022_p5), %s4667_s5, %s2668_s26 }
  0x4f   : > { %2863 = vmatprep.subr.bf16.mxu0 %v2862_v14  ;;  %v2874_v24 = vpack.c.bf16 %v2584_v22, %v2583_v21  ;;  %2754 = vmatprep.mubr.msk.f32.mxu0 %vm574_vm1, %v538_v23  ;;  %v539_v25 = vld [vmem:[%s4663_s1 + $0x8] sm:$0xff]  ;;  %v554_v26 = vld [vmem:[%s4664_s2] sm:$0xff]  ;;  %v556_v27 = vld [vmem:[%s4664_s2 + $0x10] sm:$0xff] }
  0x50   : > { %2871 = vmatprep.subr.bf16.mxu1 %v2870_v19  ;;  %2865 = vmatpush3.bf16.msra.mxu0 %v2862_v14  ;;  %v540_v28 = vld [vmem:[%s4663_s1 + $0x10] sm:$0xff]  ;;  %v2633_v30 = vld [vmem:[%s3046_s29 + $0x8] sm:$0xff]  ;;  %v542_v34 = vld [vmem:[%s4663_s1 + $0x20] sm:$0xff] }
  0x51   : > { %2873 = vmatpush3.bf16.msra.mxu1 %v2870_v19  ;;  %2867 = vmatprep.subr.bf16.mxu0 %v2866_v20  ;;  %v1400_v29 = vld [vmem:[%s3046_s29] sm:$0xff]  ;;  %v555_v31 = vld [vmem:[%s4664_s2 + $0x8] sm:$0xff]  ;;  %v557_v32 = vld [vmem:[%s4664_s2 + $0x18] sm:$0xff] }
  0x52   : > { %2875 = vmatprep.subr.bf16.mxu1 %v2874_v24  ;;  %2786 = vmatprep.mubr.msk.f32.mxu1 %vm574_vm1, %v538_v23  ;;  %v541_v33 = vld [vmem:[%s4663_s1 + $0x18] sm:$0xff]  ;;  %v558_v35 = vld [vmem:[%s4664_s2 + $0x20] sm:$0xff]  ;;  %v559_v36 = vld [vmem:[%s4664_s2 + $0x28] sm:$0xff] }
  0x53   : > { %770 = vperm.xlu0 %2904, %v554_v26   ;;  %780 = vperm.xlu1 %2905, %v556_v27   ;;  %v543_v37 = vld [vmem:[%s4663_s1 + $0x28] sm:$0xff]  ;;  %v544_v38 = vld [vmem:[%s4663_s1 + $0x30] sm:$0xff]  ;;  %v561_v40 = vld [vmem:[%s4664_s2 + $0x38] sm:$0xff] }
  0x54   : > { %2869 = vmatpush3.bf16.msra.mxu0 %v2866_v20  ;;  %v560_v39 = vld [vmem:[%s4664_s2 + $0x30] sm:$0xff]  ;;  %v545_v41 = vld [vmem:[%s4663_s1 + $0x38] sm:$0xff]  ;;  %v546_v42 = vld [vmem:[%s4663_s1 + $0x40] sm:$0xff] }
  0x55   : > { %2877 = vmatpush3.bf16.msra.mxu1 %v2874_v24  ;;  %2810 = vmatprep.subr.mxu0 %v1400_v29  ;;  %v562_v43 = vld [vmem:[%s4664_s2 + $0x40] sm:$0xff]  ;;  %v563_v44 = vld [vmem:[%s4664_s2 + $0x48] sm:$0xff]  ;;  %v548_v46 = vld [vmem:[%s4663_s1 + $0x50] sm:$0xff] }
  0x56   : > { %2836 = vmatprep.subr.mxu1 %v2633_v30  ;;  %v547_v45 = vld [vmem:[%s4663_s1 + $0x48] sm:$0xff]  ;;  %v564_v47 = vld [vmem:[%s4664_s2 + $0x50] sm:$0xff]  ;;  %v565_v48 = vld [vmem:[%s4664_s2 + $0x58] sm:$0xff] }
  0x57   : > { %2755 = vmatmul.mubr.msk.f32.vlgmr.msra.gmra.mrb[0].mxu0 %vm574_vm1, %v539_v25  ;;  %775 = vperm.xlu0 %2904, %v555_v31   ;;  %v549_v49 = vld [vmem:[%s4663_s1 + $0x58] sm:$0xff]  ;;  %v550_v50 = vld [vmem:[%s4663_s1 + $0x60] sm:$0xff]  ;;  %v567_v52 = vld [vmem:[%s4664_s2 + $0x68] sm:$0xff] }
  0x58   : > { %2787 = vmatmul.mubr.msk.f32.vlgmr.msra.gmra.mrb[0].mxu1 %vm574_vm1, %v539_v25  ;;  %2757 = vmatprep.mubr.msk.f32.mxu0 %vm574_vm1, %v540_v28  ;;  %v566_v51 = vld [vmem:[%s4664_s2 + $0x60] sm:$0xff]  ;;  %v551_v53 = vld [vmem:[%s4663_s1 + $0x68] sm:$0xff]  ;;  %v552_v54 = vld [vmem:[%s4663_s1 + $0x70] sm:$0xff] }
  0x59   : > { %2789 = vmatprep.mubr.msk.f32.mxu1 %vm574_vm1, %v540_v28  ;;  %2811 = vmatpush3.msra.mxu0 %v1400_v29  ;;  %v568_v55 = vld [vmem:[%s4664_s2 + $0x70] sm:$0xff]  ;;  %v569_v56 = vld [vmem:[%s4664_s2 + $0x78] sm:$0xff]  ;;  %v1384_v58 = vld [vmem:[%s4666_s4] sm:$0xff] }
  0x5a   : > { %785 = vperm.xlu1 %2905, %v557_v32   ;;  %2837 = vmatpush3.msra.mxu1 %v2633_v30  ;;  %v553_v57 = vld [vmem:[%s4663_s1 + $0x78] sm:$0xff]  ;;  %v1385_v59 = vld [vmem:[%s4666_s4 + $0x8] sm:$0xff]  ;;  %v1386_v60 = vld [vmem:[%s4666_s4 + $0x10] sm:$0xff] }
  0x5b   : > { %2758 = vmatmul.mubr.msk.f32.gmra.mrb[2].mxu0 %vm574_vm1, %v541_v33  ;;  %790 = vperm.xlu0 %2904, %v558_v35   ;;  %v1387_v61 = vld [vmem:[%s4666_s4 + $0x18] sm:$0xff]  ;;  %v1388_v62 = vld [vmem:[%s4666_s4 + $0x20] sm:$0xff]  ;;  %v1389_v63 = vld [vmem:[%s4666_s4 + $0x28] sm:$0xff] }
  0x5c   : > { %2790 = vmatmul.mubr.msk.f32.gmra.mrb[2].mxu1 %vm574_vm1, %v541_v33  ;;  %2760 = vmatprep.mubr.msk.f32.mxu0 %vm574_vm1, %v542_v34  ;;  %v1390_v0 = vld [vmem:[%s4666_s4 + $0x30] sm:$0xff]  ;;  %v1391_v1 = vld [vmem:[%s4666_s4 + $0x38] sm:$0xff]  ;;  %v1392_v2 = vld [vmem:[%s4666_s4 + $0x40] sm:$0xff] }
  0x5d   : > { %2792 = vmatprep.mubr.msk.f32.mxu1 %vm574_vm1, %v542_v34  ;;  %v1393_v3 = vld [vmem:[%s4666_s4 + $0x48] sm:$0xff]  ;;  %v1394_v4 = vld [vmem:[%s4666_s4 + $0x50] sm:$0xff]  ;;  %v1395_v5 = vld [vmem:[%s4666_s4 + $0x58] sm:$0xff] }
  0x5e   : > { %795 = vperm.xlu1 %2905, %v559_v36   ;;  %v1396_v6 = vld [vmem:[%s4666_s4 + $0x60] sm:$0xff]  ;;  %v1397_v7 = vld [vmem:[%s4666_s4 + $0x68] sm:$0xff]  ;;  %v1398_v8 = vld [vmem:[%s4666_s4 + $0x70] sm:$0xff] }
  0x5f   : > { %2761 = vmatmul.mubr.msk.f32.gmra.mrb[4].mxu0 %vm574_vm1, %v543_v37  ;;  %800 = vperm.xlu0 %2904, %v560_v39   ;;  %v1399_v9 = vld [vmem:[%s4666_s4 + $0x78] sm:$0xff] }
  0x60   : > { %2793 = vmatmul.mubr.msk.f32.gmra.mrb[4].mxu1 %vm574_vm1, %v543_v37  ;;  %2763 = vmatprep.mubr.msk.f32.mxu0 %vm574_vm1, %v544_v38 }
  0x61   : > { %2795 = vmatprep.mubr.msk.f32.mxu1 %vm574_vm1, %v544_v38 }
  0x62   : > { %805 = vperm.xlu1 %2905, %v561_v40  }
  0x63   : > { %2764 = vmatmul.mubr.msk.f32.gmra.mrb[6].mxu0 %vm574_vm1, %v545_v41  ;;  %810 = vperm.xlu0 %2904, %v562_v43  }
  0x64   : > { %2796 = vmatmul.mubr.msk.f32.gmra.mrb[6].mxu1 %vm574_vm1, %v545_v41  ;;  %2766 = vmatprep.mubr.msk.f32.mxu0 %vm574_vm1, %v546_v42 }
  0x65   : > { %2798 = vmatprep.mubr.msk.f32.mxu1 %vm574_vm1, %v546_v42 }
  0x66   : > { %815 = vperm.xlu1 %2905, %v563_v44  }
  0x67   : > { %2767 = vmatmul.mubr.msk.f32.gmra.mrb[8].mxu0 %vm574_vm1, %v547_v45  ;;  %820 = vperm.xlu0 %2904, %v564_v47  }
  0x68   : > { %2799 = vmatmul.mubr.msk.f32.gmra.mrb[8].mxu1 %vm574_vm1, %v547_v45  ;;  %2769 = vmatprep.mubr.msk.f32.mxu0 %vm574_vm1, %v548_v46 }
  0x69   : > { %2801 = vmatprep.mubr.msk.f32.mxu1 %vm574_vm1, %v548_v46 }
  0x6a   : > { %825 = vperm.xlu1 %2905, %v565_v48  }
  0x6b   : > { %2770 = vmatmul.mubr.msk.f32.gmra.mrb[10].mxu0 %vm574_vm1, %v549_v49  ;;  %830 = vperm.xlu0 %2904, %v566_v51  }
  0x6c   : > { %2802 = vmatmul.mubr.msk.f32.gmra.mrb[10].mxu1 %vm574_vm1, %v549_v49  ;;  %2772 = vmatprep.mubr.msk.f32.mxu0 %vm574_vm1, %v550_v50 }
  0x6d   : > { %2804 = vmatprep.mubr.msk.f32.mxu1 %vm574_vm1, %v550_v50 }
  0x6e   : > { %835 = vperm.xlu1 %2905, %v567_v52  }
  0x6f   : > { %2773 = vmatmul.mubr.msk.f32.gmra.mrb[12].mxu0 %vm574_vm1, %v551_v53  ;;  %840 = vperm.xlu0 %2904, %v568_v55  }
  0x70   : > { %2805 = vmatmul.mubr.msk.f32.gmra.mrb[12].mxu1 %vm574_vm1, %v551_v53  ;;  %2775 = vmatprep.mubr.msk.f32.mxu0 %vm574_vm1, %v552_v54 }
  0x71   : > { %2807 = vmatprep.mubr.msk.f32.mxu1 %vm574_vm1, %v552_v54 }
  0x72   : > { %845 = vperm.xlu1 %2905, %v569_v56  }
  0x73   : > { %2776 = vmatmul.mubr.msk.f32.gmra.mrb[14].mxu0 %vm574_vm1, %v553_v57 }
  0x74   : > { %2808 = vmatmul.mubr.msk.f32.gmra.mrb[14].mxu1 %vm574_vm1, %v553_v57  ;;  %2812 = vmatprep.mubr.msk.f32.mxu0 %vm1401_vm2, %v1384_v58 }
  0x75   : > { %2838 = vmatprep.mubr.msk.f32.mxu1 %vm1401_vm2, %v1384_v58 }
  0x77   : > { %2813 = vmatmul.mubr.msk.f32.vlgmr.msra.gmra.mrb[16].mxu0 %vm1401_vm2, %v1385_v59 }
  0x78   : > { %2839 = vmatmul.mubr.msk.f32.vlgmr.msra.gmra.mrb[16].mxu1 %vm1401_vm2, %v1385_v59  ;;  %2815 = vmatprep.mubr.msk.f32.mxu0 %vm1401_vm2, %v1386_v60 }
  0x79   : > { %2841 = vmatprep.mubr.msk.f32.mxu1 %vm1401_vm2, %v1386_v60 }
  0x7b   : > { %2816 = vmatmul.mubr.msk.f32.gmra.mrb[18].mxu0 %vm1401_vm2, %v1387_v61 }
  0x7c   : > { %2842 = vmatmul.mubr.msk.f32.gmra.mrb[18].mxu1 %vm1401_vm2, %v1387_v61  ;;  %2818 = vmatprep.mubr.msk.f32.mxu0 %vm1401_vm2, %v1388_v62 }
  0x7d   : > { %2844 = vmatprep.mubr.msk.f32.mxu1 %vm1401_vm2, %v1388_v62 }
  0x7f   : > { %2819 = vmatmul.mubr.msk.f32.gmra.mrb[20].mxu0 %vm1401_vm2, %v1389_v63 }
  0x80   : > { %2845 = vmatmul.mubr.msk.f32.gmra.mrb[20].mxu1 %vm1401_vm2, %v1389_v63  ;;  %2821 = vmatprep.mubr.msk.f32.mxu0 %vm1401_vm2, %v1390_v0 }
  0x81   : > { %2847 = vmatprep.mubr.msk.f32.mxu1 %vm1401_vm2, %v1390_v0 }
  0x83   : > { %2822 = vmatmul.mubr.msk.f32.gmra.mrb[22].mxu0 %vm1401_vm2, %v1391_v1 }
  0x84   : > { %2848 = vmatmul.mubr.msk.f32.gmra.mrb[22].mxu1 %vm1401_vm2, %v1391_v1  ;;  %2824 = vmatprep.mubr.msk.f32.mxu0 %vm1401_vm2, %v1392_v2 }
  0x85   : > { %2850 = vmatprep.mubr.msk.f32.mxu1 %vm1401_vm2, %v1392_v2 }
  0x87   : > { %2825 = vmatmul.mubr.msk.f32.gmra.mrb[24].mxu0 %vm1401_vm2, %v1393_v3 }
  0x88   : > { %2851 = vmatmul.mubr.msk.f32.gmra.mrb[24].mxu1 %vm1401_vm2, %v1393_v3  ;;  %2827 = vmatprep.mubr.msk.f32.mxu0 %vm1401_vm2, %v1394_v4 }
  0x89   : > { %2853 = vmatprep.mubr.msk.f32.mxu1 %vm1401_vm2, %v1394_v4 }
  0x8b   : > { %2828 = vmatmul.mubr.msk.f32.gmra.mrb[26].mxu0 %vm1401_vm2, %v1395_v5 }
  0x8c   : > { %2854 = vmatmul.mubr.msk.f32.gmra.mrb[26].mxu1 %vm1401_vm2, %v1395_v5  ;;  %2830 = vmatprep.mubr.msk.f32.mxu0 %vm1401_vm2, %v1396_v6 }
  0x8d   : > { %2856 = vmatprep.mubr.msk.f32.mxu1 %vm1401_vm2, %v1396_v6 }
  0x8f   : > { %2831 = vmatmul.mubr.msk.f32.gmra.mrb[28].mxu0 %vm1401_vm2, %v1397_v7 }
  0x90   : > { %2857 = vmatmul.mubr.msk.f32.gmra.mrb[28].mxu1 %vm1401_vm2, %v1397_v7  ;;  %2833 = vmatprep.mubr.msk.f32.mxu0 %vm1401_vm2, %v1398_v8 }
  0x91   : > { %2859 = vmatprep.mubr.msk.f32.mxu1 %vm1401_vm2, %v1398_v8 }
  0x93   : > { %2834 = vmatmul.mubr.msk.f32.gmra.mrb[30].mxu0 %vm1401_vm2, %v1399_v9 }
  0x94   : > { %2860 = vmatmul.mubr.msk.f32.gmra.mrb[30].mxu1 %vm1401_vm2, %v1399_v9 }
  0xd2   : > { %v771_v10 = vpop.permute.xlu0 %770  ;;  %v781_v11 = vpop.permute.xlu1 %780 }
  0xd6   : > { %v776_v12 = vpop.permute.xlu0 %775 }
  0xd9   : > { %v786_v13 = vpop.permute.xlu1 %785 }
  0xda   : > { %v791_v14 = vpop.permute.xlu0 %790 }
  0xdd   : > { %v796_v16 = vpop.permute.xlu1 %795 }
  0xde   : > { %v801_v23 = vpop.permute.xlu0 %800 }
  0xe1   : > { %v806_v26 = vpop.permute.xlu1 %805 }
  0xe2   : > { %v811_v33 = vpop.permute.xlu0 %810 }
  0xe5   : > { %v816_v38 = vpop.permute.xlu1 %815 }
  0xe6   : > { %v821_v49 = vpop.permute.xlu0 %820 }
  0xe9   : > { %v826_v56 = vpop.permute.xlu1 %825 }
  0xea   : > { %v831_v3 = vpop.permute.xlu0 %830 }
  0xed   : > { %v836_v5 = vpop.permute.xlu1 %835 }
 0x12a   : > { %v2756_v15 = vpop.f32.mrb[0].mxu0 }
 0x12b   : > { %v849_v17 = vadd.f32 %v2756_v15, %v776_v12  ;;  %v2788_v18 = vpop.f32.mrb[0].mxu1  ;;  %882 = vadd.xlane.f32.xlu1 %v2756_v15  ;;  %v689_v19 = vpop.f32.mrb[1].mxu0  ;;  %v929_v36 = vmul.f32 %v2756_v15, %v2756_v15 }
 0x12c   : > { %v1143_v20 = vadd.f32 %v2788_v18, %v776_v12  ;;  %1177 = vadd.xlane.f32.xlu0 %v2788_v18  ;;  %v1063_v21 = vpop.f32.mrb[1].mxu1  ;;  %v848_v22 = vadd.f32 %v771_v10, %v689_v19  ;;  %v928_v34 = vmul.f32 %v689_v19, %v689_v19  ;;  %v1224_v47 = vmul.f32 %v2788_v18, %v2788_v18 }
 0x12d   : > { %865 = vst [vmem:[%s3048_s30 + $0x8] sm:$0xff] %v849_v17  ;;  %v1142_v24 = vadd.f32 %v1063_v21, %v771_v10  ;;  %v1223_v45 = vmul.f32 %v1063_v21, %v1063_v21 }
 0x12e   : > { %2602 = vst [vmem:[%s3048_s30 + $0x88] sm:$0xff] %v1143_v20  ;;  %864 = vst [vmem:[%s3048_s30] sm:$0xff] %v848_v22  ;;  %v3594_v25 = vpop.f32.mrb[2].mxu0 }
 0x12f   : > { %2601 = vst [vmem:[%s3048_s30 + $0x80] sm:$0xff] %v1142_v24  ;;  %1175 = vadd.xlane.f32.xlu1 %v1063_v21  ;;  %v3597_v27 = vpop.f32.mrb[2].mxu1  ;;  %v851_v28 = vadd.f32 %v3594_v25, %v786_v13  ;;  %v3600_v29 = vpop.f32.mrb[3].mxu0  ;;  %v931_v24 = vmul.f32 %v3594_v25, %v3594_v25 }
 0x130   : > { %880 = vadd.xlane.f32.xlu0 %v689_v19  ;;  %v1145_v30 = vadd.f32 %v3597_v27, %v786_v13  ;;  %v850_v31 = vadd.f32 %v781_v11, %v3600_v29  ;;  %v3604_v32 = vpop.f32.mrb[3].mxu1  ;;  %v930_v1 = vmul.f32 %v3600_v29, %v3600_v29  ;;  %v846_v21 = vpop.permute.xlu1 %845 }
 0x131   : > { %867 = vst [vmem:[%s3048_s30 + $0x18] sm:$0xff] %v851_v28  ;;  %v1144_v35 = vadd.f32 %v3604_v32, %v781_v11  ;;  %v1225_v12 = vmul.f32 %v3604_v32, %v3604_v32 }
 0x132   : > { %2604 = vst [vmem:[%s3048_s30 + $0x98] sm:$0xff] %v1145_v30  ;;  %866 = vst [vmem:[%s3048_s30 + $0x10] sm:$0xff] %v850_v31  ;;  %v3610_v37 = vpop.f32.mrb[4].mxu0 }
 0x133   : > { %944 = vadd.xlane.f32.xlu1 %v928_v34  ;;  %2603 = vst [vmem:[%s3048_s30 + $0x90] sm:$0xff] %v1144_v35  ;;  %v3613_v39 = vpop.f32.mrb[5].mxu0  ;;  %v3615_v40 = vpop.f32.mrb[4].mxu1  ;;  %v853_v41 = vadd.f32 %v3610_v37, %v796_v16  ;;  %v1226_v34 = vmul.f32 %v3597_v27, %v3597_v27 }
 0x134   : > { %946 = vadd.xlane.f32.xlu0 %v929_v36  ;;  %v3618_v42 = vpop.f32.mrb[5].mxu1  ;;  %v1147_v43 = vadd.f32 %v3615_v40, %v796_v16  ;;  %v852_v44 = vadd.f32 %v791_v14, %v3613_v39  ;;  %v932_v36 = vmul.f32 %v3613_v39, %v3613_v39 }
 0x135   : > { %869 = vst [vmem:[%s3048_s30 + $0x28] sm:$0xff] %v853_v41  ;;  %v1146_v46 = vadd.f32 %v3618_v42, %v791_v14 }
 0x136   : > { %2606 = vst [vmem:[%s3048_s30 + $0xa8] sm:$0xff] %v1147_v43  ;;  %868 = vst [vmem:[%s3048_s30 + $0x20] sm:$0xff] %v852_v44  ;;  %v3626_v48 = vpop.f32.mrb[6].mxu0  ;;  %v1227_v43 = vmul.f32 %v3618_v42, %v3618_v42 }
 0x137   : > { %1239 = vadd.xlane.f32.xlu1 %v1223_v45  ;;  %2605 = vst [vmem:[%s3048_s30 + $0xa0] sm:$0xff] %v1146_v46  ;;  %v3629_v50 = vpop.f32.mrb[7].mxu0  ;;  %v3631_v51 = vpop.f32.mrb[6].mxu1  ;;  %v855_v52 = vadd.f32 %v3626_v48, %v806_v26 }
 0x138   : > { %1241 = vadd.xlane.f32.xlu0 %v1224_v47  ;;  %v3634_v53 = vpop.f32.mrb[7].mxu1  ;;  %v1149_v54 = vadd.f32 %v3631_v51, %v806_v26  ;;  %v854_v55 = vadd.f32 %v801_v23, %v3629_v50 }
 0x139   : > { %871 = vst [vmem:[%s3048_s30 + $0x38] sm:$0xff] %v855_v52  ;;  %v1148_v57 = vadd.f32 %v3634_v53, %v801_v23  ;;  %v841_v23 = vpop.permute.xlu0 %840 }
 0x13a   : > { %2608 = vst [vmem:[%s3048_s30 + $0xb8] sm:$0xff] %v1149_v54  ;;  %870 = vst [vmem:[%s3048_s30 + $0x30] sm:$0xff] %v854_v55  ;;  %v3642_v58 = vpop.f32.mrb[8].mxu0  ;;  %v933_v54 = vmul.f32 %v3610_v37, %v3610_v37 }
 0x13b   : > { %1179 = vadd.xlane.f32.xlu1 %v3604_v32  ;;  %2607 = vst [vmem:[%s3048_s30 + $0xb0] sm:$0xff] %v1148_v57  ;;  %v857_v59 = vadd.f32 %v3642_v58, %v816_v38  ;;  %v3647_v60 = vpop.f32.mrb[9].mxu0  ;;  %v3649_v61 = vpop.f32.mrb[8].mxu1 }
 0x13c   : > { %886 = vadd.xlane.f32.xlu0 %v3594_v25  ;;  %v856_v62 = vadd.f32 %v811_v33, %v3647_v60  ;;  %v1151_v63 = vadd.f32 %v3649_v61, %v816_v38  ;;  %v3654_v0 = vpop.f32.mrb[9].mxu1 }
 0x13d   : > { %873 = vst [vmem:[%s3048_s30 + $0x48] sm:$0xff] %v857_v59  ;;  %v1150_v2 = vadd.f32 %v3654_v0, %v811_v33 }
 0x13e   : > { %872 = vst [vmem:[%s3048_s30 + $0x40] sm:$0xff] %v856_v62  ;;  %2610 = vst [vmem:[%s3048_s30 + $0xc8] sm:$0xff] %v1151_v63  ;;  %v3662_v4 = vpop.f32.mrb[10].mxu0  ;;  %v934_v63 = vmul.f32 %v3629_v50, %v3629_v50 }
 0x13f   : > { %948 = vadd.xlane.f32.xlu1 %v930_v1  ;;  %2609 = vst [vmem:[%s3048_s30 + $0xc0] sm:$0xff] %v1150_v2  ;;  %v859_v6 = vadd.f32 %v3662_v4, %v826_v56  ;;  %v3666_v7 = vpop.f32.mrb[10].mxu1  ;;  %v3668_v8 = vpop.f32.mrb[11].mxu0 }
 0x140   : > { %1181 = vadd.xlane.f32.xlu0 %v3597_v27  ;;  %v1153_v9 = vadd.f32 %v3666_v7, %v826_v56  ;;  %v3672_v10 = vpop.f32.mrb[11].mxu1  ;;  %v858_v11 = vadd.f32 %v821_v49, %v3668_v8 }
 0x141   : > { %875 = vst [vmem:[%s3048_s30 + $0x58] sm:$0xff] %v859_v6  ;;  %v1152_v13 = vadd.f32 %v3672_v10, %v821_v49  ;;  %v1230_v6 = vmul.f32 %v3631_v51, %v3631_v51 }
 0x142   : > { %2612 = vst [vmem:[%s3048_s30 + $0xd8] sm:$0xff] %v1153_v9  ;;  %874 = vst [vmem:[%s3048_s30 + $0x50] sm:$0xff] %v858_v11  ;;  %v3681_v14 = vpop.f32.mrb[12].mxu0 }
 0x143   : > { %1243 = vadd.xlane.f32.xlu1 %v1225_v12  ;;  %2611 = vst [vmem:[%s3048_s30 + $0xd0] sm:$0xff] %v1152_v13  ;;  %v3684_v15 = vpop.f32.mrb[12].mxu1  ;;  %v3686_v16 = vpop.f32.mrb[13].mxu0  ;;  %v861_v17 = vadd.f32 %v3681_v14, %v836_v5  ;;  %v937_v13 = vmul.f32 %v3642_v58, %v3642_v58 }
 0x144   : > { %884 = vadd.xlane.f32.xlu0 %v3600_v29  ;;  %v860_v18 = vadd.f32 %v831_v3, %v3686_v16  ;;  %v3691_v19 = vpop.f32.mrb[13].mxu1  ;;  %v1155_v20 = vadd.f32 %v3684_v15, %v836_v5 }
 0x145   : > { %v1154_v22 = vadd.f32 %v3691_v19, %v831_v3  ;;  %877 = vst [vmem:[%s3048_s30 + $0x68] sm:$0xff] %v861_v17 }
 0x146   : > { %876 = vst [vmem:[%s3048_s30 + $0x60] sm:$0xff] %v860_v18  ;;  %2614 = vst [vmem:[%s3048_s30 + $0xe8] sm:$0xff] %v1155_v20  ;;  %v3700_v26 = vpop.f32.mrb[14].mxu0  ;;  %v1232_v18 = vmul.f32 %v3649_v61, %v3649_v61 }
 0x147   : > { %888 = vadd.xlane.f32.xlu1 %v3613_v39  ;;  %2613 = vst [vmem:[%s3048_s30 + $0xe0] sm:$0xff] %v1154_v22  ;;  %v3704_v28 = vpop.f32.mrb[14].mxu1  ;;  %v3706_v29 = vpop.f32.mrb[15].mxu0  ;;  %v863_v30 = vadd.f32 %v3700_v26, %v846_v21 }
 0x148   : > { %950 = vadd.xlane.f32.xlu0 %v931_v24  ;;  %v3709_v31 = vpop.f32.mrb[15].mxu1  ;;  %v862_v25 = vadd.f32 %v841_v23, %v3706_v29  ;;  %v1157_v32 = vadd.f32 %v3704_v28, %v846_v21  ;;  %v1233_v21 = vmul.f32 %v3672_v10, %v3672_v10  ;;  %v940_v24 = vmul.f32 %v3686_v16, %v3686_v16 }
 0x149   : > { %v1156_v33 = vadd.f32 %v3709_v31, %v841_v23  ;;  %879 = vst [vmem:[%s3048_s30 + $0x78] sm:$0xff] %v863_v30  ;;  %v1234_v23 = vmul.f32 %v3666_v7, %v3666_v7  ;;  %v1235_v30 = vmul.f32 %v3691_v19, %v3691_v19 }
 0x14a   : > { %878 = vst [vmem:[%s3048_s30 + $0x70] sm:$0xff] %v862_v25  ;;  %2616 = vst [vmem:[%s3048_s30 + $0xf8] sm:$0xff] %v1157_v32  ;;  %v3719_v35 = vpop.f32.mrb[16].mxu0  ;;  %v1288_v32 = vld [vmem:[%s4669_s7 + $0x8] sm:$0xff] }
 0x14b   : > { %1183 = vadd.xlane.f32.xlu1 %v3618_v42  ;;  %2615 = vst [vmem:[%s3048_s30 + $0xf0] sm:$0xff] %v1156_v33  ;;  %1596 = vst [vmem:[%s3050_s11 + $0x8] sm:$0xff] %v3719_v35  ;;  %v3727_v38 = vpop.f32.mrb[17].mxu0  ;;  %v3729_v41 = vpop.f32.mrb[16].mxu1 }
 0x14c   : > { %1245 = vadd.xlane.f32.xlu0 %v1226_v34  ;;  %1595 = vst [vmem:[%s3050_s11] sm:$0xff] %v3727_v38  ;;  %2651 = vst [vmem:[%s3050_s11 + $0x88] sm:$0xff] %v3729_v41  ;;  %v3735_v27 = vpop.f32.mrb[17].mxu1 }
 0x14d   : > { %2650 = vst [vmem:[%s3050_s11 + $0x80] sm:$0xff] %v3735_v27 }
 0x14e   : > { %v3739_v39 = vpop.f32.mrb[18].mxu0 }
 0x14f   : > { %952 = vadd.xlane.f32.xlu1 %v932_v36  ;;  %1598 = vst [vmem:[%s3050_s11 + $0x18] sm:$0xff] %v3739_v39  ;;  %v3745_v44 = vpop.f32.mrb[19].mxu0  ;;  %v3747_v45 = vpop.f32.mrb[18].mxu1 }
 0x150   : > { %890 = vadd.xlane.f32.xlu0 %v3610_v37  ;;  %1597 = vst [vmem:[%s3050_s11 + $0x10] sm:$0xff] %v3745_v44  ;;  %2653 = vst [vmem:[%s3050_s11 + $0x98] sm:$0xff] %v3747_v45  ;;  %v3754_v46 = vpop.f32.mrb[19].mxu1  ;;  %v1228_v37 = vmul.f32 %v3615_v40, %v3615_v40 }
 0x151   : > { %2652 = vst [vmem:[%s3050_s11 + $0x90] sm:$0xff] %v3754_v46 }
 0x152   : > { %v3758_v42 = vpop.f32.mrb[20].mxu0 }
 0x153   : > { %1247 = vadd.xlane.f32.xlu1 %v1227_v43  ;;  %1600 = vst [vmem:[%s3050_s11 + $0x28] sm:$0xff] %v3758_v42  ;;  %v3762_v47 = vpop.f32.mrb[21].mxu0  ;;  %v3764_v49 = vpop.f32.mrb[20].mxu1 }
 0x154   : > { %1185 = vadd.xlane.f32.xlu0 %v3615_v40  ;;  %1599 = vst [vmem:[%s3050_s11 + $0x20] sm:$0xff] %v3762_v47  ;;  %2655 = vst [vmem:[%s3050_s11 + $0xa8] sm:$0xff] %v3764_v49  ;;  %v3771_v52 = vpop.f32.mrb[21].mxu1  ;;  %v1229_v40 = vmul.f32 %v3634_v53, %v3634_v53 }
 0x155   : > { %2654 = vst [vmem:[%s3050_s11 + $0xa0] sm:$0xff] %v3771_v52 }
 0x156   : > { %v3777_v55 = vpop.f32.mrb[22].mxu0 }
 0x157   : > { %892 = vadd.xlane.f32.xlu1 %v3629_v50  ;;  %1602 = vst [vmem:[%s3050_s11 + $0x38] sm:$0xff] %v3777_v55  ;;  %v3782_v56 = vpop.f32.mrb[23].mxu0  ;;  %v3784_v57 = vpop.f32.mrb[22].mxu1  ;;  %v935_v50 = vmul.f32 %v3626_v48, %v3626_v48 }
 0x158   : > { %954 = vadd.xlane.f32.xlu0 %v933_v54  ;;  %1601 = vst [vmem:[%s3050_s11 + $0x30] sm:$0xff] %v3782_v56  ;;  %2657 = vst [vmem:[%s3050_s11 + $0xb8] sm:$0xff] %v3784_v57  ;;  %v3790_v59 = vpop.f32.mrb[23].mxu1 }
 0x159   : > { %2656 = vst [vmem:[%s3050_s11 + $0xb0] sm:$0xff] %v3790_v59 }
 0x15a   : > { %v3796_v62 = vpop.f32.mrb[24].mxu0 }
 0x15b   : > { %1187 = vadd.xlane.f32.xlu1 %v3634_v53  ;;  %1604 = vst [vmem:[%s3050_s11 + $0x48] sm:$0xff] %v3796_v62  ;;  %v3803_v1 = vpop.f32.mrb[25].mxu0  ;;  %v3807_v2 = vpop.f32.mrb[24].mxu1 }
 0x15c   : > { %1249 = vadd.xlane.f32.xlu0 %v1228_v37  ;;  %1603 = vst [vmem:[%s3050_s11 + $0x40] sm:$0xff] %v3803_v1  ;;  %2659 = vst [vmem:[%s3050_s11 + $0xc8] sm:$0xff] %v3807_v2  ;;  %v3813_v3 = vpop.f32.mrb[25].mxu1 }
 0x15d   : > { %2658 = vst [vmem:[%s3050_s11 + $0xc0] sm:$0xff] %v3813_v3 }
 0x15e   : > { %v3821_v5 = vpop.f32.mrb[26].mxu0 }
 0x15f   : > { %956 = vadd.xlane.f32.xlu1 %v934_v63  ;;  %1606 = vst [vmem:[%s3050_s11 + $0x58] sm:$0xff] %v3821_v5  ;;  %v3826_v53 = vpop.f32.mrb[27].mxu0  ;;  %v3832_v9 = vpop.f32.mrb[26].mxu1 }
 0x160   : > { %894 = vadd.xlane.f32.xlu0 %v3626_v48  ;;  %1605 = vst [vmem:[%s3050_s11 + $0x50] sm:$0xff] %v3826_v53  ;;  %v936_v48 = vmul.f32 %v3647_v60, %v3647_v60  ;;  %2661 = vst [vmem:[%s3050_s11 + $0xd8] sm:$0xff] %v3832_v9  ;;  %v3839_v11 = vpop.f32.mrb[27].mxu1 }
 0x161   : > { %2660 = vst [vmem:[%s3050_s11 + $0xd0] sm:$0xff] %v3839_v11 }
 0x162   : > { %v3846_v12 = vpop.f32.mrb[28].mxu0 }
 0x163   : > { %1251 = vadd.xlane.f32.xlu1 %v1229_v40  ;;  %1608 = vst [vmem:[%s3050_s11 + $0x68] sm:$0xff] %v3846_v12  ;;  %v3857_v17 = vpop.f32.mrb[28].mxu1  ;;  %v1336_v40 = vld [vmem:[%s4670_s8] sm:$0xff] }
 0x164   : > { %1189 = vadd.xlane.f32.xlu0 %v3631_v51  ;;  %v1231_v51 = vmul.f32 %v3654_v0, %v3654_v0  ;;  %2663 = vst [vmem:[%s3050_s11 + $0xe8] sm:$0xff] %v3857_v17 }
 0x167   : > { %896 = vadd.xlane.f32.xlu1 %v3647_v60  ;;  %v3850_v60 = vpop.f32.mrb[29].mxu0 }
 0x168   : > { %958 = vadd.xlane.f32.xlu0 %v935_v50  ;;  %1607 = vst [vmem:[%s3050_s11 + $0x60] sm:$0xff] %v3850_v60  ;;  %v3871_v20 = vpop.f32.mrb[30].mxu0 }
 0x169   : > { %1610 = vst [vmem:[%s3050_s11 + $0x78] sm:$0xff] %v3871_v20  ;;  %v3877_v22 = vpop.f32.mrb[31].mxu0 }
 0x16a   : > { %1609 = vst [vmem:[%s3050_s11 + $0x70] sm:$0xff] %v3877_v22 }
 0x16b   : > { %1191 = vadd.xlane.f32.xlu1 %v3654_v0  ;;  %v3862_v0 = vpop.f32.mrb[29].mxu1 }
 0x16c   : > { %1253 = vadd.xlane.f32.xlu0 %v1230_v6  ;;  %2662 = vst [vmem:[%s3050_s11 + $0xe0] sm:$0xff] %v3862_v0  ;;  %v1337_v6 = vld [vmem:[%s4670_s8 + $0x8] sm:$0xff] }
 0x16f   : > { %960 = vadd.xlane.f32.xlu1 %v936_v48 }
 0x170   : > { %898 = vadd.xlane.f32.xlu0 %v3642_v58  ;;  %v938_v58 = vmul.f32 %v3668_v8, %v3668_v8 }
 0x173   : > { %1255 = vadd.xlane.f32.xlu1 %v1231_v51 }
 0x174   : > { %1193 = vadd.xlane.f32.xlu0 %v3649_v61  ;;  %v3882_v61 = vpop.f32.mrb[30].mxu1 }
 0x175   : > { %2665 = vst [vmem:[%s3050_s11 + $0xf8] sm:$0xff] %v3882_v61 }
 0x177   : > { %900 = vadd.xlane.f32.xlu1 %v3668_v8  ;;  %v3886_v8 = vpop.f32.mrb[31].mxu1 }
 0x178   : > { %962 = vadd.xlane.f32.xlu0 %v937_v13  ;;  %2664 = vst [vmem:[%s3050_s11 + $0xf0] sm:$0xff] %v3886_v8 }
 0x17b   : > { %1195 = vadd.xlane.f32.xlu1 %v3672_v10  ;;  %v939_v10 = vmul.f32 %v3662_v4, %v3662_v4 }
 0x17c   : > { %1257 = vadd.xlane.f32.xlu0 %v1232_v18 }
 0x17f   : > { %964 = vadd.xlane.f32.xlu1 %v938_v58 }
 0x180   : > { %902 = vadd.xlane.f32.xlu0 %v3662_v4  ;;  %v941_v4 = vmul.f32 %v3681_v14, %v3681_v14 }
 0x183   : > { %1259 = vadd.xlane.f32.xlu1 %v1233_v21 }
 0x184   : > { %1197 = vadd.xlane.f32.xlu0 %v3666_v7  ;;  %v1236_v7 = vmul.f32 %v3684_v15, %v3684_v15 }
 0x187   : > { %904 = vadd.xlane.f32.xlu1 %v3686_v16  ;;  %v942_v16 = vmul.f32 %v3706_v29, %v3706_v29 }
 0x188   : > { %966 = vadd.xlane.f32.xlu0 %v939_v10  ;;  %v1663_v10 = vmul.f32 %v3762_v47, %v3762_v47 }
 0x18b   : > { %1199 = vadd.xlane.f32.xlu1 %v3691_v19  ;;  %v1237_v19 = vmul.f32 %v3709_v31, %v3709_v31 }
 0x18c   : > { %1261 = vadd.xlane.f32.xlu0 %v1234_v23 }
 0x18f   : > { %968 = vadd.xlane.f32.xlu1 %v940_v24  ;;  %v1290_v24 = vld [vmem:[%s4669_s7 + $0x18] sm:$0xff] }
 0x190   : > { %906 = vadd.xlane.f32.xlu0 %v3681_v14  ;;  %v943_v14 = vmul.f32 %v3700_v26, %v3700_v26 }
 0x193   : > { %1263 = vadd.xlane.f32.xlu1 %v1235_v30 }
 0x194   : > { %1201 = vadd.xlane.f32.xlu0 %v3684_v15  ;;  %v1238_v15 = vmul.f32 %v3704_v28, %v3704_v28 }
 0x197   : > { %908 = vadd.xlane.f32.xlu1 %v3706_v29  ;;  %v1659_v29 = vmul.f32 %v3727_v38, %v3727_v38 }
 0x198   : > { %970 = vadd.xlane.f32.xlu0 %v941_v4  ;;  %v1664_v4 = vmul.f32 %v3758_v42, %v3758_v42 }
 0x19b   : > { %1203 = vadd.xlane.f32.xlu1 %v3709_v31  ;;  %v1935_v31 = vmul.f32 %v3735_v27, %v3735_v27 }
 0x19c   : > { %1265 = vadd.xlane.f32.xlu0 %v1236_v7 }
 0x19f   : > { %972 = vadd.xlane.f32.xlu1 %v942_v16  ;;  %v1338_v16 = vld [vmem:[%s4670_s8 + $0x10] sm:$0xff] }
 0x1a0   : > { %910 = vadd.xlane.f32.xlu0 %v3700_v26  ;;  %v1660_v26 = vmul.f32 %v3719_v35, %v3719_v35 }
 0x1a3   : > { %1267 = vadd.xlane.f32.xlu1 %v1237_v19 }
 0x1a4   : > { %1205 = vadd.xlane.f32.xlu0 %v3704_v28 }
 0x1a7   : > { %1611 = vadd.xlane.f32.xlu1 %v3727_v38 }
 0x1a8   : > { %974 = vadd.xlane.f32.xlu0 %v943_v14  ;;  %v1289_v14 = vld [vmem:[%s4669_s7 + $0x10] sm:$0xff] }
 0x1ab   : > { %1887 = vadd.xlane.f32.xlu1 %v3735_v27  ;;  %v1661_v27 = vmul.f32 %v3745_v44, %v3745_v44 }
 0x1ac   : > { %1269 = vadd.xlane.f32.xlu0 %v1238_v15 }
 0x1af   : > { %1675 = vadd.xlane.f32.xlu1 %v1659_v29 }
 0x1b0   : > { %1613 = vadd.xlane.f32.xlu0 %v3719_v35  ;;  %v1287_v35 = vld [vmem:[%s4669_s7] sm:$0xff] }
 0x1b3   : > { %1951 = vadd.xlane.f32.xlu1 %v1935_v31 }
 0x1b4   : > { %1889 = vadd.xlane.f32.xlu0 %v3729_v41 }
 0x1b7   : > { %1615 = vadd.xlane.f32.xlu1 %v3745_v44  ;;  %v1662_v44 = vmul.f32 %v3739_v39, %v3739_v39 }
 0x1b8   : > { %1677 = vadd.xlane.f32.xlu0 %v1660_v26  ;;  %v883_v28 = vpop.xlane.xlu1 %882 }
 0x1b9   : > { %v1178_v25 = vpop.xlane.xlu0 %1177 }
 0x1ba   : > { %v1208_v33 = vadd.f32 %v1178_v25, %v883_v28  ;;  %v1665_v25 = vmul.f32 %v3782_v56, %v3782_v56 }
 0x1bb   : > { %1891 = vadd.xlane.f32.xlu1 %v3754_v46 }
 0x1bc   : > { %v1304_v34 = vadd.f32 %v1288_v32, %v1208_v33  ;;  %1617 = vadd.xlane.f32.xlu0 %v3739_v39  ;;  %v1176_v36 = vpop.xlane.xlu1 %1175  ;;  %v1291_v33 = vld [vmem:[%s4669_s7 + $0x20] sm:$0xff] }
 0x1bd   : > { %v881_v38 = vpop.xlane.xlu0 %880 }
 0x1be   : > { %1321 = vst.msk [vmem:[%s4669_s7 + $0x8] sm:$0xff] %vm1319_vm3, %v1304_v34  ;;  %v1207_v43 = vadd.f32 %v1176_v36, %v881_v38  ;;  %v1666_v38 = vmul.f32 %v3777_v55, %v3777_v55 }
 0x1bf   : > { %1679 = vadd.xlane.f32.xlu1 %v1661_v27 }
 0x1c0   : > { %v1303_v54 = vadd.f32 %v1287_v35, %v1207_v43  ;;  %1893 = vadd.xlane.f32.xlu0 %v3747_v45  ;;  %v945_v37 = vpop.xlane.xlu1 %944 }
 0x1c1   : > { %v947_v63 = vpop.xlane.xlu0 %946 }
 0x1c2   : > { %1320 = vst.msk [vmem:[%s4669_s7] sm:$0xff] %vm1319_vm3, %v1303_v54 }
 0x1c3   : > { %1619 = vadd.xlane.f32.xlu1 %v3762_v47 }
 0x1c4   : > { %1681 = vadd.xlane.f32.xlu0 %v1662_v44  ;;  %v1240_v50 = vpop.xlane.xlu1 %1239 }
 0x1c5   : > { %v1242_v48 = vpop.xlane.xlu0 %1241  ;;  %v1271_v51 = vadd.f32 %v1240_v50, %v945_v37  ;;  %v1292_v50 = vld [vmem:[%s4669_s7 + $0x28] sm:$0xff] }
 0x1c6   : > { %v1272_v13 = vadd.f32 %v1242_v48, %v947_v63 }
 0x1c7   : > { %v1352_v18 = vadd.f32 %v1336_v40, %v1271_v51  ;;  %1895 = vadd.xlane.f32.xlu1 %v3771_v52  ;;  %v1667_v40 = vmul.f32 %v3803_v1, %v3803_v1 }
 0x1c8   : > { %v1353_v58 = vadd.f32 %v1337_v6, %v1272_v13  ;;  %1621 = vadd.xlane.f32.xlu0 %v3758_v42  ;;  %v1180_v39 = vpop.xlane.xlu1 %1179 }
 0x1c9   : > { %1368 = vst.msk [vmem:[%s4670_s8] sm:$0xff] %vm1319_vm3, %v1352_v18  ;;  %v887_v21 = vpop.xlane.xlu0 %886 }
 0x1ca   : > { %1369 = vst.msk [vmem:[%s4670_s8 + $0x8] sm:$0xff] %vm1319_vm3, %v1353_v58 }
 0x1cb   : > { %1683 = vadd.xlane.f32.xlu1 %v1663_v10 }
 0x1cc   : > { %1897 = vadd.xlane.f32.xlu0 %v3764_v49  ;;  %v949_v23 = vpop.xlane.xlu1 %948 }
 0x1cd   : > { %v1182_v30 = vpop.xlane.xlu0 %1181 }
 0x1ce   : > { %v1210_v7 = vadd.f32 %v1182_v30, %v887_v21  ;;  %v1293_v21 = vld [vmem:[%s4669_s7 + $0x30] sm:$0xff] }
 0x1cf   : > { %1623 = vadd.xlane.f32.xlu1 %v3782_v56  ;;  %v1339_v56 = vld [vmem:[%s4670_s8 + $0x18] sm:$0xff] }
 0x1d0   : > { %v1306_v47 = vadd.f32 %v1290_v24, %v1210_v7  ;;  %1685 = vadd.xlane.f32.xlu0 %v1664_v4  ;;  %v1244_v19 = vpop.xlane.xlu1 %1243 }
 0x1d1   : > { %v885_v15 = vpop.xlane.xlu0 %884  ;;  %v1273_v29 = vadd.f32 %v1244_v19, %v949_v23  ;;  %v1341_v23 = vld [vmem:[%s4670_s8 + $0x28] sm:$0xff] }
 0x1d2   : > { %1323 = vst.msk [vmem:[%s4669_s7 + $0x18] sm:$0xff] %vm1319_vm3, %v1306_v47  ;;  %v1209_v42 = vadd.f32 %v1180_v39, %v885_v15 }
 0x1d3   : > { %v1354_v31 = vadd.f32 %v1338_v16, %v1273_v29  ;;  %1899 = vadd.xlane.f32.xlu1 %v3790_v59  ;;  %v1669_v16 = vmul.f32 %v3826_v53, %v3826_v53 }
 0x1d4   : > { %v1305_v26 = vadd.f32 %v1289_v14, %v1209_v42  ;;  %1625 = vadd.xlane.f32.xlu0 %v3777_v55  ;;  %v889_v28 = vpop.xlane.xlu1 %888  ;;  %v1340_v55 = vld [vmem:[%s4670_s8 + $0x20] sm:$0xff]  ;;  %v1342_v14 = vld [vmem:[%s4670_s8 + $0x30] sm:$0xff] }
 0x1d5   : > { %1370 = vst.msk [vmem:[%s4670_s8 + $0x10] sm:$0xff] %vm1319_vm3, %v1354_v31  ;;  %v951_v32 = vpop.xlane.xlu0 %950  ;;  %v1670_v31 = vmul.f32 %v3821_v5, %v3821_v5 }
 0x1d6   : > { %1322 = vst.msk [vmem:[%s4669_s7 + $0x10] sm:$0xff] %vm1319_vm3, %v1305_v26 }
 0x1d7   : > { %1687 = vadd.xlane.f32.xlu1 %v1665_v25 }
 0x1d8   : > { %1901 = vadd.xlane.f32.xlu0 %v3784_v57  ;;  %v1184_v34 = vpop.xlane.xlu1 %1183 }
 0x1d9   : > { %v1246_v36 = vpop.xlane.xlu0 %1245  ;;  %v1211_v35 = vadd.f32 %v1184_v34, %v889_v28 }
 0x1da   : > { %v1274_v27 = vadd.f32 %v1246_v36, %v951_v32  ;;  %v1343_v36 = vld [vmem:[%s4670_s8 + $0x38] sm:$0xff] }
 0x1db   : > { %v1307_v43 = vadd.f32 %v1291_v33, %v1211_v35  ;;  %1627 = vadd.xlane.f32.xlu1 %v3803_v1  ;;  %v1668_v1 = vmul.f32 %v3796_v62, %v3796_v62 }
 0x1dc   : > { %v1355_v54 = vadd.f32 %v1339_v56, %v1274_v27  ;;  %1689 = vadd.xlane.f32.xlu0 %v1666_v38  ;;  %v953_v37 = vpop.xlane.xlu1 %952  ;;  %v1671_v56 = vmul.f32 %v3850_v60, %v3850_v60 }
 0x1dd   : > { %1324 = vst.msk [vmem:[%s4669_s7 + $0x20] sm:$0xff] %vm1319_vm3, %v1307_v43  ;;  %v891_v63 = vpop.xlane.xlu0 %890 }
 0x1de   : > { %1371 = vst.msk [vmem:[%s4670_s8 + $0x18] sm:$0xff] %vm1319_vm3, %v1355_v54 }
 0x1df   : > { %1903 = vadd.xlane.f32.xlu1 %v3813_v3 }
 0x1e0   : > { %1629 = vadd.xlane.f32.xlu0 %v3796_v62  ;;  %v1248_v44 = vpop.xlane.xlu1 %1247 }
 0x1e1   : > { %v1186_v6 = vpop.xlane.xlu0 %1185  ;;  %v1275_v48 = vadd.f32 %v1248_v44, %v953_v37 }
 0x1e2   : > { %v1212_v51 = vadd.f32 %v1186_v6, %v891_v63 }
 0x1e3   : > { %v1356_v13 = vadd.f32 %v1340_v55, %v1275_v48  ;;  %1691 = vadd.xlane.f32.xlu1 %v1667_v40  ;;  %v1344_v55 = vld [vmem:[%s4670_s8 + $0x40] sm:$0xff]  ;;  %v1296_v40 = vld [vmem:[%s4669_s7 + $0x48] sm:$0xff] }
 0x1e4   : > { %v1308_v18 = vadd.f32 %v1292_v50, %v1212_v51  ;;  %1905 = vadd.xlane.f32.xlu0 %v3807_v2  ;;  %v893_v58 = vpop.xlane.xlu1 %892 }
 0x1e5   : > { %1372 = vst.msk [vmem:[%s4670_s8 + $0x20] sm:$0xff] %vm1319_vm3, %v1356_v13  ;;  %v955_v39 = vpop.xlane.xlu0 %954 }
 0x1e6   : > { %1325 = vst.msk [vmem:[%s4669_s7 + $0x28] sm:$0xff] %vm1319_vm3, %v1308_v18  ;;  %v1673_v18 = vmul.f32 %v3877_v22, %v3877_v22 }
 0x1e7   : > { %1631 = vadd.xlane.f32.xlu1 %v3826_v53  ;;  %v1294_v53 = vld [vmem:[%s4669_s7 + $0x38] sm:$0xff] }
 0x1e8   : > { %1693 = vadd.xlane.f32.xlu0 %v1668_v1  ;;  %v1188_v10 = vpop.xlane.xlu1 %1187 }
 0x1e9   : > { %v1250_v24 = vpop.xlane.xlu0 %1249  ;;  %v1213_v30 = vadd.f32 %v1188_v10, %v893_v58 }
 0x1ea   : > { %v1276_v62 = vadd.f32 %v1250_v24, %v955_v39  ;;  %v1297_v39 = vld [vmem:[%s4669_s7 + $0x50] sm:$0xff]  ;;  %v1674_v24 = vmul.f32 %v3871_v20, %v3871_v20 }
 0x1eb   : > { %v1309_v4 = vadd.f32 %v1293_v21, %v1213_v30  ;;  %1907 = vadd.xlane.f32.xlu1 %v3839_v11  ;;  %v1345_v21 = vld [vmem:[%s4670_s8 + $0x48] sm:$0xff] }
 0x1ec   : > { %v1357_v7 = vadd.f32 %v1341_v23, %v1276_v62  ;;  %1633 = vadd.xlane.f32.xlu0 %v3821_v5  ;;  %v957_v47 = vpop.xlane.xlu1 %956  ;;  %v1295_v5 = vld [vmem:[%s4669_s7 + $0x40] sm:$0xff] }
 0x1ed   : > { %1326 = vst.msk [vmem:[%s4669_s7 + $0x30] sm:$0xff] %vm1319_vm3, %v1309_v4  ;;  %v895_v19 = vpop.xlane.xlu0 %894 }
 0x1ee   : > { %1373 = vst.msk [vmem:[%s4670_s8 + $0x28] sm:$0xff] %vm1319_vm3, %v1357_v7 }
 0x1ef   : > { %1695 = vadd.xlane.f32.xlu1 %v1669_v16  ;;  %v1936_v16 = vmul.f32 %v3729_v41, %v3729_v41 }
 0x1f0   : > { %1909 = vadd.xlane.f32.xlu0 %v3832_v9  ;;  %v1252_v15 = vpop.xlane.xlu1 %1251 }
 0x1f1   : > { %v1190_v29 = vpop.xlane.xlu0 %1189  ;;  %v1277_v42 = vadd.f32 %v1252_v15, %v957_v47  ;;  %v1939_v47 = vmul.f32 %v3771_v52, %v3771_v52  ;;  %v1346_v52 = vld [vmem:[%s4670_s8 + $0x50] sm:$0xff] }
 0x1f2   : > { %v1214_v26 = vadd.f32 %v1190_v29, %v895_v19  ;;  %v1941_v19 = vmul.f32 %v3790_v59, %v3790_v59 }
 0x1f3   : > { %v1358_v28 = vadd.f32 %v1342_v14, %v1277_v42  ;;  %1635 = vadd.xlane.f32.xlu1 %v3850_v60  ;;  %v1672_v60 = vmul.f32 %v3846_v12, %v3846_v12  ;;  %v1298_v14 = vld [vmem:[%s4669_s7 + $0x58] sm:$0xff] }
 0x1f4   : > { %v1310_v25 = vadd.f32 %v1294_v53, %v1214_v26  ;;  %1697 = vadd.xlane.f32.xlu0 %v1670_v31  ;;  %v897_v32 = vpop.xlane.xlu1 %896  ;;  %v1938_v53 = vmul.f32 %v3747_v45, %v3747_v45  ;;  %v1299_v45 = vld [vmem:[%s4669_s7 + $0x60] sm:$0xff] }
 0x1f5   : > { %1374 = vst.msk [vmem:[%s4670_s8 + $0x30] sm:$0xff] %vm1319_vm3, %v1358_v28  ;;  %v959_v33 = vpop.xlane.xlu0 %958  ;;  %v1943_v28 = vmul.f32 %v3813_v3, %v3813_v3 }
 0x1f6   : > { %1327 = vst.msk [vmem:[%s4669_s7 + $0x38] sm:$0xff] %vm1319_vm3, %v1310_v25  ;;  %v1940_v25 = vmul.f32 %v3764_v49, %v3764_v49 }
 0x1f7   : > { %1911 = vadd.xlane.f32.xlu1 %v3862_v0 }
 0x1f8   : > { %1637 = vadd.xlane.f32.xlu0 %v3846_v12  ;;  %v1192_v34 = vpop.xlane.xlu1 %1191 }
 0x1f9   : > { %v1254_v35 = vpop.xlane.xlu0 %1253  ;;  %v1215_v38 = vadd.f32 %v1192_v34, %v897_v32  ;;  %v1945_v32 = vmul.f32 %v3839_v11, %v3839_v11  ;;  %v1942_v34 = vmul.f32 %v3784_v57, %v3784_v57  ;;  %v1348_v57 = vld [vmem:[%s4670_s8 + $0x60] sm:$0xff] }
 0x1fa   : > { %v1278_v27 = vadd.f32 %v1254_v35, %v959_v33  ;;  %v1347_v33 = vld [vmem:[%s4670_s8 + $0x58] sm:$0xff] }
 0x1fb   : > { %v1311_v43 = vadd.f32 %v1295_v5, %v1215_v38  ;;  %1699 = vadd.xlane.f32.xlu1 %v1671_v56 }
 0x1fc   : > { %v1359_v54 = vadd.f32 %v1343_v36, %v1278_v27  ;;  %1913 = vadd.xlane.f32.xlu0 %v3857_v17  ;;  %v961_v37 = vpop.xlane.xlu1 %960  ;;  %v1947_v27 = vmul.f32 %v3862_v0, %v3862_v0 }
 0x1fd   : > { %1328 = vst.msk [vmem:[%s4669_s7 + $0x40] sm:$0xff] %vm1319_vm3, %v1311_v43  ;;  %v899_v63 = vpop.xlane.xlu0 %898  ;;  %v1944_v43 = vmul.f32 %v3807_v2, %v3807_v2 }
 0x1fe   : > { %1375 = vst.msk [vmem:[%s4670_s8 + $0x38] sm:$0xff] %vm1319_vm3, %v1359_v54  ;;  %v1949_v54 = vmul.f32 %v3886_v8, %v3886_v8 }
 0x1ff   : > { %1639 = vadd.xlane.f32.xlu1 %v3877_v22  ;;  %v1937_v22 = vmul.f32 %v3754_v46, %v3754_v46 }
 0x200   : > { %1701 = vadd.xlane.f32.xlu0 %v1672_v60  ;;  %v1256_v44 = vpop.xlane.xlu1 %1255  ;;  %v1946_v60 = vmul.f32 %v3832_v9, %v3832_v9  ;;  %v1301_v9 = vld [vmem:[%s4669_s7 + $0x70] sm:$0xff] }
 0x201   : > { %v1194_v50 = vpop.xlane.xlu0 %1193  ;;  %v1279_v6 = vadd.f32 %v1256_v44, %v961_v37  ;;  %v1300_v37 = vld [vmem:[%s4669_s7 + $0x68] sm:$0xff] }
 0x202   : > { %v1216_v12 = vadd.f32 %v1194_v50, %v899_v63 }
 0x203   : > { %v1360_v48 = vadd.f32 %v1344_v55, %v1279_v6  ;;  %1915 = vadd.xlane.f32.xlu1 %v3886_v8  ;;  %v1948_v6 = vmul.f32 %v3857_v17, %v3857_v17  ;;  %v1950_v17 = vmul.f32 %v3882_v61, %v3882_v61 }
 0x204   : > { %v1312_v51 = vadd.f32 %v1296_v40, %v1216_v12  ;;  %1641 = vadd.xlane.f32.xlu0 %v3871_v20  ;;  %v901_v13 = vpop.xlane.xlu1 %900 }
 0x205   : > { %1376 = vst.msk [vmem:[%s4670_s8 + $0x40] sm:$0xff] %vm1319_vm3, %v1360_v48  ;;  %v963_v58 = vpop.xlane.xlu0 %962  ;;  %v1349_v48 = vld [vmem:[%s4670_s8 + $0x68] sm:$0xff] }
 0x206   : > { %1329 = vst.msk [vmem:[%s4669_s7 + $0x48] sm:$0xff] %vm1319_vm3, %v1312_v51 }
 0x207   : > { %1703 = vadd.xlane.f32.xlu1 %v1673_v18 }
 0x208   : > { %1917 = vadd.xlane.f32.xlu0 %v3882_v61  ;;  %v1196_v1 = vpop.xlane.xlu1 %1195  ;;  %v1350_v61 = vld [vmem:[%s4670_s8 + $0x70] sm:$0xff] }
 0x209   : > { %v1258_v10 = vpop.xlane.xlu0 %1257  ;;  %v1217_v23 = vadd.f32 %v1196_v1, %v901_v13 }
 0x20a   : > { %v1280_v30 = vadd.f32 %v1258_v10, %v963_v58  ;;  %v1302_v10 = vld [vmem:[%s4669_s7 + $0x78] sm:$0xff] }
 0x20b   : > { %v1313_v62 = vadd.f32 %v1297_v39, %v1217_v23  ;;  %1955 = vadd.xlane.f32.xlu1 %v1937_v22 }
 0x20c   : > { %v1361_v4 = vadd.f32 %v1345_v21, %v1280_v30  ;;  %1705 = vadd.xlane.f32.xlu0 %v1674_v24  ;;  %v965_v7 = vpop.xlane.xlu1 %964 }
 0x20d   : > { %1330 = vst.msk [vmem:[%s4669_s7 + $0x50] sm:$0xff] %vm1319_vm3, %v1313_v62  ;;  %v903_v46 = vpop.xlane.xlu0 %902 }
 0x20e   : > { %1377 = vst.msk [vmem:[%s4670_s8 + $0x48] sm:$0xff] %vm1319_vm3, %v1361_v4 }
 0x20f   : > { %1959 = vadd.xlane.f32.xlu1 %v1939_v47 }
 0x210   : > { %1953 = vadd.xlane.f32.xlu0 %v1936_v16  ;;  %v1260_v20 = vpop.xlane.xlu1 %1259 }
 0x211   : > { %v1198_v41 = vpop.xlane.xlu0 %1197  ;;  %v1281_v15 = vadd.f32 %v1260_v20, %v965_v7 }
 0x212   : > { %v1218_v29 = vadd.f32 %v1198_v41, %v903_v46  ;;  %v1999_v46 = vld [vmem:[%s4671_s9] sm:$0xff] }
 0x213   : > { %v1362_v42 = vadd.f32 %v1346_v52, %v1281_v15  ;;  %1963 = vadd.xlane.f32.xlu1 %v1941_v19  ;;  %v1351_v52 = vld [vmem:[%s4670_s8 + $0x78] sm:$0xff] }
 0x214   : > { %v1314_v31 = vadd.f32 %v1298_v14, %v1218_v29  ;;  %1957 = vadd.xlane.f32.xlu0 %v1938_v53  ;;  %v905_v26 = vpop.xlane.xlu1 %904 }
 0x215   : > { %1378 = vst.msk [vmem:[%s4670_s8 + $0x50] sm:$0xff] %vm1319_vm3, %v1362_v42  ;;  %v967_v59 = vpop.xlane.xlu0 %966  ;;  %v2047_v42 = vld [vmem:[%s4672_s10] sm:$0xff] }
 0x216   : > { %1331 = vst.msk [vmem:[%s4669_s7 + $0x58] sm:$0xff] %vm1319_vm3, %v1314_v31 }
 0x217   : > { %1967 = vadd.xlane.f32.xlu1 %v1943_v28 }
 0x218   : > { %1961 = vadd.xlane.f32.xlu0 %v1940_v25  ;;  %v1200_v3 = vpop.xlane.xlu1 %1199 }
 0x219   : > { %v1262_v49 = vpop.xlane.xlu0 %1261  ;;  %v1219_v5 = vadd.f32 %v1200_v3, %v905_v26  ;;  %v2000_v26 = vld [vmem:[%s4671_s9 + $0x8] sm:$0xff] }
 0x21a   : > { %v1282_v56 = vadd.f32 %v1262_v49, %v967_v59  ;;  %v2001_v49 = vld [vmem:[%s4671_s9 + $0x10] sm:$0xff] }
 0x21b   : > { %v1315_v36 = vadd.f32 %v1299_v45, %v1219_v5  ;;  %1971 = vadd.xlane.f32.xlu1 %v1945_v32 }
 0x21c   : > { %v1363_v35 = vadd.f32 %v1347_v33, %v1282_v56  ;;  %1965 = vadd.xlane.f32.xlu0 %v1942_v34  ;;  %v969_v38 = vpop.xlane.xlu1 %968 }
 0x21d   : > { %1332 = vst.msk [vmem:[%s4669_s7 + $0x60] sm:$0xff] %vm1319_vm3, %v1315_v36  ;;  %v907_v11 = vpop.xlane.xlu0 %906 }
 0x21e   : > { %1379 = vst.msk [vmem:[%s4670_s8 + $0x58] sm:$0xff] %vm1319_vm3, %v1363_v35 }
 0x21f   : > { %1975 = vadd.xlane.f32.xlu1 %v1947_v27 }
 0x220   : > { %1969 = vadd.xlane.f32.xlu0 %v1944_v43  ;;  %v1264_v0 = vpop.xlane.xlu1 %1263 }
 0x221   : > { %v1202_v2 = vpop.xlane.xlu0 %1201  ;;  %v1283_v63 = vadd.f32 %v1264_v0, %v969_v38  ;;  %v2002_v38 = vld [vmem:[%s4671_s9 + $0x18] sm:$0xff] }
 0x222   : > { %v1220_v55 = vadd.f32 %v1202_v2, %v907_v11 }
 0x223   : > { %v1364_v44 = vadd.f32 %v1348_v57, %v1283_v63  ;;  %1979 = vadd.xlane.f32.xlu1 %v1949_v54  ;;  %v2003_v54 = vld [vmem:[%s4671_s9 + $0x20] sm:$0xff] }
 0x224   : > { %v1316_v40 = vadd.f32 %v1300_v37, %v1220_v55  ;;  %1973 = vadd.xlane.f32.xlu0 %v1946_v60  ;;  %v909_v50 = vpop.xlane.xlu1 %908 }
 0x225   : > { %1380 = vst.msk [vmem:[%s4670_s8 + $0x60] sm:$0xff] %vm1319_vm3, %v1364_v44  ;;  %v971_v8 = vpop.xlane.xlu0 %970  ;;  %v2004_v44 = vld [vmem:[%s4671_s9 + $0x28] sm:$0xff] }
 0x226   : > { %1333 = vst.msk [vmem:[%s4669_s7 + $0x68] sm:$0xff] %vm1319_vm3, %v1316_v40 }
 0x228   : > { %1977 = vadd.xlane.f32.xlu0 %v1948_v6  ;;  %v1204_v12 = vpop.xlane.xlu1 %1203 }
 0x229   : > { %v1266_v51 = vpop.xlane.xlu0 %1265  ;;  %v1221_v13 = vadd.f32 %v1204_v12, %v909_v50  ;;  %v2005_v12 = vld [vmem:[%s4671_s9 + $0x30] sm:$0xff] }
 0x22a   : > { %v1284_v18 = vadd.f32 %v1266_v51, %v971_v8 }
 0x22b   : > { %v1317_v58 = vadd.f32 %v1301_v9, %v1221_v13 }
 0x22c   : > { %v1365_v39 = vadd.f32 %v1349_v48, %v1284_v18  ;;  %1981 = vadd.xlane.f32.xlu0 %v1950_v17  ;;  %v973_v1 = vpop.xlane.xlu1 %972 }
 0x22d   : > { %1334 = vst.msk [vmem:[%s4669_s7 + $0x70] sm:$0xff] %vm1319_vm3, %v1317_v58  ;;  %v911_v22 = vpop.xlane.xlu0 %910  ;;  %v2006_v58 = vld [vmem:[%s4671_s9 + $0x38] sm:$0xff] }
 0x22e   : > { %1381 = vst.msk [vmem:[%s4670_s8 + $0x68] sm:$0xff] %vm1319_vm3, %v1365_v39 }
 0x230   : > { %v1268_v21 = vpop.xlane.xlu1 %1267 }
 0x231   : > { %v1206_v23 = vpop.xlane.xlu0 %1205  ;;  %v1285_v24 = vadd.f32 %v1268_v21, %v973_v1 }
 0x232   : > { %v1222_v30 = vadd.f32 %v1206_v23, %v911_v22 }
 0x233   : > { %v1366_v62 = vadd.f32 %v1350_v61, %v1285_v24 }
 0x234   : > { %v1318_v4 = vadd.f32 %v1302_v10, %v1222_v30  ;;  %v1612_v7 = vpop.xlane.xlu1 %1611  ;;  %v2007_v10 = vld [vmem:[%s4671_s9 + $0x40] sm:$0xff] }
 0x235   : > { %1382 = vst.msk [vmem:[%s4670_s8 + $0x70] sm:$0xff] %vm1319_vm3, %v1366_v62  ;;  %v975_v47 = vpop.xlane.xlu0 %974 }
 0x236   : > { %1335 = vst.msk [vmem:[%s4669_s7 + $0x78] sm:$0xff] %vm1319_vm3, %v1318_v4 }
 0x238   : > { %v1888_v16 = vpop.xlane.xlu1 %1887 }
 0x239   : > { %v1270_v20 = vpop.xlane.xlu0 %1269  ;;  %v1919_v19 = vadd.f32 %v1888_v16, %v1612_v7  ;;  %v2008_v7 = vld [vmem:[%s4671_s9 + $0x48] sm:$0xff] }
 0x23a   : > { %v1286_v14 = vadd.f32 %v1270_v20, %v975_v47 }
 0x23b   : > { %v2015_v41 = vadd.f32 %v1999_v46, %v1919_v19  ;;  %v2009_v19 = vld [vmem:[%s4671_s9 + $0x50] sm:$0xff] }
 0x23c   : > { %v1367_v15 = vadd.f32 %v1351_v52, %v1286_v14  ;;  %v1676_v53 = vpop.xlane.xlu1 %1675 }
 0x23d   : > { %2031 = vst.msk [vmem:[%s4671_s9] sm:$0xff] %vm1319_vm3, %v2015_v41  ;;  %v1614_v29 = vpop.xlane.xlu0 %1613 }
 0x23e   : > { %1383 = vst.msk [vmem:[%s4670_s8 + $0x78] sm:$0xff] %vm1319_vm3, %v1367_v15 }
 0x240   : > { %v1952_v31 = vpop.xlane.xlu1 %1951 }
 0x241   : > { %v1890_v28 = vpop.xlane.xlu0 %1889  ;;  %v1983_v59 = vadd.f32 %v1952_v31, %v1676_v53 }
 0x242   : > { %v1920_v25 = vadd.f32 %v1890_v28, %v1614_v29 }
 0x243   : > { %v2063_v45 = vadd.f32 %v2047_v42, %v1983_v59  ;;  %v2010_v42 = vld [vmem:[%s4671_s9 + $0x58] sm:$0xff] }
 0x244   : > { %v2016_v3 = vadd.f32 %v2000_v26, %v1920_v25  ;;  %v1616_v32 = vpop.xlane.xlu1 %1615 }
 0x245   : > { %2079 = vst.msk [vmem:[%s4672_s10] sm:$0xff] %vm1319_vm3, %v2063_v45  ;;  %v4256_v33 = vpop.xlane.xlu0 %1677  ;;  %v2011_v45 = vld [vmem:[%s4671_s9 + $0x60] sm:$0xff] }
 0x246   : > { %2032 = vst.msk [vmem:[%s4671_s9 + $0x8] sm:$0xff] %vm1319_vm3, %v2016_v3 }
 0x248   : > { %v1892_v5 = vpop.xlane.xlu1 %1891 }
 0x249   : > { %v1618_v34 = vpop.xlane.xlu0 %1617  ;;  %v1921_v56 = vadd.f32 %v1892_v5, %v1616_v32 }
 0x24b   : > { %v2017_v36 = vadd.f32 %v2001_v49, %v1921_v56  ;;  %v2012_v56 = vld [vmem:[%s4671_s9 + $0x68] sm:$0xff] }
 0x24c   : > { %v4265_v35 = vpop.xlane.xlu1 %1679 }
 0x24d   : > { %2033 = vst.msk [vmem:[%s4671_s9 + $0x10] sm:$0xff] %vm1319_vm3, %v2017_v36  ;;  %v1894_v27 = vpop.xlane.xlu0 %1893 }
 0x24e   : > { %v1922_v11 = vadd.f32 %v1894_v27, %v1618_v34 }
 0x250   : > { %v2018_v43 = vadd.f32 %v2002_v38, %v1922_v11  ;;  %v1620_v57 = vpop.xlane.xlu1 %1619 }
 0x251   : > { %v4274_v0 = vpop.xlane.xlu0 %1681 }
 0x252   : > { %2034 = vst.msk [vmem:[%s4671_s9 + $0x18] sm:$0xff] %vm1319_vm3, %v2018_v43 }
 0x254   : > { %v1896_v37 = vpop.xlane.xlu1 %1895 }
 0x255   : > { %v1622_v2 = vpop.xlane.xlu0 %1621  ;;  %v1923_v63 = vadd.f32 %v1896_v37, %v1620_v57  ;;  %v2013_v57 = vld [vmem:[%s4671_s9 + $0x70] sm:$0xff] }
 0x257   : > { %v2019_v60 = vadd.f32 %v2003_v54, %v1923_v63 }
 0x258   : > { %v4283_v55 = vpop.xlane.xlu1 %1683 }
 0x259   : > { %2035 = vst.msk [vmem:[%s4671_s9 + $0x20] sm:$0xff] %vm1319_vm3, %v2019_v60  ;;  %v1898_v40 = vpop.xlane.xlu0 %1897 }
 0x25a   : > { %v1924_v50 = vadd.f32 %v1898_v40, %v1622_v2 }
 0x25c   : > { %v2020_v8 = vadd.f32 %v2004_v44, %v1924_v50  ;;  %v1624_v6 = vpop.xlane.xlu1 %1623  ;;  %v2014_v44 = vld [vmem:[%s4671_s9 + $0x78] sm:$0xff] }
 0x25d   : > { %v4292_v9 = vpop.xlane.xlu0 %1685 }
 0x25e   : > { %2036 = vst.msk [vmem:[%s4671_s9 + $0x28] sm:$0xff] %vm1319_vm3, %v2020_v8 }
 0x260   : > { %v1900_v48 = vpop.xlane.xlu1 %1899 }
 0x261   : > { %v1626_v51 = vpop.xlane.xlu0 %1625  ;;  %v1925_v13 = vadd.f32 %v1900_v48, %v1624_v6  ;;  %v2049_v6 = vld [vmem:[%s4672_s10 + $0x10] sm:$0xff] }
 0x263   : > { %v2021_v17 = vadd.f32 %v2005_v12, %v1925_v13 }
 0x264   : > { %v4301_v18 = vpop.xlane.xlu1 %1687 }
 0x265   : > { %2037 = vst.msk [vmem:[%s4671_s9 + $0x30] sm:$0xff] %vm1319_vm3, %v2021_v17  ;;  %v1902_v39 = vpop.xlane.xlu0 %1901  ;;  %v2051_v17 = vld [vmem:[%s4672_s10 + $0x20] sm:$0xff] }
 0x266   : > { %v1926_v1 = vadd.f32 %v1902_v39, %v1626_v51 }
 0x268   : > { %v2022_v22 = vadd.f32 %v2006_v58, %v1926_v1  ;;  %v1628_v61 = vpop.xlane.xlu1 %1627 }
 0x269   : > { %v4310_v21 = vpop.xlane.xlu0 %1689 }
 0x26a   : > { %2038 = vst.msk [vmem:[%s4671_s9 + $0x38] sm:$0xff] %vm1319_vm3, %v2022_v22 }
 0x26c   : > { %v1904_v23 = vpop.xlane.xlu1 %1903 }
 0x26d   : > { %v1630_v24 = vpop.xlane.xlu0 %1629  ;;  %v1927_v30 = vadd.f32 %v1904_v23, %v1628_v61  ;;  %v2053_v23 = vld [vmem:[%s4672_s10 + $0x30] sm:$0xff] }
 0x26f   : > { %v2023_v62 = vadd.f32 %v2007_v10, %v1927_v30  ;;  %v2050_v30 = vld [vmem:[%s4672_s10 + $0x18] sm:$0xff] }
 0x270   : > { %v4319_v4 = vpop.xlane.xlu1 %1691 }
 0x271   : > { %2039 = vst.msk [vmem:[%s4671_s9 + $0x40] sm:$0xff] %vm1319_vm3, %v2023_v62  ;;  %v1906_v47 = vpop.xlane.xlu0 %1905 }
 0x272   : > { %v1928_v46 = vadd.f32 %v1906_v47, %v1630_v24 }
 0x274   : > { %v2024_v16 = vadd.f32 %v2008_v7, %v1928_v46  ;;  %v1632_v52 = vpop.xlane.xlu1 %1631  ;;  %v2055_v46 = vld [vmem:[%s4672_s10 + $0x40] sm:$0xff] }
 0x275   : > { %v4328_v20 = vpop.xlane.xlu0 %1693 }
 0x276   : > { %2040 = vst.msk [vmem:[%s4671_s9 + $0x48] sm:$0xff] %vm1319_vm3, %v2024_v16 }
 0x278   : > { %v1908_v14 = vpop.xlane.xlu1 %1907 }
 0x279   : > { %v1634_v41 = vpop.xlane.xlu0 %1633  ;;  %v1929_v15 = vadd.f32 %v1908_v14, %v1632_v52 }
 0x27b   : > { %v2025_v53 = vadd.f32 %v2009_v19, %v1929_v15  ;;  %v2057_v15 = vld [vmem:[%s4672_s10 + $0x50] sm:$0xff] }
 0x27c   : > { %v4337_v29 = vpop.xlane.xlu1 %1695 }
 0x27d   : > { %2041 = vst.msk [vmem:[%s4671_s9 + $0x50] sm:$0xff] %vm1319_vm3, %v2025_v53  ;;  %v1910_v31 = vpop.xlane.xlu0 %1909 }
 0x27e   : > { %v1930_v26 = vadd.f32 %v1910_v31, %v1634_v41 }
 0x280   : > { %v2026_v28 = vadd.f32 %v2010_v42, %v1930_v26  ;;  %v1636_v59 = vpop.xlane.xlu1 %1635 }
 0x281   : > { %v4346_v25 = vpop.xlane.xlu0 %1697 }
 0x282   : > { %2042 = vst.msk [vmem:[%s4671_s9 + $0x58] sm:$0xff] %vm1319_vm3, %v2026_v28 }
 0x284   : > { %v1912_v3 = vpop.xlane.xlu1 %1911 }
 0x285   : > { %v1638_v32 = vpop.xlane.xlu0 %1637  ;;  %v1931_v49 = vadd.f32 %v1912_v3, %v1636_v59  ;;  %v2059_v59 = vld [vmem:[%s4672_s10 + $0x60] sm:$0xff] }
 0x287   : > { %v2027_v5 = vadd.f32 %v2011_v45, %v1931_v49 }
 0x288   : > { %v4355_v34 = vpop.xlane.xlu1 %1699 }
 0x289   : > { %2043 = vst.msk [vmem:[%s4671_s9 + $0x60] sm:$0xff] %vm1319_vm3, %v2027_v5  ;;  %v1914_v36 = vpop.xlane.xlu0 %1913 }
 0x28a   : > { %v1932_v38 = vadd.f32 %v1914_v36, %v1638_v32 }
 0x28c   : > { %v2028_v27 = vadd.f32 %v2012_v56, %v1932_v38  ;;  %v1640_v11 = vpop.xlane.xlu1 %1639  ;;  %v2061_v56 = vld [vmem:[%s4672_s10 + $0x70] sm:$0xff] }
 0x28d   : > { %v4364_v43 = vpop.xlane.xlu0 %1701 }
 0x28e   : > { %2044 = vst.msk [vmem:[%s4671_s9 + $0x68] sm:$0xff] %vm1319_vm3, %v2028_v27 }
 0x290   : > { %v1916_v54 = vpop.xlane.xlu1 %1915 }
 0x291   : > { %v1642_v37 = vpop.xlane.xlu0 %1641  ;;  %v1933_v2 = vadd.f32 %v1916_v54, %v1640_v11  ;;  %v2060_v54 = vld [vmem:[%s4672_s10 + $0x68] sm:$0xff] }
 0x293   : > { %v2029_v63 = vadd.f32 %v2013_v57, %v1933_v2 }
 0x294   : > { %v4373_v60 = vpop.xlane.xlu1 %1703 }
 0x295   : > { %2045 = vst.msk [vmem:[%s4671_s9 + $0x70] sm:$0xff] %vm1319_vm3, %v2029_v63  ;;  %v1918_v40 = vpop.xlane.xlu0 %1917  ;;  %v2062_v63 = vld [vmem:[%s4672_s10 + $0x78] sm:$0xff] }
 0x296   : > { %v1934_v50 = vadd.f32 %v1918_v40, %v1642_v37 }
 0x298   : > { %v2030_v8 = vadd.f32 %v2014_v44, %v1934_v50  ;;  %v1956_v12 = vpop.xlane.xlu1 %1955  ;;  %v2199_v50 = vld [vmem:[%s3048_s30 + $0x8] sm:$0xff] (%p3022_p5) }
 0x299   : > { %v4385_v48 = vpop.xlane.xlu0 %1705  ;;  %v1985_v51 = vadd.f32 %v1956_v12, %v4265_v35  ;;  %v2048_v35 = vld [vmem:[%s4672_s10 + $0x8] sm:$0xff]  ;;  %v2205_v12 = vld [vmem:[%s3048_s30 + $0x20] sm:$0xff] (%p3022_p5)  ;;  %2200 = vst [vmem:[%s4517_s27 + $0x10] sm:$0xff] (%p3022_p5), %v2199_v50 }
 0x29a   : > { %2046 = vst.msk [vmem:[%s4671_s9 + $0x78] sm:$0xff] %vm1319_vm3, %v2030_v8  ;;  %v2201_v8 = vld [vmem:[%s3048_s30 + $0x10] sm:$0xff] (%p3022_p5)  ;;  %2206 = vst [vmem:[%s4517_s27 + $0x40] sm:$0xff] (%p3022_p5), %v2205_v12 }
 0x29b   : > { %v2065_v13 = vadd.f32 %v2049_v6, %v1985_v51  ;;  %v2203_v6 = vld [vmem:[%s3048_s30 + $0x18] sm:$0xff] (%p3022_p5)  ;;  %2202 = vst [vmem:[%s4517_s27 + $0x20] sm:$0xff] (%p3022_p5), %v2201_v8  ;;  %v2209_v51 = vld [vmem:[%s3048_s30 + $0x30] sm:$0xff] (%p3022_p5) }
 0x29c   : > { %v1960_v58 = vpop.xlane.xlu1 %1959  ;;  %2204 = vst [vmem:[%s4517_s27 + $0x30] sm:$0xff] (%p3022_p5), %v2203_v6  ;;  %2210 = vst [vmem:[%s4517_s27 + $0x60] sm:$0xff] (%p3022_p5), %v2209_v51 }
 0x29d   : > { %2081 = vst.msk [vmem:[%s4672_s10 + $0x10] sm:$0xff] %vm1319_vm3, %v2065_v13  ;;  %v1954_v39 = vpop.xlane.xlu0 %1953  ;;  %v1987_v1 = vadd.f32 %v1960_v58, %v4283_v55  ;;  %v2211_v13 = vld [vmem:[%s3048_s30 + $0x38] sm:$0xff] (%p3022_p5)  ;;  %v2215_v58 = vld [vmem:[%s3048_s30 + $0x48] sm:$0xff] (%p3022_p5) }
 0x29e   : > { %v1984_v22 = vadd.f32 %v1954_v39, %v4256_v33  ;;  %2212 = vst [vmem:[%s4517_s27 + $0x70] sm:$0xff] (%p3022_p5), %v2211_v13  ;;  %v2219_v39 = vld [vmem:[%s3048_s30 + $0x58] sm:$0xff] (%p3022_p5)  ;;  %2216 = vst [vmem:[%s4517_s27 + $0x90] sm:$0xff] (%p3022_p5), %v2215_v58 }
 0x29f   : > { %v2067_v61 = vadd.f32 %v2051_v17, %v1987_v1  ;;  %v2213_v17 = vld [vmem:[%s3048_s30 + $0x40] sm:$0xff] (%p3022_p5)  ;;  %2220 = vst [vmem:[%s4517_s27 + $0xb0] sm:$0xff] (%p3022_p5), %v2219_v39 }
 0x2a0   : > { %v2064_v10 = vadd.f32 %v2048_v35, %v1984_v22  ;;  %v1964_v24 = vpop.xlane.xlu1 %1963  ;;  %2214 = vst [vmem:[%s4517_s27 + $0x80] sm:$0xff] (%p3022_p5), %v2213_v17  ;;  %v2217_v35 = vld [vmem:[%s3048_s30 + $0x50] sm:$0xff] (%p3022_p5)  ;;  %v2221_v1 = vld [vmem:[%s3048_s30 + $0x60] sm:$0xff] (%p3022_p5)  ;;  %v2223_v22 = vld [vmem:[%s3048_s30 + $0x68] sm:$0xff] (%p3022_p5) }
 0x2a1   : > { %2083 = vst.msk [vmem:[%s4672_s10 + $0x20] sm:$0xff] %vm1319_vm3, %v2067_v61  ;;  %v1958_v62 = vpop.xlane.xlu0 %1957  ;;  %v1989_v55 = vadd.f32 %v1964_v24, %v4301_v18  ;;  %v2052_v18 = vld [vmem:[%s4672_s10 + $0x28] sm:$0xff]  ;;  %2218 = vst [vmem:[%s4517_s27 + $0xa0] sm:$0xff] (%p3022_p5), %v2217_v35  ;;  %v2225_v61 = vld [vmem:[%s3048_s30 + $0x70] sm:$0xff] (%p3022_p5) }
 0x2a2   : > { %2080 = vst.msk [vmem:[%s4672_s10 + $0x8] sm:$0xff] %vm1319_vm3, %v2064_v10  ;;  %v1986_v33 = vadd.f32 %v1958_v62, %v4274_v0  ;;  %2222 = vst [vmem:[%s4517_s27 + $0xc0] sm:$0xff] (%p3022_p5), %v2221_v1  ;;  %v2227_v10 = vld [vmem:[%s3048_s30 + $0x78] sm:$0xff] (%p3022_p5)  ;;  %v2231_v24 = vld [vmem:[%s3048_s30 + $0x88] sm:$0xff] (%p3022_p5) }
 0x2a3   : > { %v2069_v7 = vadd.f32 %v2053_v23, %v1989_v55  ;;  %2224 = vst [vmem:[%s4517_s27 + $0xd0] sm:$0xff] (%p3022_p5), %v2223_v22  ;;  %2226 = vst [vmem:[%s4517_s27 + $0xe0] sm:$0xff] (%p3022_p5), %v2225_v61  ;;  %v2229_v23 = vld [vmem:[%s3048_s30 + $0x80] sm:$0xff] (%p3022_p5)  ;;  %v2235_v62 = vld [vmem:[%s3048_s30 + $0x98] sm:$0xff] (%p3022_p5) }
 0x2a4   : > { %v2066_v47 = vadd.f32 %v2050_v30, %v1986_v33  ;;  %v1968_v16 = vpop.xlane.xlu1 %1967  ;;  %2228 = vst [vmem:[%s4517_s27 + $0xf0] sm:$0xff] (%p3022_p5), %v2227_v10  ;;  %2230 = vst [vmem:[%s4517_s27 + $0x100] sm:$0xff] (%p3022_p5), %v2229_v23  ;;  %v2233_v30 = vld [vmem:[%s3048_s30 + $0x90] sm:$0xff] (%p3022_p5)  ;;  %v2237_v55 = vld [vmem:[%s3048_s30 + $0xa0] sm:$0xff] (%p3022_p5) }
 0x2a5   : > { %2085 = vst.msk [vmem:[%s4672_s10 + $0x30] sm:$0xff] %vm1319_vm3, %v2069_v7  ;;  %v1962_v52 = vpop.xlane.xlu0 %1961  ;;  %v1991_v19 = vadd.f32 %v1968_v16, %v4319_v4  ;;  %v2054_v4 = vld [vmem:[%s4672_s10 + $0x38] sm:$0xff]  ;;  %2232 = vst [vmem:[%s4517_s27 + $0x110] sm:$0xff] (%p3022_p5), %v2231_v24  ;;  %v2239_v33 = vld [vmem:[%s3048_s30 + $0xa8] sm:$0xff] (%p3022_p5) }
 0x2a6   : > { %2082 = vst.msk [vmem:[%s4672_s10 + $0x18] sm:$0xff] %vm1319_vm3, %v2066_v47  ;;  %v1988_v0 = vadd.f32 %v1962_v52, %v4292_v9  ;;  %2234 = vst [vmem:[%s4517_s27 + $0x120] sm:$0xff] (%p3022_p5), %v2233_v30  ;;  %v2241_v7 = vld [vmem:[%s3048_s30 + $0xb0] sm:$0xff] (%p3022_p5)  ;;  %v2243_v47 = vld [vmem:[%s3048_s30 + $0xb8] sm:$0xff] (%p3022_p5) }
 0x2a7   : > { %v2071_v14 = vadd.f32 %v2055_v46, %v1991_v19  ;;  %2236 = vst [vmem:[%s4517_s27 + $0x130] sm:$0xff] (%p3022_p5), %v2235_v62  ;;  %2238 = vst [vmem:[%s4517_s27 + $0x140] sm:$0xff] (%p3022_p5), %v2237_v55  ;;  %v2245_v46 = vld [vmem:[%s3048_s30 + $0xc0] sm:$0xff] (%p3022_p5)  ;;  %v2247_v16 = vld [vmem:[%s3048_s30 + $0xc8] sm:$0xff] (%p3022_p5) }
 0x2a8   : > { %v2068_v41 = vadd.f32 %v2052_v18, %v1988_v0  ;;  %v1972_v53 = vpop.xlane.xlu1 %1971  ;;  %2240 = vst [vmem:[%s4517_s27 + $0x150] sm:$0xff] (%p3022_p5), %v2239_v33  ;;  %2242 = vst [vmem:[%s4517_s27 + $0x160] sm:$0xff] (%p3022_p5), %v2241_v7  ;;  %v2249_v18 = vld [vmem:[%s3048_s30 + $0xd0] sm:$0xff] (%p3022_p5)  ;;  %v2251_v52 = vld [vmem:[%s3048_s30 + $0xd8] sm:$0xff] (%p3022_p5) }
 0x2a9   : > { %2087 = vst.msk [vmem:[%s4672_s10 + $0x40] sm:$0xff] %vm1319_vm3, %v2071_v14  ;;  %v1966_v42 = vpop.xlane.xlu0 %1965  ;;  %v1993_v31 = vadd.f32 %v1972_v53, %v4337_v29  ;;  %v2056_v29 = vld [vmem:[%s4672_s10 + $0x48] sm:$0xff]  ;;  %2244 = vst [vmem:[%s4517_s27 + $0x170] sm:$0xff] (%p3022_p5), %v2243_v47  ;;  %v2253_v19 = vld [vmem:[%s3048_s30 + $0xe0] sm:$0xff] (%p3022_p5) }
 0x2aa   : > { %2084 = vst.msk [vmem:[%s4672_s10 + $0x28] sm:$0xff] %vm1319_vm3, %v2068_v41  ;;  %v1990_v9 = vadd.f32 %v1966_v42, %v4310_v21  ;;  %2246 = vst [vmem:[%s4517_s27 + $0x180] sm:$0xff] (%p3022_p5), %v2245_v46  ;;  %v2255_v0 = vld [vmem:[%s3048_s30 + $0xe8] sm:$0xff] (%p3022_p5)  ;;  %v2257_v14 = vld [vmem:[%s3048_s30 + $0xf0] sm:$0xff] (%p3022_p5) }
 0x2ab   : > { %v2073_v26 = vadd.f32 %v2057_v15, %v1993_v31  ;;  %2248 = vst [vmem:[%s4517_s27 + $0x190] sm:$0xff] (%p3022_p5), %v2247_v16  ;;  %2250 = vst [vmem:[%s4517_s27 + $0x1a0] sm:$0xff] (%p3022_p5), %v2249_v18  ;;  %v2259_v41 = vld [vmem:[%s3048_s30 + $0xf8] sm:$0xff] (%p3022_p5) }
 0x2ac   : > { %v2070_v28 = vadd.f32 %v2054_v4, %v1990_v9  ;;  %v1976_v45 = vpop.xlane.xlu1 %1975  ;;  %2252 = vst [vmem:[%s4517_s27 + $0x1b0] sm:$0xff] (%p3022_p5), %v2251_v52  ;;  %2254 = vst [vmem:[%s4517_s27 + $0x1c0] sm:$0xff] (%p3022_p5), %v2253_v19 }
 0x2ad   : > { %2089 = vst.msk [vmem:[%s4672_s10 + $0x50] sm:$0xff] %vm1319_vm3, %v2073_v26  ;;  %v1970_v3 = vpop.xlane.xlu0 %1969  ;;  %v1995_v32 = vadd.f32 %v1976_v45, %v4355_v34  ;;  %v2058_v34 = vld [vmem:[%s4672_s10 + $0x58] sm:$0xff]  ;;  %2256 = vst [vmem:[%s4517_s27 + $0x1d0] sm:$0xff] (%p3022_p5), %v2255_v0 }
 0x2ae   : > { %2086 = vst.msk [vmem:[%s4672_s10 + $0x38] sm:$0xff] %vm1319_vm3, %v2070_v28  ;;  %v1992_v21 = vadd.f32 %v1970_v3, %v4328_v20  ;;  %2258 = vst [vmem:[%s4517_s27 + $0x1e0] sm:$0xff] (%p3022_p5), %v2257_v14 }
 0x2af   : > { %v2075_v49 = vadd.f32 %v2059_v59, %v1995_v32  ;;  %2260 = vst [vmem:[%s4517_s27 + $0x1f0] sm:$0xff] (%p3022_p5), %v2259_v41 }
 0x2b0   : > { %v2072_v5 = vadd.f32 %v2056_v29, %v1992_v21  ;;  %v1980_v36 = vpop.xlane.xlu1 %1979 }
 0x2b1   : > { %2091 = vst.msk [vmem:[%s4672_s10 + $0x60] sm:$0xff] %vm1319_vm3, %v2075_v49  ;;  %v1974_v38 = vpop.xlane.xlu0 %1973  ;;  %v1997_v27 = vadd.f32 %v1980_v36, %v4373_v60 }
 0x2b2   : > { %2088 = vst.msk [vmem:[%s4672_s10 + $0x48] sm:$0xff] %vm1319_vm3, %v2072_v5  ;;  %v1994_v20 = vadd.f32 %v1974_v38, %v4346_v25 }
 0x2b3   : > { %v2077_v11 = vadd.f32 %v2061_v56, %v1997_v27 }
 0x2b4   : > { %v2074_v57 = vadd.f32 %v2058_v34, %v1994_v20 }
 0x2b5   : > { %2093 = vst.msk [vmem:[%s4672_s10 + $0x70] sm:$0xff] %vm1319_vm3, %v2077_v11  ;;  %v1978_v37 = vpop.xlane.xlu0 %1977 }
 0x2b6   : > { %2090 = vst.msk [vmem:[%s4672_s10 + $0x58] sm:$0xff] %vm1319_vm3, %v2074_v57  ;;  %v1996_v2 = vadd.f32 %v1978_v37, %v4364_v43  ;;  %v2197_v43 = vld [vmem:[%s3048_s30] sm:$0xff] (%p3022_p5) }
 0x2b7   : > { %2198 = vst [vmem:[%s4517_s27] sm:$0xff] (%p3022_p5), %v2197_v43 }
 0x2b8   : > { %v2076_v25 = vadd.f32 %v2060_v54, %v1996_v2  ;;  %2105 = sbr.rel (!%p3022_p5) target bundleno = 703 (0x2bf), region = 124 }
 0x2b9   : > { %v1982_v60 = vpop.xlane.xlu0 %1981 }
 0x2ba   : > { %2092 = vst.msk [vmem:[%s4672_s10 + $0x68] sm:$0xff] %vm1319_vm3, %v2076_v25  ;;  %v1998_v44 = vadd.f32 %v1982_v60, %v4385_v48  ;;  %v2207_v48 = vld [vmem:[%s3048_s30 + $0x28] sm:$0xff] (%p3022_p5) }
 0x2bb   : > { %2208 = vst [vmem:[%s4517_s27 + $0x50] sm:$0xff] (%p3022_p5), %v2207_v48 }
 0x2bc   : > { %v2078_v40 = vadd.f32 %v2062_v63, %v1998_v44 }
 0x2be   : > { %2094 = vst.msk [vmem:[%s4672_s10 + $0x78] sm:$0xff] %vm1319_vm3, %v2078_v40 }
 0x2bf PF: > { %2266 = sbr.rel (!%p3022_p5) target bundleno = 721 (0x2d1), region = 162  ;;  %s2669_s15 = sshll.u32 (%p3022_p5), %s3003_s16, 3  ;;  %v2358_v15 = vld [vmem:[%s3050_s11] sm:$0xff] (%p3022_p5)  ;;  %v2360_v53 = vld [vmem:[%s3050_s11 + $0x8] sm:$0xff] (%p3022_p5)  ;;  %v2362_v4 = vld [vmem:[%s3050_s11 + $0x10] sm:$0xff] (%p3022_p5) }
 0x2c0   : > { %s4589_s12 = scalar_lea.vmem (%p3022_p5), %s4668_s6, %s2669_s15  ;;  %v2364_v42 = vld [vmem:[%s3050_s11 + $0x18] sm:$0xff] (%p3022_p5)  ;;  %v2366_v31 = vld [vmem:[%s3050_s11 + $0x20] sm:$0xff] (%p3022_p5)  ;;  %v2368_v9 = vld [vmem:[%s3050_s11 + $0x28] sm:$0xff] (%p3022_p5) }
 0x2c1   : > { %2359 = vst [vmem:[%s4589_s12] sm:$0xff] (%p3022_p5), %v2358_v15  ;;  %2361 = vst [vmem:[%s4589_s12 + $0x10] sm:$0xff] (%p3022_p5), %v2360_v53  ;;  %v2370_v26 = vld [vmem:[%s3050_s11 + $0x30] sm:$0xff] (%p3022_p5)  ;;  %v2372_v28 = vld [vmem:[%s3050_s11 + $0x38] sm:$0xff] (%p3022_p5) }
 0x2c2   : > { %2363 = vst [vmem:[%s4589_s12 + $0x20] sm:$0xff] (%p3022_p5), %v2362_v4  ;;  %2365 = vst [vmem:[%s4589_s12 + $0x30] sm:$0xff] (%p3022_p5), %v2364_v42  ;;  %v2374_v59 = vld [vmem:[%s3050_s11 + $0x40] sm:$0xff] (%p3022_p5)  ;;  %v2376_v45 = vld [vmem:[%s3050_s11 + $0x48] sm:$0xff] (%p3022_p5) }
 0x2c3   : > { %2367 = vst [vmem:[%s4589_s12 + $0x40] sm:$0xff] (%p3022_p5), %v2366_v31  ;;  %2369 = vst [vmem:[%s4589_s12 + $0x50] sm:$0xff] (%p3022_p5), %v2368_v9  ;;  %v2378_v29 = vld [vmem:[%s3050_s11 + $0x50] sm:$0xff] (%p3022_p5)  ;;  %v2380_v3 = vld [vmem:[%s3050_s11 + $0x58] sm:$0xff] (%p3022_p5) }
 0x2c4   : > { %2371 = vst [vmem:[%s4589_s12 + $0x60] sm:$0xff] (%p3022_p5), %v2370_v26  ;;  %2373 = vst [vmem:[%s4589_s12 + $0x70] sm:$0xff] (%p3022_p5), %v2372_v28  ;;  %v2382_v32 = vld [vmem:[%s3050_s11 + $0x60] sm:$0xff] (%p3022_p5)  ;;  %v2384_v21 = vld [vmem:[%s3050_s11 + $0x68] sm:$0xff] (%p3022_p5) }
 0x2c5   : > { %2375 = vst [vmem:[%s4589_s12 + $0x80] sm:$0xff] (%p3022_p5), %v2374_v59  ;;  %2377 = vst [vmem:[%s4589_s12 + $0x90] sm:$0xff] (%p3022_p5), %v2376_v45  ;;  %v2386_v49 = vld [vmem:[%s3050_s11 + $0x70] sm:$0xff] (%p3022_p5)  ;;  %v2388_v5 = vld [vmem:[%s3050_s11 + $0x78] sm:$0xff] (%p3022_p5) }
 0x2c6   : > { %2379 = vst [vmem:[%s4589_s12 + $0xa0] sm:$0xff] %v2378_v29  ;;  %2381 = vst [vmem:[%s4589_s12 + $0xb0] sm:$0xff] %v2380_v3  ;;  %v2390_v56 = vld [vmem:[%s3050_s11 + $0x80] sm:$0xff]  ;;  %v2392_v36 = vld [vmem:[%s3050_s11 + $0x88] sm:$0xff] }
 0x2c7   : > { %2383 = vst [vmem:[%s4589_s12 + $0xc0] sm:$0xff] %v2382_v32  ;;  %2385 = vst [vmem:[%s4589_s12 + $0xd0] sm:$0xff] %v2384_v21  ;;  %v2394_v34 = vld [vmem:[%s3050_s11 + $0x90] sm:$0xff]  ;;  %v2396_v38 = vld [vmem:[%s3050_s11 + $0x98] sm:$0xff] }
 0x2c8   : > { %2387 = vst [vmem:[%s4589_s12 + $0xe0] sm:$0xff] %v2386_v49  ;;  %2389 = vst [vmem:[%s4589_s12 + $0xf0] sm:$0xff] %v2388_v5  ;;  %v2398_v27 = vld [vmem:[%s3050_s11 + $0xa0] sm:$0xff]  ;;  %v2400_v20 = vld [vmem:[%s3050_s11 + $0xa8] sm:$0xff] }
 0x2c9   : > { %2391 = vst [vmem:[%s4589_s12 + $0x100] sm:$0xff] %v2390_v56  ;;  %2393 = vst [vmem:[%s4589_s12 + $0x110] sm:$0xff] %v2392_v36  ;;  %v2402_v11 = vld [vmem:[%s3050_s11 + $0xb0] sm:$0xff]  ;;  %v2404_v57 = vld [vmem:[%s3050_s11 + $0xb8] sm:$0xff] }
 0x2ca   : > { %2395 = vst [vmem:[%s4589_s12 + $0x120] sm:$0xff] %v2394_v34  ;;  %2397 = vst [vmem:[%s4589_s12 + $0x130] sm:$0xff] %v2396_v38  ;;  %v2406_v54 = vld [vmem:[%s3050_s11 + $0xc0] sm:$0xff]  ;;  %v2408_v37 = vld [vmem:[%s3050_s11 + $0xc8] sm:$0xff] }
 0x2cb   : > { %2399 = vst [vmem:[%s4589_s12 + $0x140] sm:$0xff] %v2398_v27  ;;  %2401 = vst [vmem:[%s4589_s12 + $0x150] sm:$0xff] %v2400_v20  ;;  %v2410_v2 = vld [vmem:[%s3050_s11 + $0xd0] sm:$0xff]  ;;  %v2412_v25 = vld [vmem:[%s3050_s11 + $0xd8] sm:$0xff] }
 0x2cc   : > { %2403 = vst [vmem:[%s4589_s12 + $0x160] sm:$0xff] %v2402_v11  ;;  %2405 = vst [vmem:[%s4589_s12 + $0x170] sm:$0xff] %v2404_v57  ;;  %v2414_v63 = vld [vmem:[%s3050_s11 + $0xe0] sm:$0xff]  ;;  %v2416_v60 = vld [vmem:[%s3050_s11 + $0xe8] sm:$0xff] }
 0x2cd   : > { %2407 = vst [vmem:[%s4589_s12 + $0x180] sm:$0xff] %v2406_v54  ;;  %2409 = vst [vmem:[%s4589_s12 + $0x190] sm:$0xff] %v2408_v37  ;;  %v2418_v44 = vld [vmem:[%s3050_s11 + $0xf0] sm:$0xff]  ;;  %v2420_v40 = vld [vmem:[%s3050_s11 + $0xf8] sm:$0xff] }
 0x2ce   : > { %2411 = vst [vmem:[%s4589_s12 + $0x1a0] sm:$0xff] %v2410_v2  ;;  %2413 = vst [vmem:[%s4589_s12 + $0x1b0] sm:$0xff] %v2412_v25 }
 0x2cf   : > { %2415 = vst [vmem:[%s4589_s12 + $0x1c0] sm:$0xff] %v2414_v63  ;;  %2417 = vst [vmem:[%s4589_s12 + $0x1d0] sm:$0xff] %v2416_v60 }
 0x2d0   : > { %2419 = vst [vmem:[%s4589_s12 + $0x1e0] sm:$0xff] %v2418_v44  ;;  %2421 = vst [vmem:[%s4589_s12 + $0x1f0] sm:$0xff] %v2420_v40 }
 0x2d1 PF: > { %p18_p11 = scmp.ge.s32.totalorder %s3006_s17, 4   ;;  %s4675_s13 = smov %s2924_s14 }
 0x2d2   : > { %s4676_s14 = smov %s3016_s20  ;;  %s4677_s15 = smov %s3006_s17 }
 0x2d3   :  { %20 = sbr.rel (!%p18_p11) target bundleno = 2 (0x2), region = 287 }

</bundles_post_ra>
